<compile_context>
chip_gen: v7x
topology: tpu7x:2x2x1
jax: 0.10.0
libtpu: 0.0.40
codegen_flags: <defaults>
</compile_context>

<pallas_src>
import jax
import jax.numpy as jnp
from jax import lax
from jax.experimental import pallas as pl
from jax.experimental.pallas import tpu as pltpu

IN_SIZE = 57      # input_size
HIDDEN = 64       # hidden_size
OUT_SIZE = 7      # output_size

IN_PAD = 64       # 57 -> 64  (zero-padded features / zero weight rows)
OUT_PAD = 128     # 7  -> 128 (lane-dense output; padded bias columns = -1e30)
NEG_BIG = -1e30

_HIGH = jax.lax.Precision.HIGHEST


def _round_up(n, m):
    return (n + m - 1) // m * m


def rnn_kernel(x_ref, wxh_ref, whh_ref, bh_ref, wxo_ref, who_ref, bo_ref, o_ref):
    # x_ref:   (T, TB, IN_PAD)  -- sequence-major so x_ref[t] is a clean 2-D load
    # weights: resident across grid steps (constant index maps)
    # o_ref:   (TB, OUT_PAD)    -- lane-dense log-prob output (first OUT_SIZE real)
    T = x_ref.shape[0]
    TB = x_ref.shape[1]

    wxh = wxh_ref[...]
    whh = whh_ref[...]
    bh = bh_ref[...]
    wxo = wxo_ref[...]
    who = who_ref[...]
    bo = bo_ref[...]

    h0 = jnp.zeros((TB, HIDDEN), jnp.float32)
    logits0 = jnp.broadcast_to(bo, (TB, OUT_PAD)).astype(jnp.float32)

    def step(t, carry):
        h, logits = carry
        x_t = x_ref[t]                                  # (TB, IN_PAD)
        valid = x_t[:, 0:1] != -1.0                     # (TB, 1): padded-row mask
        # Both i2h and i2o use the *old* hidden (same "combined" as PyTorch).
        h_new = (jnp.dot(x_t, wxh, precision=_HIGH, preferred_element_type=jnp.float32)
                 + jnp.dot(h, whh, precision=_HIGH, preferred_element_type=jnp.float32)
                 + bh)
        logit_new = (jnp.dot(x_t, wxo, precision=_HIGH, preferred_element_type=jnp.float32)
                     + jnp.dot(h, who, precision=_HIGH, preferred_element_type=jnp.float32)
                     + bo)
        h = jnp.where(valid, h_new, h)
        logits = jnp.where(valid, logit_new, logits)
        return h, logits

    _, logits = lax.fori_loop(0, T, step, (h0, logits0), unroll=(T <= 16))

    # log_softmax over 128 padded lanes == log_softmax over the real 7 classes
    # (padded columns sit at ~-1e30 so exp(.) underflows to exactly 0).
    m = jnp.max(logits, axis=1, keepdims=True)
    shifted = logits - m
    lse = jnp.log(jnp.sum(jnp.exp(shifted), axis=1, keepdims=True))
    o_ref[...] = shifted - lse


def rnn_forward(line_tensors, params, *, batch_tile=512):
    """line_tensors: (B, T, IN_SIZE) float32. Rows whose first element == -1 are
    padding and are skipped (hidden not updated). Returns (B, OUT_SIZE) log-probs
    from the last valid step of each sequence."""
    i2h_w, i2h_b, i2o_w, i2o_b = params
    x = jnp.asarray(line_tensors, jnp.float32)
    B, T, _ = x.shape

    # --- weight prep (once, outside the kernel): split combined weights and pad ---
    wxh = jnp.zeros((IN_PAD, HIDDEN), jnp.float32).at[:IN_SIZE].set(i2h_w[:, :IN_SIZE].T)
    whh = i2h_w[:, IN_SIZE:].T.astype(jnp.float32)                      # (H, H)
    bh = i2h_b.reshape(1, HIDDEN).astype(jnp.float32)
    wxo = jnp.zeros((IN_PAD, OUT_PAD), jnp.float32).at[:IN_SIZE, :OUT_SIZE].set(
        i2o_w[:, :IN_SIZE].T)
    who = jnp.zeros((HIDDEN, OUT_PAD), jnp.float32).at[:, :OUT_SIZE].set(
        i2o_w[:, IN_SIZE:].T)
    bo = jnp.full((1, OUT_PAD), NEG_BIG, jnp.float32).at[0, :OUT_SIZE].set(i2o_b)

    # --- input prep: pad features to IN_PAD, batch to a multiple of the tile ---
    B_pad = _round_up(max(B, 8), 8)
    TB = min(batch_tile, B_pad)
    B_pad = _round_up(B_pad, TB)
    x_p = jnp.zeros((B_pad, T, IN_PAD), jnp.float32).at[:B, :, :IN_SIZE].set(x)
    x_p = jnp.transpose(x_p, (1, 0, 2))                                  # (T, B_pad, IN_PAD)

    grid = (B_pad // TB,)
    flops = 2 * B_pad * T * (IN_PAD * HIDDEN + HIDDEN * HIDDEN
                             + IN_PAD * OUT_PAD + HIDDEN * OUT_PAD)
    bytes_accessed = (x_p.size + B_pad * OUT_PAD) * 4 + 4 * sum(
        int(w.size) for w in (wxh, whh, bh, wxo, who, bo))

    out = pl.pallas_call(
        rnn_kernel,
        out_shape=jax.ShapeDtypeStruct((B_pad, OUT_PAD), jnp.float32),
        grid=grid,
        in_specs=[
            pl.BlockSpec((T, TB, IN_PAD), lambda i: (0, i, 0)),
            pl.BlockSpec((IN_PAD, HIDDEN), lambda i: (0, 0)),
            pl.BlockSpec((HIDDEN, HIDDEN), lambda i: (0, 0)),
            pl.BlockSpec((1, HIDDEN), lambda i: (0, 0)),
            pl.BlockSpec((IN_PAD, OUT_PAD), lambda i: (0, 0)),
            pl.BlockSpec((HIDDEN, OUT_PAD), lambda i: (0, 0)),
            pl.BlockSpec((1, OUT_PAD), lambda i: (0, 0)),
        ],
        out_specs=pl.BlockSpec((TB, OUT_PAD), lambda i: (i, 0)),
        compiler_params=pltpu.CompilerParams(dimension_semantics=("parallel",)),
        cost_estimate=pl.CostEstimate(
            flops=flops,
            transcendentals=B_pad * OUT_PAD,
            bytes_accessed=bytes_accessed,
        ),
    )(x_p, wxh, whh, bh, wxo, who, bo)

    return out[:B, :OUT_SIZE]


def init_params(key):
    """nn.Linear-style init: weight/bias ~ U(-1/sqrt(fan_in), 1/sqrt(fan_in)),
    stored in PyTorch layout: i2h_w (H, IN+H), i2h_b (H,), i2o_w (O, IN+H), i2o_b (O,)."""
    def linear(key, fan_in, fan_out):
        kw, kb = jax.random.split(key)
        lim = float(fan_in) ** -0.5
        w = jax.random.uniform(kw, (fan_out, fan_in), jnp.float32, -lim, lim)
        b = jax.random.uniform(kb, (fan_out,), jnp.float32, -lim, lim)
        return w, b

    k1, k2 = jax.random.split(key)
    i2h_w, i2h_b = linear(k1, IN_SIZE + HIDDEN, HIDDEN)
    i2o_w, i2o_b = linear(k2, IN_SIZE + HIDDEN, OUT_SIZE)
    return i2h_w, i2h_b, i2o_w, i2o_b


def rnn_reference(line_tensors, params):
    """Eager pure-JAX transcription of the PyTorch forward, for verification."""
    i2h_w, i2h_b, i2o_w, i2o_b = params
    outs = []
    for line in line_tensors:                       # line: (T, IN_SIZE)
        h = jnp.zeros((1, HIDDEN), jnp.float32)
        out = None
        for t in range(line.shape[0]):
            if float(line[t, 0]) != -1.0:
                combined = jnp.concatenate([line[t:t + 1, :], h], axis=1)   # (1, IN+H)
                new_h = jnp.dot(combined, i2h_w.T, precision=_HIGH) + i2h_b
                logits = jnp.dot(combined, i2o_w.T, precision=_HIGH) + i2o_b
                out = jax.nn.log_softmax(logits, axis=1)
                h = new_h
        outs.append(out)
    return jnp.concatenate(outs, axis=0)


if __name__ == "__main__":
    key = jax.random.PRNGKey(0)
    k_params, k_idx, k_len = jax.random.split(key, 3)

    params = init_params(k_params)

    # Small deterministic batch of one-hot "letter" sequences with -1 padding rows,
    # matching the PyTorch module's expected input convention.
    B, T = 6, 8
    lengths = jax.random.randint(k_len, (B,), 3, T + 1)            # valid lengths in [3, T]
    letters = jax.random.randint(k_idx, (B, T), 0, IN_SIZE)
    one_hot = jax.nn.one_hot(letters, IN_SIZE, dtype=jnp.float32)  # (B, T, 57)
    pad_mask = jnp.arange(T)[None, :, None] >= lengths[:, None, None]
    x = jnp.where(pad_mask, -1.0, one_hot)                         # padded rows are all -1

    out = rnn_forward(x, params)
    out = jax.block_until_ready(out)

    ref = rnn_reference(x, params)
    assert out.shape == (B, OUT_SIZE)
    err = float(jnp.max(jnp.abs(out - ref)))
    # f32 with HIGHEST matmul precision on both sides; 1e-3 leaves margin for
    # MXU pass-count differences between the Pallas kernel and the XLA reference.
    assert err < 1e-3, f"max abs err {err}"

    print("KERNEL_OK")
</pallas_src>

<mosaic_0001>
module attributes {stable_mosaic.version = 11 : i64} {
  func.func @rnn_kernel(%arg0: i32, %arg1: memref<8x8x64xf32, #tpu.memory_space<vmem>>, %arg2: memref<64x64xf32, #tpu.memory_space<vmem>>, %arg3: memref<64x64xf32, #tpu.memory_space<vmem>>, %arg4: memref<1x64xf32, #tpu.memory_space<vmem>>, %arg5: memref<64x128xf32, #tpu.memory_space<vmem>>, %arg6: memref<64x128xf32, #tpu.memory_space<vmem>>, %arg7: memref<1x128xf32, #tpu.memory_space<vmem>>, %arg8: memref<8x128xf32, #tpu.memory_space<vmem>>) attributes {dimension_semantics = [#tpu.dimension_semantics<parallel>], iteration_bounds = array<i64: 1>, scalar_prefetch = 0 : i64, scratch_operands = 0 : i64, tpu.core_type = #tpu.core_type<tc>, window_params = [{transform_indices = @transform_0, window_bounds = array<i64: 8, 8, 64>}, {pipeline_mode = #tpu.pipeline_mode<synchronous>, transform_indices = @transform_1, window_bounds = array<i64: 64, 64>}, {pipeline_mode = #tpu.pipeline_mode<synchronous>, transform_indices = @transform_2, window_bounds = array<i64: 64, 64>}, {pipeline_mode = #tpu.pipeline_mode<synchronous>, transform_indices = @transform_3, window_bounds = array<i64: 1, 64>}, {pipeline_mode = #tpu.pipeline_mode<synchronous>, transform_indices = @transform_4, window_bounds = array<i64: 64, 128>}, {pipeline_mode = #tpu.pipeline_mode<synchronous>, transform_indices = @transform_5, window_bounds = array<i64: 64, 128>}, {pipeline_mode = #tpu.pipeline_mode<synchronous>, transform_indices = @transform_6, window_bounds = array<i64: 1, 128>}, {transform_indices = @transform_7, window_bounds = array<i64: 8, 128>}]} {
    %c0 = arith.constant 0 : index
    %c0_0 = arith.constant 0 : index
    %0 = vector.load %arg2[%c0, %c0_0] : memref<64x64xf32, #tpu.memory_space<vmem>>, vector<64x64xf32>
    %c0_1 = arith.constant 0 : index
    %c0_2 = arith.constant 0 : index
    %1 = vector.load %arg3[%c0_1, %c0_2] : memref<64x64xf32, #tpu.memory_space<vmem>>, vector<64x64xf32>
    %c0_3 = arith.constant 0 : index
    %c0_4 = arith.constant 0 : index
    %2 = vector.load %arg4[%c0_3, %c0_4] : memref<1x64xf32, #tpu.memory_space<vmem>>, vector<1x64xf32>
    %c0_5 = arith.constant 0 : index
    %c0_6 = arith.constant 0 : index
    %3 = vector.load %arg5[%c0_5, %c0_6] : memref<64x128xf32, #tpu.memory_space<vmem>>, vector<64x128xf32>
    %c0_7 = arith.constant 0 : index
    %c0_8 = arith.constant 0 : index
    %4 = vector.load %arg6[%c0_7, %c0_8] : memref<64x128xf32, #tpu.memory_space<vmem>>, vector<64x128xf32>
    %c0_9 = arith.constant 0 : index
    %c0_10 = arith.constant 0 : index
    %5 = vector.load %arg7[%c0_9, %c0_10] : memref<1x128xf32, #tpu.memory_space<vmem>>, vector<1x128xf32>
    %cst = arith.constant 0.000000e+00 : f32
    %6 = vector.broadcast %cst : f32 to vector<8x64xf32>
    %7 = vector.shape_cast %5 : vector<1x128xf32> to vector<1x128xf32>
    %8 = vector.broadcast %7 : vector<1x128xf32> to vector<8x128xf32>
    %c0_i32 = arith.constant 0 : i32
    %9 = arith.index_cast %c0_i32 : i32 to index
    %c0_11 = arith.constant 0 : index
    %c0_12 = arith.constant 0 : index
    %10 = vector.load %arg1[%9, %c0_11, %c0_12] : memref<8x8x64xf32, #tpu.memory_space<vmem>>, vector<1x8x64xf32>
    %11 = vector.shape_cast %10 : vector<1x8x64xf32> to vector<8x64xf32>
    %12 = vector.extract_strided_slice %11 {offsets = [0, 0], sizes = [8, 1], strides = [1, 1]} : vector<8x64xf32> to vector<8x1xf32>
    %cst_13 = arith.constant -1.000000e+00 : f32
    %13 = vector.broadcast %cst_13 : f32 to vector<8x1xf32>
    %14 = arith.cmpf one, %12, %13 : vector<8x1xf32>
    %cst_14 = arith.constant dense<0.000000e+00> : vector<8x64xf32>
    %15 = tpu.matmul %11, %0, %cst_14 {dimension_numbers = #tpu.dot_dimension_numbers<[1], [0], [0], [1], [0, 0, 1, 1], [], []>, precision = #tpu.contract_precision<fp32>} : vector<8x64xf32>, vector<64x64xf32>, vector<8x64xf32> -> vector<8x64xf32>
    %cst_15 = arith.constant dense<0.000000e+00> : vector<8x64xf32>
    %16 = tpu.matmul %6, %1, %cst_15 {dimension_numbers = #tpu.dot_dimension_numbers<[1], [0], [0], [1], [0, 0, 1, 1], [], []>, precision = #tpu.contract_precision<fp32>} : vector<8x64xf32>, vector<64x64xf32>, vector<8x64xf32> -> vector<8x64xf32>
    %17 = arith.addf %15, %16 : vector<8x64xf32>
    %18 = vector.broadcast %2 : vector<1x64xf32> to vector<8x64xf32>
    %19 = arith.addf %17, %18 : vector<8x64xf32>
    %cst_16 = arith.constant dense<0.000000e+00> : vector<8x128xf32>
    %20 = tpu.matmul %11, %3, %cst_16 {dimension_numbers = #tpu.dot_dimension_numbers<[1], [0], [0], [1], [0, 0, 1, 1], [], []>, precision = #tpu.contract_precision<fp32>} : vector<8x64xf32>, vector<64x128xf32>, vector<8x128xf32> -> vector<8x128xf32>
    %cst_17 = arith.constant dense<0.000000e+00> : vector<8x128xf32>
    %21 = tpu.matmul %6, %4, %cst_17 {dimension_numbers = #tpu.dot_dimension_numbers<[1], [0], [0], [1], [0, 0, 1, 1], [], []>, precision = #tpu.contract_precision<fp32>} : vector<8x64xf32>, vector<64x128xf32>, vector<8x128xf32> -> vector<8x128xf32>
    %22 = arith.addf %20, %21 : vector<8x128xf32>
    %23 = vector.broadcast %5 : vector<1x128xf32> to vector<8x128xf32>
    %24 = arith.addf %22, %23 : vector<8x128xf32>
    %25 = vector.shape_cast %14 : vector<8x1xi1> to vector<8x1xi1>
    %26 = vector.broadcast %25 : vector<8x1xi1> to vector<8x64xi1>
    %27 = arith.select %26, %19, %6 : vector<8x64xi1>, vector<8x64xf32>
    %28 = vector.shape_cast %14 : vector<8x1xi1> to vector<8x1xi1>
    %29 = vector.broadcast %28 : vector<8x1xi1> to vector<8x128xi1>
    %30 = arith.select %29, %24, %8 : vector<8x128xi1>, vector<8x128xf32>
    %c1_i32 = arith.constant 1 : i32
    %31 = arith.index_cast %c1_i32 : i32 to index
    %c0_18 = arith.constant 0 : index
    %c0_19 = arith.constant 0 : index
    %32 = vector.load %arg1[%31, %c0_18, %c0_19] : memref<8x8x64xf32, #tpu.memory_space<vmem>>, vector<1x8x64xf32>
    %33 = vector.shape_cast %32 : vector<1x8x64xf32> to vector<8x64xf32>
    %34 = vector.extract_strided_slice %33 {offsets = [0, 0], sizes = [8, 1], strides = [1, 1]} : vector<8x64xf32> to vector<8x1xf32>
    %cst_20 = arith.constant -1.000000e+00 : f32
    %35 = vector.broadcast %cst_20 : f32 to vector<8x1xf32>
    %36 = arith.cmpf one, %34, %35 : vector<8x1xf32>
    %cst_21 = arith.constant dense<0.000000e+00> : vector<8x64xf32>
    %37 = tpu.matmul %33, %0, %cst_21 {dimension_numbers = #tpu.dot_dimension_numbers<[1], [0], [0], [1], [0, 0, 1, 1], [], []>, precision = #tpu.contract_precision<fp32>} : vector<8x64xf32>, vector<64x64xf32>, vector<8x64xf32> -> vector<8x64xf32>
    %cst_22 = arith.constant dense<0.000000e+00> : vector<8x64xf32>
    %38 = tpu.matmul %27, %1, %cst_22 {dimension_numbers = #tpu.dot_dimension_numbers<[1], [0], [0], [1], [0, 0, 1, 1], [], []>, precision = #tpu.contract_precision<fp32>} : vector<8x64xf32>, vector<64x64xf32>, vector<8x64xf32> -> vector<8x64xf32>
    %39 = arith.addf %37, %38 : vector<8x64xf32>
    %40 = vector.broadcast %2 : vector<1x64xf32> to vector<8x64xf32>
    %41 = arith.addf %39, %40 : vector<8x64xf32>
    %cst_23 = arith.constant dense<0.000000e+00> : vector<8x128xf32>
    %42 = tpu.matmul %33, %3, %cst_23 {dimension_numbers = #tpu.dot_dimension_numbers<[1], [0], [0], [1], [0, 0, 1, 1], [], []>, precision = #tpu.contract_precision<fp32>} : vector<8x64xf32>, vector<64x128xf32>, vector<8x128xf32> -> vector<8x128xf32>
    %cst_24 = arith.constant dense<0.000000e+00> : vector<8x128xf32>
    %43 = tpu.matmul %27, %4, %cst_24 {dimension_numbers = #tpu.dot_dimension_numbers<[1], [0], [0], [1], [0, 0, 1, 1], [], []>, precision = #tpu.contract_precision<fp32>} : vector<8x64xf32>, vector<64x128xf32>, vector<8x128xf32> -> vector<8x128xf32>
    %44 = arith.addf %42, %43 : vector<8x128xf32>
    %45 = vector.broadcast %5 : vector<1x128xf32> to vector<8x128xf32>
    %46 = arith.addf %44, %45 : vector<8x128xf32>
    %47 = vector.shape_cast %36 : vector<8x1xi1> to vector<8x1xi1>
    %48 = vector.broadcast %47 : vector<8x1xi1> to vector<8x64xi1>
    %49 = arith.select %48, %41, %27 : vector<8x64xi1>, vector<8x64xf32>
    %50 = vector.shape_cast %36 : vector<8x1xi1> to vector<8x1xi1>
    %51 = vector.broadcast %50 : vector<8x1xi1> to vector<8x128xi1>
    %52 = arith.select %51, %46, %30 : vector<8x128xi1>, vector<8x128xf32>
    %c2_i32 = arith.constant 2 : i32
    %53 = arith.index_cast %c2_i32 : i32 to index
    %c0_25 = arith.constant 0 : index
    %c0_26 = arith.constant 0 : index
    %54 = vector.load %arg1[%53, %c0_25, %c0_26] : memref<8x8x64xf32, #tpu.memory_space<vmem>>, vector<1x8x64xf32>
    %55 = vector.shape_cast %54 : vector<1x8x64xf32> to vector<8x64xf32>
    %56 = vector.extract_strided_slice %55 {offsets = [0, 0], sizes = [8, 1], strides = [1, 1]} : vector<8x64xf32> to vector<8x1xf32>
    %cst_27 = arith.constant -1.000000e+00 : f32
    %57 = vector.broadcast %cst_27 : f32 to vector<8x1xf32>
    %58 = arith.cmpf one, %56, %57 : vector<8x1xf32>
    %cst_28 = arith.constant dense<0.000000e+00> : vector<8x64xf32>
    %59 = tpu.matmul %55, %0, %cst_28 {dimension_numbers = #tpu.dot_dimension_numbers<[1], [0], [0], [1], [0, 0, 1, 1], [], []>, precision = #tpu.contract_precision<fp32>} : vector<8x64xf32>, vector<64x64xf32>, vector<8x64xf32> -> vector<8x64xf32>
    %cst_29 = arith.constant dense<0.000000e+00> : vector<8x64xf32>
    %60 = tpu.matmul %49, %1, %cst_29 {dimension_numbers = #tpu.dot_dimension_numbers<[1], [0], [0], [1], [0, 0, 1, 1], [], []>, precision = #tpu.contract_precision<fp32>} : vector<8x64xf32>, vector<64x64xf32>, vector<8x64xf32> -> vector<8x64xf32>
    %61 = arith.addf %59, %60 : vector<8x64xf32>
    %62 = vector.broadcast %2 : vector<1x64xf32> to vector<8x64xf32>
    %63 = arith.addf %61, %62 : vector<8x64xf32>
    %cst_30 = arith.constant dense<0.000000e+00> : vector<8x128xf32>
    %64 = tpu.matmul %55, %3, %cst_30 {dimension_numbers = #tpu.dot_dimension_numbers<[1], [0], [0], [1], [0, 0, 1, 1], [], []>, precision = #tpu.contract_precision<fp32>} : vector<8x64xf32>, vector<64x128xf32>, vector<8x128xf32> -> vector<8x128xf32>
    %cst_31 = arith.constant dense<0.000000e+00> : vector<8x128xf32>
    %65 = tpu.matmul %49, %4, %cst_31 {dimension_numbers = #tpu.dot_dimension_numbers<[1], [0], [0], [1], [0, 0, 1, 1], [], []>, precision = #tpu.contract_precision<fp32>} : vector<8x64xf32>, vector<64x128xf32>, vector<8x128xf32> -> vector<8x128xf32>
    %66 = arith.addf %64, %65 : vector<8x128xf32>
    %67 = vector.broadcast %5 : vector<1x128xf32> to vector<8x128xf32>
    %68 = arith.addf %66, %67 : vector<8x128xf32>
    %69 = vector.shape_cast %58 : vector<8x1xi1> to vector<8x1xi1>
    %70 = vector.broadcast %69 : vector<8x1xi1> to vector<8x64xi1>
    %71 = arith.select %70, %63, %49 : vector<8x64xi1>, vector<8x64xf32>
    %72 = vector.shape_cast %58 : vector<8x1xi1> to vector<8x1xi1>
    %73 = vector.broadcast %72 : vector<8x1xi1> to vector<8x128xi1>
    %74 = arith.select %73, %68, %52 : vector<8x128xi1>, vector<8x128xf32>
    %c3_i32 = arith.constant 3 : i32
    %75 = arith.index_cast %c3_i32 : i32 to index
    %c0_32 = arith.constant 0 : index
    %c0_33 = arith.constant 0 : index
    %76 = vector.load %arg1[%75, %c0_32, %c0_33] : memref<8x8x64xf32, #tpu.memory_space<vmem>>, vector<1x8x64xf32>
    %77 = vector.shape_cast %76 : vector<1x8x64xf32> to vector<8x64xf32>
    %78 = vector.extract_strided_slice %77 {offsets = [0, 0], sizes = [8, 1], strides = [1, 1]} : vector<8x64xf32> to vector<8x1xf32>
    %cst_34 = arith.constant -1.000000e+00 : f32
    %79 = vector.broadcast %cst_34 : f32 to vector<8x1xf32>
    %80 = arith.cmpf one, %78, %79 : vector<8x1xf32>
    %cst_35 = arith.constant dense<0.000000e+00> : vector<8x64xf32>
    %81 = tpu.matmul %77, %0, %cst_35 {dimension_numbers = #tpu.dot_dimension_numbers<[1], [0], [0], [1], [0, 0, 1, 1], [], []>, precision = #tpu.contract_precision<fp32>} : vector<8x64xf32>, vector<64x64xf32>, vector<8x64xf32> -> vector<8x64xf32>
    %cst_36 = arith.constant dense<0.000000e+00> : vector<8x64xf32>
    %82 = tpu.matmul %71, %1, %cst_36 {dimension_numbers = #tpu.dot_dimension_numbers<[1], [0], [0], [1], [0, 0, 1, 1], [], []>, precision = #tpu.contract_precision<fp32>} : vector<8x64xf32>, vector<64x64xf32>, vector<8x64xf32> -> vector<8x64xf32>
    %83 = arith.addf %81, %82 : vector<8x64xf32>
    %84 = vector.broadcast %2 : vector<1x64xf32> to vector<8x64xf32>
    %85 = arith.addf %83, %84 : vector<8x64xf32>
    %cst_37 = arith.constant dense<0.000000e+00> : vector<8x128xf32>
    %86 = tpu.matmul %77, %3, %cst_37 {dimension_numbers = #tpu.dot_dimension_numbers<[1], [0], [0], [1], [0, 0, 1, 1], [], []>, precision = #tpu.contract_precision<fp32>} : vector<8x64xf32>, vector<64x128xf32>, vector<8x128xf32> -> vector<8x128xf32>
    %cst_38 = arith.constant dense<0.000000e+00> : vector<8x128xf32>
    %87 = tpu.matmul %71, %4, %cst_38 {dimension_numbers = #tpu.dot_dimension_numbers<[1], [0], [0], [1], [0, 0, 1, 1], [], []>, precision = #tpu.contract_precision<fp32>} : vector<8x64xf32>, vector<64x128xf32>, vector<8x128xf32> -> vector<8x128xf32>
    %88 = arith.addf %86, %87 : vector<8x128xf32>
    %89 = vector.broadcast %5 : vector<1x128xf32> to vector<8x128xf32>
    %90 = arith.addf %88, %89 : vector<8x128xf32>
    %91 = vector.shape_cast %80 : vector<8x1xi1> to vector<8x1xi1>
    %92 = vector.broadcast %91 : vector<8x1xi1> to vector<8x64xi1>
    %93 = arith.select %92, %85, %71 : vector<8x64xi1>, vector<8x64xf32>
    %94 = vector.shape_cast %80 : vector<8x1xi1> to vector<8x1xi1>
    %95 = vector.broadcast %94 : vector<8x1xi1> to vector<8x128xi1>
    %96 = arith.select %95, %90, %74 : vector<8x128xi1>, vector<8x128xf32>
    %c4_i32 = arith.constant 4 : i32
    %97 = arith.index_cast %c4_i32 : i32 to index
    %c0_39 = arith.constant 0 : index
    %c0_40 = arith.constant 0 : index
    %98 = vector.load %arg1[%97, %c0_39, %c0_40] : memref<8x8x64xf32, #tpu.memory_space<vmem>>, vector<1x8x64xf32>
    %99 = vector.shape_cast %98 : vector<1x8x64xf32> to vector<8x64xf32>
    %100 = vector.extract_strided_slice %99 {offsets = [0, 0], sizes = [8, 1], strides = [1, 1]} : vector<8x64xf32> to vector<8x1xf32>
    %cst_41 = arith.constant -1.000000e+00 : f32
    %101 = vector.broadcast %cst_41 : f32 to vector<8x1xf32>
    %102 = arith.cmpf one, %100, %101 : vector<8x1xf32>
    %cst_42 = arith.constant dense<0.000000e+00> : vector<8x64xf32>
    %103 = tpu.matmul %99, %0, %cst_42 {dimension_numbers = #tpu.dot_dimension_numbers<[1], [0], [0], [1], [0, 0, 1, 1], [], []>, precision = #tpu.contract_precision<fp32>} : vector<8x64xf32>, vector<64x64xf32>, vector<8x64xf32> -> vector<8x64xf32>
    %cst_43 = arith.constant dense<0.000000e+00> : vector<8x64xf32>
    %104 = tpu.matmul %93, %1, %cst_43 {dimension_numbers = #tpu.dot_dimension_numbers<[1], [0], [0], [1], [0, 0, 1, 1], [], []>, precision = #tpu.contract_precision<fp32>} : vector<8x64xf32>, vector<64x64xf32>, vector<8x64xf32> -> vector<8x64xf32>
    %105 = arith.addf %103, %104 : vector<8x64xf32>
    %106 = vector.broadcast %2 : vector<1x64xf32> to vector<8x64xf32>
    %107 = arith.addf %105, %106 : vector<8x64xf32>
    %cst_44 = arith.constant dense<0.000000e+00> : vector<8x128xf32>
    %108 = tpu.matmul %99, %3, %cst_44 {dimension_numbers = #tpu.dot_dimension_numbers<[1], [0], [0], [1], [0, 0, 1, 1], [], []>, precision = #tpu.contract_precision<fp32>} : vector<8x64xf32>, vector<64x128xf32>, vector<8x128xf32> -> vector<8x128xf32>
    %cst_45 = arith.constant dense<0.000000e+00> : vector<8x128xf32>
    %109 = tpu.matmul %93, %4, %cst_45 {dimension_numbers = #tpu.dot_dimension_numbers<[1], [0], [0], [1], [0, 0, 1, 1], [], []>, precision = #tpu.contract_precision<fp32>} : vector<8x64xf32>, vector<64x128xf32>, vector<8x128xf32> -> vector<8x128xf32>
    %110 = arith.addf %108, %109 : vector<8x128xf32>
    %111 = vector.broadcast %5 : vector<1x128xf32> to vector<8x128xf32>
    %112 = arith.addf %110, %111 : vector<8x128xf32>
    %113 = vector.shape_cast %102 : vector<8x1xi1> to vector<8x1xi1>
    %114 = vector.broadcast %113 : vector<8x1xi1> to vector<8x64xi1>
    %115 = arith.select %114, %107, %93 : vector<8x64xi1>, vector<8x64xf32>
    %116 = vector.shape_cast %102 : vector<8x1xi1> to vector<8x1xi1>
    %117 = vector.broadcast %116 : vector<8x1xi1> to vector<8x128xi1>
    %118 = arith.select %117, %112, %96 : vector<8x128xi1>, vector<8x128xf32>
    %c5_i32 = arith.constant 5 : i32
    %119 = arith.index_cast %c5_i32 : i32 to index
    %c0_46 = arith.constant 0 : index
    %c0_47 = arith.constant 0 : index
    %120 = vector.load %arg1[%119, %c0_46, %c0_47] : memref<8x8x64xf32, #tpu.memory_space<vmem>>, vector<1x8x64xf32>
    %121 = vector.shape_cast %120 : vector<1x8x64xf32> to vector<8x64xf32>
    %122 = vector.extract_strided_slice %121 {offsets = [0, 0], sizes = [8, 1], strides = [1, 1]} : vector<8x64xf32> to vector<8x1xf32>
    %cst_48 = arith.constant -1.000000e+00 : f32
    %123 = vector.broadcast %cst_48 : f32 to vector<8x1xf32>
    %124 = arith.cmpf one, %122, %123 : vector<8x1xf32>
    %cst_49 = arith.constant dense<0.000000e+00> : vector<8x64xf32>
    %125 = tpu.matmul %121, %0, %cst_49 {dimension_numbers = #tpu.dot_dimension_numbers<[1], [0], [0], [1], [0, 0, 1, 1], [], []>, precision = #tpu.contract_precision<fp32>} : vector<8x64xf32>, vector<64x64xf32>, vector<8x64xf32> -> vector<8x64xf32>
    %cst_50 = arith.constant dense<0.000000e+00> : vector<8x64xf32>
    %126 = tpu.matmul %115, %1, %cst_50 {dimension_numbers = #tpu.dot_dimension_numbers<[1], [0], [0], [1], [0, 0, 1, 1], [], []>, precision = #tpu.contract_precision<fp32>} : vector<8x64xf32>, vector<64x64xf32>, vector<8x64xf32> -> vector<8x64xf32>
    %127 = arith.addf %125, %126 : vector<8x64xf32>
    %128 = vector.broadcast %2 : vector<1x64xf32> to vector<8x64xf32>
    %129 = arith.addf %127, %128 : vector<8x64xf32>
    %cst_51 = arith.constant dense<0.000000e+00> : vector<8x128xf32>
    %130 = tpu.matmul %121, %3, %cst_51 {dimension_numbers = #tpu.dot_dimension_numbers<[1], [0], [0], [1], [0, 0, 1, 1], [], []>, precision = #tpu.contract_precision<fp32>} : vector<8x64xf32>, vector<64x128xf32>, vector<8x128xf32> -> vector<8x128xf32>
    %cst_52 = arith.constant dense<0.000000e+00> : vector<8x128xf32>
    %131 = tpu.matmul %115, %4, %cst_52 {dimension_numbers = #tpu.dot_dimension_numbers<[1], [0], [0], [1], [0, 0, 1, 1], [], []>, precision = #tpu.contract_precision<fp32>} : vector<8x64xf32>, vector<64x128xf32>, vector<8x128xf32> -> vector<8x128xf32>
    %132 = arith.addf %130, %131 : vector<8x128xf32>
    %133 = vector.broadcast %5 : vector<1x128xf32> to vector<8x128xf32>
    %134 = arith.addf %132, %133 : vector<8x128xf32>
    %135 = vector.shape_cast %124 : vector<8x1xi1> to vector<8x1xi1>
    %136 = vector.broadcast %135 : vector<8x1xi1> to vector<8x64xi1>
    %137 = arith.select %136, %129, %115 : vector<8x64xi1>, vector<8x64xf32>
    %138 = vector.shape_cast %124 : vector<8x1xi1> to vector<8x1xi1>
    %139 = vector.broadcast %138 : vector<8x1xi1> to vector<8x128xi1>
    %140 = arith.select %139, %134, %118 : vector<8x128xi1>, vector<8x128xf32>
    %c6_i32 = arith.constant 6 : i32
    %141 = arith.index_cast %c6_i32 : i32 to index
    %c0_53 = arith.constant 0 : index
    %c0_54 = arith.constant 0 : index
    %142 = vector.load %arg1[%141, %c0_53, %c0_54] : memref<8x8x64xf32, #tpu.memory_space<vmem>>, vector<1x8x64xf32>
    %143 = vector.shape_cast %142 : vector<1x8x64xf32> to vector<8x64xf32>
    %144 = vector.extract_strided_slice %143 {offsets = [0, 0], sizes = [8, 1], strides = [1, 1]} : vector<8x64xf32> to vector<8x1xf32>
    %cst_55 = arith.constant -1.000000e+00 : f32
    %145 = vector.broadcast %cst_55 : f32 to vector<8x1xf32>
    %146 = arith.cmpf one, %144, %145 : vector<8x1xf32>
    %cst_56 = arith.constant dense<0.000000e+00> : vector<8x64xf32>
    %147 = tpu.matmul %143, %0, %cst_56 {dimension_numbers = #tpu.dot_dimension_numbers<[1], [0], [0], [1], [0, 0, 1, 1], [], []>, precision = #tpu.contract_precision<fp32>} : vector<8x64xf32>, vector<64x64xf32>, vector<8x64xf32> -> vector<8x64xf32>
    %cst_57 = arith.constant dense<0.000000e+00> : vector<8x64xf32>
    %148 = tpu.matmul %137, %1, %cst_57 {dimension_numbers = #tpu.dot_dimension_numbers<[1], [0], [0], [1], [0, 0, 1, 1], [], []>, precision = #tpu.contract_precision<fp32>} : vector<8x64xf32>, vector<64x64xf32>, vector<8x64xf32> -> vector<8x64xf32>
    %149 = arith.addf %147, %148 : vector<8x64xf32>
    %150 = vector.broadcast %2 : vector<1x64xf32> to vector<8x64xf32>
    %151 = arith.addf %149, %150 : vector<8x64xf32>
    %cst_58 = arith.constant dense<0.000000e+00> : vector<8x128xf32>
    %152 = tpu.matmul %143, %3, %cst_58 {dimension_numbers = #tpu.dot_dimension_numbers<[1], [0], [0], [1], [0, 0, 1, 1], [], []>, precision = #tpu.contract_precision<fp32>} : vector<8x64xf32>, vector<64x128xf32>, vector<8x128xf32> -> vector<8x128xf32>
    %cst_59 = arith.constant dense<0.000000e+00> : vector<8x128xf32>
    %153 = tpu.matmul %137, %4, %cst_59 {dimension_numbers = #tpu.dot_dimension_numbers<[1], [0], [0], [1], [0, 0, 1, 1], [], []>, precision = #tpu.contract_precision<fp32>} : vector<8x64xf32>, vector<64x128xf32>, vector<8x128xf32> -> vector<8x128xf32>
    %154 = arith.addf %152, %153 : vector<8x128xf32>
    %155 = vector.broadcast %5 : vector<1x128xf32> to vector<8x128xf32>
    %156 = arith.addf %154, %155 : vector<8x128xf32>
    %157 = vector.shape_cast %146 : vector<8x1xi1> to vector<8x1xi1>
    %158 = vector.broadcast %157 : vector<8x1xi1> to vector<8x64xi1>
    %159 = arith.select %158, %151, %137 : vector<8x64xi1>, vector<8x64xf32>
    %160 = vector.shape_cast %146 : vector<8x1xi1> to vector<8x1xi1>
    %161 = vector.broadcast %160 : vector<8x1xi1> to vector<8x128xi1>
    %162 = arith.select %161, %156, %140 : vector<8x128xi1>, vector<8x128xf32>
    %c7_i32 = arith.constant 7 : i32
    %163 = arith.index_cast %c7_i32 : i32 to index
    %c0_60 = arith.constant 0 : index
    %c0_61 = arith.constant 0 : index
    %164 = vector.load %arg1[%163, %c0_60, %c0_61] : memref<8x8x64xf32, #tpu.memory_space<vmem>>, vector<1x8x64xf32>
    %165 = vector.shape_cast %164 : vector<1x8x64xf32> to vector<8x64xf32>
    %166 = vector.extract_strided_slice %165 {offsets = [0, 0], sizes = [8, 1], strides = [1, 1]} : vector<8x64xf32> to vector<8x1xf32>
    %cst_62 = arith.constant -1.000000e+00 : f32
    %167 = vector.broadcast %cst_62 : f32 to vector<8x1xf32>
    %168 = arith.cmpf one, %166, %167 : vector<8x1xf32>
    %cst_63 = arith.constant dense<0.000000e+00> : vector<8x64xf32>
    %169 = tpu.matmul %165, %0, %cst_63 {dimension_numbers = #tpu.dot_dimension_numbers<[1], [0], [0], [1], [0, 0, 1, 1], [], []>, precision = #tpu.contract_precision<fp32>} : vector<8x64xf32>, vector<64x64xf32>, vector<8x64xf32> -> vector<8x64xf32>
    %cst_64 = arith.constant dense<0.000000e+00> : vector<8x64xf32>
    %170 = tpu.matmul %159, %1, %cst_64 {dimension_numbers = #tpu.dot_dimension_numbers<[1], [0], [0], [1], [0, 0, 1, 1], [], []>, precision = #tpu.contract_precision<fp32>} : vector<8x64xf32>, vector<64x64xf32>, vector<8x64xf32> -> vector<8x64xf32>
    %171 = arith.addf %169, %170 : vector<8x64xf32>
    %172 = vector.broadcast %2 : vector<1x64xf32> to vector<8x64xf32>
    %173 = arith.addf %171, %172 : vector<8x64xf32>
    %cst_65 = arith.constant dense<0.000000e+00> : vector<8x128xf32>
    %174 = tpu.matmul %165, %3, %cst_65 {dimension_numbers = #tpu.dot_dimension_numbers<[1], [0], [0], [1], [0, 0, 1, 1], [], []>, precision = #tpu.contract_precision<fp32>} : vector<8x64xf32>, vector<64x128xf32>, vector<8x128xf32> -> vector<8x128xf32>
    %cst_66 = arith.constant dense<0.000000e+00> : vector<8x128xf32>
    %175 = tpu.matmul %159, %4, %cst_66 {dimension_numbers = #tpu.dot_dimension_numbers<[1], [0], [0], [1], [0, 0, 1, 1], [], []>, precision = #tpu.contract_precision<fp32>} : vector<8x64xf32>, vector<64x128xf32>, vector<8x128xf32> -> vector<8x128xf32>
    %176 = arith.addf %174, %175 : vector<8x128xf32>
    %177 = vector.broadcast %5 : vector<1x128xf32> to vector<8x128xf32>
    %178 = arith.addf %176, %177 : vector<8x128xf32>
    %179 = vector.shape_cast %168 : vector<8x1xi1> to vector<8x1xi1>
    %180 = vector.broadcast %179 : vector<8x1xi1> to vector<8x64xi1>
    %181 = arith.select %180, %173, %159 : vector<8x64xi1>, vector<8x64xf32>
    %182 = vector.shape_cast %168 : vector<8x1xi1> to vector<8x1xi1>
    %183 = vector.broadcast %182 : vector<8x1xi1> to vector<8x128xi1>
    %184 = arith.select %183, %178, %162 : vector<8x128xi1>, vector<8x128xf32>
    %c8_i32 = arith.constant 8 : i32
    %cst_67 = arith.constant dense<0xFF800000> : vector<8xf32>
    %185 = vector.multi_reduction <maximumf>, %184, %cst_67 [1] : vector<8x128xf32> to vector<8xf32>
    %186 = vector.shape_cast %185 : vector<8xf32> to vector<8x1xf32>
    %187 = vector.broadcast %186 : vector<8x1xf32> to vector<8x128xf32>
    %188 = arith.subf %184, %187 : vector<8x128xf32>
    %189 = math.exp %188 : vector<8x128xf32>
    %cst_68 = arith.constant dense<0.000000e+00> : vector<8xf32>
    %190 = vector.multi_reduction <add>, %189, %cst_68 [1] : vector<8x128xf32> to vector<8xf32>
    %191 = vector.shape_cast %190 : vector<8xf32> to vector<8x1xf32>
    %192 = math.log %191 : vector<8x1xf32>
    %193 = vector.broadcast %192 : vector<8x1xf32> to vector<8x128xf32>
    %194 = arith.subf %188, %193 : vector<8x128xf32>
    %c0_69 = arith.constant 0 : index
    %c0_70 = arith.constant 0 : index
    %195 = vector.load %arg8[%c0_69, %c0_70] : memref<8x128xf32, #tpu.memory_space<vmem>>, vector<8x128xf32>
    tpu.vector_store %arg8[%c0_69, %c0_70], %194 {strides = array<i32>} : memref<8x128xf32, #tpu.memory_space<vmem>>, vector<8x128xf32>,
    return
  }
  func.func @transform_0(%arg0: i32) -> (i32, i32, i32) {
    %c0_i32 = arith.constant 0 : i32
    %c0_i32_0 = arith.constant 0 : i32
    %c0_i32_1 = arith.constant 0 : i32
    return %c0_i32, %arg0, %c0_i32_0 : i32, i32, i32
  }
  func.func @transform_1(%arg0: i32) -> (i32, i32) {
    %c0_i32 = arith.constant 0 : i32
    %c0_i32_0 = arith.constant 0 : i32
    %c0_i32_1 = arith.constant 0 : i32
    return %c0_i32, %c0_i32_0 : i32, i32
  }
  func.func @transform_2(%arg0: i32) -> (i32, i32) {
    %c0_i32 = arith.constant 0 : i32
    %c0_i32_0 = arith.constant 0 : i32
    %c0_i32_1 = arith.constant 0 : i32
    return %c0_i32, %c0_i32_0 : i32, i32
  }
  func.func @transform_3(%arg0: i32) -> (i32, i32) {
    %c0_i32 = arith.constant 0 : i32
    %c0_i32_0 = arith.constant 0 : i32
    %c0_i32_1 = arith.constant 0 : i32
    return %c0_i32, %c0_i32_0 : i32, i32
  }
  func.func @transform_4(%arg0: i32) -> (i32, i32) {
    %c0_i32 = arith.constant 0 : i32
    %c0_i32_0 = arith.constant 0 : i32
    %c0_i32_1 = arith.constant 0 : i32
    return %c0_i32, %c0_i32_0 : i32, i32
  }
  func.func @transform_5(%arg0: i32) -> (i32, i32) {
    %c0_i32 = arith.constant 0 : i32
    %c0_i32_0 = arith.constant 0 : i32
    %c0_i32_1 = arith.constant 0 : i32
    return %c0_i32, %c0_i32_0 : i32, i32
  }
  func.func @transform_6(%arg0: i32) -> (i32, i32) {
    %c0_i32 = arith.constant 0 : i32
    %c0_i32_0 = arith.constant 0 : i32
    %c0_i32_1 = arith.constant 0 : i32
    return %c0_i32, %c0_i32_0 : i32, i32
  }
  func.func @transform_7(%arg0: i32) -> (i32, i32) {
    %c0_i32 = arith.constant 0 : i32
    %c0_i32_0 = arith.constant 0 : i32
    return %arg0, %c0_i32 : i32, i32
  }
}

</mosaic_0001>

<bundles_post_ra>
// kernel: tpu_custom_call.1
= control target key start
LH: loop header
LB: loop body
LE: loop exit
PB: predicated region body
PF: predicated region fallthrough
CT: control target
= control target key end

     0   :  { %12 = vsyncpa [#allocation3], 0  ;;  %s26671_s0 = inlined_call_operand.hbm [shape: f32[8,8,64], index: 0, kind: input, shape index: {}]   ;;  %s26672_s1 = inlined_call_operand.hbm [shape: f32[64,64], index: 1, kind: input, shape index: {}]   ;;  %s26673_s2 = inlined_call_operand.hbm [shape: f32[64,64], index: 2, kind: input, shape index: {}]   ;;  %s26674_s3 = inlined_call_operand.vmem [shape: f32[1,64], index: 3, kind: input, shape index: {}]   ;;  %s26675_s4 = inlined_call_operand.hbm [shape: f32[64,128], index: 4, kind: input, shape index: {}]   ;;  %s26676_s5 = inlined_call_operand.hbm [shape: f32[64,128], index: 5, kind: input, shape index: {}]   ;;  %s26677_s6 = inlined_call_operand.vmem [shape: f32[1,128], index: 6, kind: input, shape index: {}]   ;;  %s26678_s7 = inlined_call_operand.hbm [shape: f32[8,128], index: 7, kind: output, shape index: {}]  }
   0x1   :  { %13 = vsyncpa [#allocation6], 0 }
   0x2   :  { %14 = vsyncpa [#allocation9], 0 }
   0x3   :  { %15 = vsyncpa [#allocation4], 0  ;;  %s23790_s24 = smov [#allocation5]   ;;  %s23791_s26 = smov [#allocation8]  }
   0x4   :  { %s33_s25 = sshll.u32 %s23790_s24, 4  ;;  %s59_s27 = sshll.u32 %s23791_s26, 4  ;;  %s34_s25 = int_to_ptr.vmem [resolvable:$true] %s33_s25  ;;  %s23842_s27 = int_to_ptr.vmem [resolvable:$true] %s59_s27 }
   0x5   :  { %s23650_s30 = scalar_lea.hbm %s26672_s1, 1024 }
   0x6   :  { %p23651_p0 = scmp.ne.s32.totalorder %s26672_s1, %s23650_s30  ;;  %p23654_p1 = scmp.lt.u32.totalorder %s23650_s30, %s26672_s1 }
   0x8   :  { %p23656_p2 = pnand %p23654_p1, %p23651_p0 }
   0xa   :  { %23659 = shalt.err (!%p23656_p2)
}
   0xb   :  { %s23660_s12 = scalar_lea.vmem %s34_s25, 1024  ;;  %p23665_p4 = scmp.lt.s32.totalorder %s34_s25, %s34_s25 }
   0xc   :  { %p23661_p3 = scmp.ne.s32.totalorder %s34_s25, %s23660_s12  ;;  %p23666_p5 = scmp.lt.s32.totalorder %s23660_s12, %s23660_s12 }
   0xe   :  { %p23667_p6 = por %p23666_p5, %p23665_p4 }
  0x10   :  { %p23668_p7 = pnand %p23667_p6, %p23661_p3 }
  0x12   :  { %23671 = shalt.err (!%p23668_p7)
}
  0x13   :  { %s23792_s13 = smov 128   ;;  %s23793_s14 = smov 8  }
  0x14   :  { %39 = dma.hbm_to_vmem [thread:$0]  %s26672_s1, 1024, %s34_s25, [#allocation6], %s23792_s13, %s23792_s13, %s23793_s14  }
  0x15   :  { %s23672_s19 = scalar_lea.hbm %s26675_s4, 1024 }
  0x16   :  { %p23673_p8 = scmp.ne.s32.totalorder %s26675_s4, %s23672_s19  ;;  %p23676_p9 = scmp.lt.u32.totalorder %s23672_s19, %s26675_s4 }
  0x18   :  { %p23678_p10 = pnand %p23676_p9, %p23673_p8 }
  0x1a   :  { %23681 = shalt.err (!%p23678_p10)
}
  0x1b   :  { %s23682_s24 = scalar_lea.vmem %s23842_s27, 1024  ;;  %p23687_p12 = scmp.lt.s32.totalorder %s23842_s27, %s23842_s27 }
  0x1c   :  { %p23683_p11 = scmp.ne.s32.totalorder %s23842_s27, %s23682_s24  ;;  %p23688_p13 = scmp.lt.s32.totalorder %s23682_s24, %s23682_s24 }
  0x1e   :  { %p23689_p0 = por %p23688_p13, %p23687_p12 }
  0x20   :  { %p23690_p1 = pnand %p23689_p0, %p23683_p11 }
  0x22   :  { %23693 = shalt.err (!%p23690_p1)
}
  0x23   :  { %65 = dma.hbm_to_vmem [thread:$0]  %s26675_s4, 1024, %s23842_s27, [#allocation9], %s23792_s13, %s23792_s13, %s23793_s14  }
  0x24   :  { %s23794_s26 = smov [#allocation2]   ;;  %s23795_s29 = smov [#allocation7]  }
  0x25   :  { %s21_s28 = sshll.u32 %s23794_s26, 4  ;;  %s45_s30 = sshll.u32 %s23795_s29, 4  ;;  %s22_s28 = int_to_ptr.vmem [resolvable:$true] %s21_s28  ;;  %s23879_s30 = int_to_ptr.vmem [resolvable:$true] %s45_s30 }
  0x26   :  { %s23694_s10 = scalar_lea.hbm %s26671_s0, 1024 }
  0x27   :  { %p23695_p2 = scmp.ne.s32.totalorder %s26671_s0, %s23694_s10  ;;  %p23698_p3 = scmp.lt.u32.totalorder %s23694_s10, %s26671_s0 }
  0x29   :  { %p23700_p4 = pnand %p23698_p3, %p23695_p2 }
  0x2b   :  { %23703 = shalt.err (!%p23700_p4)
}
  0x2c   :  { %s23704_s4 = scalar_lea.vmem %s22_s28, 1024  ;;  %p23709_p6 = scmp.lt.s32.totalorder %s22_s28, %s22_s28 }
  0x2d   :  { %p23705_p5 = scmp.ne.s32.totalorder %s22_s28, %s23704_s4  ;;  %p23710_p7 = scmp.lt.s32.totalorder %s23704_s4, %s23704_s4 }
  0x2f   :  { %p23711_p8 = por %p23710_p7, %p23709_p6 }
  0x31   :  { %p23712_p9 = pnand %p23711_p8, %p23705_p5 }
  0x33   :  { %23715 = shalt.err (!%p23712_p9)
}
  0x34   :  { %27 = dma.hbm_to_vmem [thread:$0]  %s26671_s0, 1024, %s22_s28, [#allocation3], %s23792_s13, %s23792_s13, %s23793_s14  }
  0x35   :  { %s23716_s20 = scalar_lea.hbm %s26673_s2, 1024 }
  0x36   :  { %p23717_p10 = scmp.ne.s32.totalorder %s26673_s2, %s23716_s20  ;;  %p23720_p11 = scmp.lt.u32.totalorder %s23716_s20, %s26673_s2 }
  0x38   :  { %p23722_p12 = pnand %p23720_p11, %p23717_p10 }
  0x3a   :  { %23725 = shalt.err (!%p23722_p12)
}
  0x3b   :  { %s23726_s1 = scalar_lea.vmem %s23879_s30, 1024  ;;  %p23731_p0 = scmp.lt.s32.totalorder %s23879_s30, %s23879_s30 }
  0x3c   :  { %p23727_p13 = scmp.ne.s32.totalorder %s23879_s30, %s23726_s1  ;;  %p23732_p1 = scmp.lt.s32.totalorder %s23726_s1, %s23726_s1 }
  0x3e   :  { %p23733_p2 = por %p23732_p1, %p23731_p0 }
  0x40   :  { %p23734_p3 = pnand %p23733_p2, %p23727_p13 }
  0x42   :  { %23737 = shalt.err (!%p23734_p3)
}
  0x43   :  { %51 = dma.hbm_to_vmem [thread:$0]  %s26673_s2, 1024, %s23879_s30, [#allocation6], %s23792_s13, %s23792_s13, %s23793_s14  }
  0x44   :  { %s23796_s26 = smov [#allocation10]   ;;  %s23738_s9 = scalar_lea.hbm %s26676_s5, 1024 }
  0x45   :  { %s71_s28 = sshll.u32 %s23796_s26, 4  ;;  %p23739_p4 = scmp.ne.s32.totalorder %s26676_s5, %s23738_s9  ;;  %s72_s28 = int_to_ptr.vmem [resolvable:$true] %s71_s28 }
  0x46   :  { %p23742_p5 = scmp.lt.u32.totalorder %s23738_s9, %s26676_s5 }
  0x48   :  { %p23744_p6 = pnand %p23742_p5, %p23739_p4 }
  0x4a   :  { %23747 = shalt.err (!%p23744_p6)
}
  0x4b   :  { %s23748_s16 = scalar_lea.vmem %s72_s28, 1024  ;;  %p23753_p8 = scmp.lt.s32.totalorder %s72_s28, %s72_s28 }
  0x4c   :  { %p23749_p7 = scmp.ne.s32.totalorder %s72_s28, %s23748_s16  ;;  %p23754_p9 = scmp.lt.s32.totalorder %s23748_s16, %s23748_s16 }
  0x4e   :  { %p23755_p10 = por %p23754_p9, %p23753_p8 }
  0x50   :  { %p23756_p11 = pnand %p23755_p10, %p23749_p7 }
  0x52   :  { %23759 = shalt.err (!%p23756_p11)
}
  0x53   :  { %77 = dma.hbm_to_vmem [thread:$0]  %s26676_s5, 1024, %s72_s28, [#allocation9], %s23792_s13, %s23792_s13, %s23793_s14  }
  0x54   :  { %23782 = dma.done.wait [#allocation3], 1024  }
  0x55   :  { %23783 = vsyncadd [#allocation3], 4294966272 }
  0x56   :  { %23784 = dma.done.wait [#allocation6], 2048  }
  0x57   :  { %23785 = vsyncadd [#allocation6], 4294965248 }
  0x58   :  { %23786 = dma.done.wait [#allocation9], 2048  }
  0x59   :  { %23787 = vsyncadd [#allocation9], 4294965248  ;;  %v26685_v0 = vmov 0.0|0.0   ;;  %vm23798_vm0 = vmmov 0   ;;  %v26687_v1 = vmov 0.0   ;;  %v103_v2 = vld [vmem:[#allocation7] sm:$0xff] }
  0x5a   :  { %21463 = vmatprep.subr.bf16.mxu0 %v26685_v0  ;;  %21475 = vmatprep.subr.bf16.mxu1 %v26685_v0  ;;  %v104_v3 = vld [vmem:[#allocation7 + $0x8] sm:$0xff]  ;;  %v105_v4 = vld [vmem:[#allocation7 + $0x10] sm:$0xff]  ;;  %v142_v5 = vand.u32 4294901760, %v103_v2  ;;  %v106_v7 = vld [vmem:[#allocation7 + $0x18] sm:$0xff]  ;;  %vm137_vm1 = vcmask 523264  }
  0x5b   :  { %18059 = vmatprep.mubr.msk.f32.mxu0 %vm23798_vm0, %v26687_v1  ;;  %18078 = vmatprep.mubr.msk.f32.mxu1 %vm23798_vm0, %v26687_v1  ;;  %v145_v6 = vand.u32 4294901760, %v104_v3  ;;  %v148_v8 = vand.u32 4294901760, %v105_v4  ;;  %v107_v9 = vld [vmem:[#allocation7 + $0x20] sm:$0xff]  ;;  %v108_v10 = vld [vmem:[#allocation7 + $0x28] sm:$0xff]  ;;  %v151_v11 = vand.u32 4294901760, %v106_v7  ;;  %v109_v14 = vld [vmem:[#allocation7 + $0x30] sm:$0xff] }
  0x5c   :  { %v154_v12 = vand.u32 4294901760, %v107_v9  ;;  %v157_v13 = vand.u32 4294901760, %v108_v10  ;;  %v110_v15 = vld [vmem:[#allocation7 + $0x38] sm:$0xff]  ;;  %v23939_v17 = vsub.f32 %v103_v2, %v142_v5  ;;  %v160_v20 = vand.u32 4294901760, %v109_v14  ;;  %v95_v63 = vld [vmem:[#allocation5] sm:$0xff]  ;;  %v96_v2 = vld [vmem:[#allocation5 + $0x8] sm:$0xff] }
  0x5d   :  { %v23937_v16 = vpack.c.bf16 %v145_v6, %v142_v5  ;;  %v23941_v18 = vsub.f32 %v104_v3, %v145_v6  ;;  %v23943_v19 = vpack.c.bf16 %v151_v11, %v148_v8  ;;  %v163_v21 = vand.u32 4294901760, %v110_v15  ;;  %v97_v5 = vld [vmem:[#allocation5 + $0x10] sm:$0xff] }
  0x5e   :  { %v23945_v22 = vsub.f32 %v105_v4, %v148_v8  ;;  %v227_v23 = vand.u32 4294901760, %v23939_v17  ;;  %v23950_v25 = vsub.f32 %v106_v7, %v151_v11  ;;  %v23952_v26 = vsub.f32 %v107_v9, %v154_v12  ;;  %v98_v7 = vld [vmem:[#allocation5 + $0x18] sm:$0xff] }
  0x5f   :  { %21465 = vmatpush3.bf16.msra.mxu0 %v23937_v16  ;;  %v234_v24 = vand.u32 4294901760, %v23941_v18  ;;  %v23955_v27 = vpack.c.bf16 %v157_v13, %v154_v12  ;;  %v23958_v29 = vsub.f32 %v108_v10, %v157_v13  ;;  %v23972_v36 = vsub.f32 %v109_v14, %v160_v20  ;;  %v99_v10 = vld [vmem:[#allocation5 + $0x20] sm:$0xff] }
  0x60   :  { %21466 = vmatprep.subr.bf16.mxu0 %v26685_v0  ;;  %v241_v28 = vand.u32 4294901760, %v23945_v22  ;;  %v228_v30 = vsub.f32 %v23939_v17, %v227_v23  ;;  %v248_v32 = vand.u32 4294901760, %v23950_v25  ;;  %v255_v33 = vand.u32 4294901760, %v23952_v26  ;;  %v24082_v14 = vld [vmem:[#allocation2] sm:$0xff] }
  0x61   :  { %v235_v31 = vsub.f32 %v23941_v18, %v234_v24  ;;  %v262_v35 = vand.u32 4294901760, %v23958_v29  ;;  %v23974_v37 = vsub.f32 %v110_v15, %v163_v21  ;;  %v269_v44 = vand.u32 4294901760, %v23972_v36  ;;  %v100_v15 = vld [vmem:[#allocation5 + $0x28] sm:$0xff] }
  0x62   :  { %v242_v34 = vsub.f32 %v23945_v22, %v241_v28  ;;  %v229_v38 = vand.u32 4294901760, %v228_v30  ;;  %v249_v40 = vsub.f32 %v23950_v25, %v248_v32  ;;  %v256_v41 = vsub.f32 %v23952_v26, %v255_v33 }
  0x63   :  { %21468 = vmatpush3.bf16.msra.mxu0 %v23943_v19  ;;  %v236_v39 = vand.u32 4294901760, %v235_v31  ;;  %v263_v43 = vsub.f32 %v23958_v29, %v262_v35  ;;  %v276_v45 = vand.u32 4294901760, %v23974_v37  ;;  %v23991_v48 = vpack.c.bf16 %v163_v21, %v160_v20 }
  0x64   :  { %21469 = vmatprep.subr.bf16.mxu0 %v26685_v0  ;;  %v243_v42 = vand.u32 4294901760, %v242_v34  ;;  %v250_v47 = vand.u32 4294901760, %v249_v40  ;;  %v257_v49 = vand.u32 4294901760, %v256_v41  ;;  %v270_v52 = vsub.f32 %v23972_v36, %v269_v44 }
  0x65   :  { %v23989_v46 = vpack.c.bf16 %v236_v39, %v229_v38  ;;  %v264_v51 = vand.u32 4294901760, %v263_v43  ;;  %v277_v53 = vsub.f32 %v23974_v37, %v276_v45  ;;  %v24011_v55 = vpack.c.bf16 %v23941_v18, %v23939_v17 }
  0x66   :  { %v23995_v50 = vpack.c.bf16 %v250_v47, %v243_v42  ;;  %v271_v56 = vand.u32 4294901760, %v270_v52  ;;  %v24022_v59 = vpack.c.bf16 %v23950_v25, %v23945_v22  ;;  %v24032_v60 = vpack.c.bf16 %v23958_v29, %v23952_v26  ;;  %v101_v26 = vld [vmem:[#allocation5 + $0x30] sm:$0xff] }
  0x67   :  { %26790 = vst [vmem:[#allocation16_spill] sm:$0xff] %v23989_v46  ;;  %21471 = vmatpush3.bf16.msra.mxu0 %v23955_v27  ;;  %21477 = vmatpush3.bf16.msra.mxu1 %v23989_v46  ;;  %v24007_v54 = vpack.c.bf16 %v264_v51, %v257_v49  ;;  %v278_v57 = vand.u32 4294901760, %v277_v53  ;;  %v24041_v61 = vpack.c.bf16 %v23974_v37, %v23972_v36  ;;  %v682_v3 = vand.u32 4294901760, %v95_v63 }
  0x68   :  { %26791 = vst [vmem:[#allocation17_spill] sm:$0xff] %v23995_v50  ;;  %21472 = vmatprep.subr.bf16.mxu0 %v26685_v0  ;;  %21478 = vmatprep.subr.bf16.mxu1 %v26685_v0  ;;  %v24053_v62 = vpack.c.bf16 %v234_v24, %v227_v23  ;;  %v685_v4 = vand.u32 4294901760, %v96_v2  ;;  %v24064_v6 = vpack.c.bf16 %v248_v32, %v241_v28  ;;  %v688_v8 = vand.u32 4294901760, %v97_v5  ;;  %v102_v28 = vld [vmem:[#allocation5 + $0x38] sm:$0xff] }
  0x69   :  { %26792 = vst [vmem:[#allocation18_spill] sm:$0xff] %v24007_v54  ;;  %v24018_v58 = vpack.c.bf16 %v278_v57, %v271_v56  ;;  %v691_v9 = vand.u32 4294901760, %v98_v7  ;;  %v24070_v11 = vsub.f32 %v95_v63, %v682_v3  ;;  %v24080_v13 = vpack.c.bf16 %v262_v35, %v255_v33 }
  0x6a   :  { %v24072_v12 = vsub.f32 %v96_v2, %v685_v4  ;;  %v694_v17 = vand.u32 4294901760, %v99_v10  ;;  %v24086_v18 = vsub.f32 %v97_v5, %v688_v8  ;;  %v679_v23 = vsel %vm137_vm1, %v24082_v14, 0 }
  0x6b   :  { %21474 = vmatpush3.bf16.msra.mxu0 %v23991_v48  ;;  %21480 = vmatpush3.bf16.msra.mxu1 %v23995_v50  ;;  %26793 = vst [vmem:[#allocation19_spill] sm:$0xff] %v24018_v58  ;;  %v767_v20 = vand.u32 4294901760, %v24070_v11  ;;  %v24091_v22 = vsub.f32 %v98_v7, %v691_v9  ;;  %v24101_v24 = vpack.c.bf16 %v276_v45, %v269_v44  ;;  %v697_v25 = vand.u32 4294901760, %v100_v15 }
  0x6c   :  { %21481 = vmatprep.subr.bf16.mxu1 %v26685_v0  ;;  %21487 = vmatprep.subr.bf16.mxu0 %v26685_v0  ;;  %v774_v21 = vand.u32 4294901760, %v24072_v12  ;;  %v781_v29 = vand.u32 4294901760, %v24086_v18  ;;  %v24108_v30 = vand.u32 4294901760, %v679_v23  ;;  %v24110_v31 = vsub.f32 %v99_v10, %v694_v17 }
  0x6d   :  { %v768_v32 = vsub.f32 %v24070_v11, %v767_v20  ;;  %v788_v34 = vand.u32 4294901760, %v24091_v22  ;;  %v24121_v35 = vpack.c.bf16 %v685_v4, %v682_v3  ;;  %v700_v36 = vand.u32 4294901760, %v101_v26  ;;  %v24162_v3 = vld [vmem:[#allocation2 + $0x8] sm:$0xff] }
  0x6e   :  { %18060 = vmatmul.mubr.f32.vlgmr.msra.gmra.mrb[0].mxu0 %v26687_v1  ;;  %v775_v33 = vsub.f32 %v24072_v12, %v774_v21  ;;  %v703_v37 = vand.u32 4294901760, %v102_v28  ;;  %v24123_v38 = vsub.f32 %v100_v15, %v697_v25  ;;  %v782_v39 = vsub.f32 %v24086_v18, %v781_v29 }
  0x6f   :  { %21483 = vmatpush3.bf16.msra.mxu1 %v24007_v54  ;;  %21489 = vmatpush3.bf16.msra.mxu0 %v24011_v55  ;;  %v24131_v40 = vsub.f32 %v679_v23, %v24108_v30  ;;  %v795_v41 = vand.u32 4294901760, %v24110_v31  ;;  %v769_v42 = vand.u32 4294901760, %v768_v32  ;;  %v789_v44 = vsub.f32 %v24091_v22, %v788_v34  ;;  %v8806_v23 = vld [vmem:[#allocation2 + $0x20] sm:$0xff] }
  0x70   :  { %21484 = vmatprep.subr.bf16.mxu1 %v26685_v0  ;;  %21490 = vmatprep.subr.bf16.mxu0 %v26685_v0  ;;  %v776_v43 = vand.u32 4294901760, %v775_v33  ;;  %v24140_v45 = vpack.c.bf16 %v691_v9, %v688_v8  ;;  %v802_v47 = vand.u32 4294901760, %v24123_v38  ;;  %v24143_v49 = vsub.f32 %v101_v26, %v700_v36 }
  0x71   :  { %18097 = vmatprep.mubr.msk.f32.mxu0 %vm23798_vm0, %v26687_v1  ;;  %v24145_v51 = vsub.f32 %v102_v28, %v703_v37  ;;  %v24149_v52 = vpack.c.bf16 %v697_v25, %v694_v17  ;;  %v783_v53 = vand.u32 4294901760, %v782_v39  ;;  %v24154_v56 = vand.u32 4294901760, %v24131_v40 }
  0x72   :  { %v796_v57 = vsub.f32 %v24110_v31, %v795_v41  ;;  %v24159_v63 = vpack.c.bf16 %v776_v43, %v769_v42  ;;  %v790_v2 = vand.u32 4294901760, %v789_v44  ;;  %vm136_vm2 = vcmp.ne.f32.partialorder %v24082_v14, -1.0 }
  0x73   :  { %21486 = vmatpush3.bf16.msra.mxu1 %v24018_v58  ;;  %21492 = vmatpush3.bf16.msra.mxu0 %v24022_v59  ;;  %v803_v4 = vsub.f32 %v24123_v38, %v802_v47  ;;  %v809_v5 = vand.u32 4294901760, %v24143_v49  ;;  %v816_v7 = vand.u32 4294901760, %v24145_v51  ;;  %v26679_v8 = vmov 0  }
  0x74   :  { %21493 = vmatprep.subr.bf16.mxu0 %v26685_v0  ;;  %21499 = vmatprep.subr.bf16.mxu1 %v26685_v0  ;;  %v2300_v9 = vsel %vm136_vm2, 1, %v26679_v8  ;;  %vm2309_vm3 = vcmp.ne.f32.partialorder %v24162_v3, -1.0  ;;  %v24178_v10 = vpack.c.bf16 %v703_v37, %v700_v36  ;;  %v24180_v14 = vpack.c.bf16 %v790_v2, %v783_v53  ;;  %v13138_v37 = vld [vmem:[#allocation2 + $0x30] sm:$0xff] }
  0x75   :  { %23635 = vset.pattern.permute.xlu0 %v26679_v8  ;;  %23636 = vset.pattern.permute.xlu1 %v26679_v8  ;;  %v757_v15 = vsub.f32 %v24131_v40, %v24154_v56  ;;  %v797_v17 = vand.u32 4294901760, %v796_v57  ;;  %v804_v25 = vand.u32 4294901760, %v803_v4  ;;  %v810_v26 = vsub.f32 %v24143_v49, %v809_v5 }
  0x76   :  { %18079 = vmatmul.mubr.f32.vlgmr.msra.gmra.mrb[0].mxu1 %v26687_v1  ;;  %2302 = vperm.xlu0 %23635, %v2300_v9   ;;  %v817_v28 = vsub.f32 %v24145_v51, %v816_v7  ;;  %v4466_v32 = vsel %vm2309_vm3, 1, %v26679_v8  ;;  %vm8807_vm4 = vcmp.ne.f32.partialorder %v8806_v23, -1.0  ;;  %v24201_v36 = vpack.c.bf16 %v24072_v12, %v24070_v11  ;;  %v121_v23 = vld [vmem:[#allocation10 + $0x8] sm:$0xff] }
  0x77   :  { %21495 = vmatpush3.bf16.msra.mxu0 %v24032_v60  ;;  %21501 = vmatpush3.bf16.msra.mxu1 %v23937_v16  ;;  %v24197_v33 = vand.u32 4294901760, %v757_v15  ;;  %v24205_v39 = vpack.c.bf16 %v804_v25, %v797_v17  ;;  %v811_v42 = vand.u32 4294901760, %v810_v26  ;;  %v10964_v44 = vsel %vm8807_vm4, 1, %v26679_v8  ;;  %v120_v17 = vld [vmem:[#allocation10] sm:$0xff] }
  0x78   :  { %21496 = vmatprep.subr.bf16.mxu0 %v26685_v0  ;;  %21502 = vmatprep.subr.bf16.mxu1 %v26685_v0  ;;  %v818_v43 = vand.u32 4294901760, %v817_v28  ;;  %vm13139_vm5 = vcmp.ne.f32.partialorder %v13138_v37, -1.0  ;;  %v24217_v57 = vpack.c.bf16 %v24091_v22, %v24086_v18  ;;  %v24228_v4 = vpack.c.bf16 %v24123_v38, %v24110_v31 }
  0x79   :  { %18116 = vmatprep.mubr.msk.f32.mxu1 %vm23798_vm0, %v26687_v1  ;;  %v15296_v2 = vsel %vm13139_vm5, 1, %v26679_v8  ;;  %v24237_v9 = vpack.c.bf16 %v24145_v51, %v24143_v49  ;;  %v24249_v15 = vpack.c.bf16 %v774_v21, %v767_v20  ;;  %v1226_v25 = vand.u32 4294901760, %v120_v17  ;;  %v122_v20 = vld [vmem:[#allocation10 + $0x10] sm:$0xff]  ;;  %v123_v21 = vld [vmem:[#allocation10 + $0x18] sm:$0xff] }
  0x7a   :  { %4468 = vperm.xlu0 %23635, %v4466_v32   ;;  %v24213_v53 = vpack.c.bf16 %v818_v43, %v811_v42  ;;  %v24260_v11 = vpack.c.bf16 %v788_v34, %v781_v29  ;;  %v1229_v12 = vand.u32 4294901760, %v121_v23  ;;  %v1232_v28 = vand.u32 4294901760, %v122_v20  ;;  %v124_v34 = vld [vmem:[#allocation10 + $0x20] sm:$0xff]  ;;  %v125_v32 = vld [vmem:[#allocation10 + $0x28] sm:$0xff] }
  0x7b   :  { %21498 = vmatpush3.bf16.msra.mxu0 %v24041_v61  ;;  %21504 = vmatpush3.bf16.msra.mxu1 %v23943_v19  ;;  %v24266_v26 = vsub.f32 %v120_v17, %v1226_v25  ;;  %v24274_v18 = vpack.c.bf16 %v802_v47, %v795_v41  ;;  %v1235_v29 = vand.u32 4294901760, %v123_v21  ;;  %v1238_v31 = vand.u32 4294901760, %v124_v34 }
  0x7c   :  { %21505 = vmatprep.subr.bf16.mxu1 %v26685_v0  ;;  %21511 = vmatprep.subr.bf16.mxu0 %v26685_v0  ;;  %26794 = vst [vmem:[#allocation20_spill] sm:$0xff] %v24260_v11  ;;  %v24276_v22 = vsub.f32 %v121_v23, %v1229_v12  ;;  %v24282_v42 = vsub.f32 %v122_v20, %v1232_v28  ;;  %v1241_v43 = vand.u32 4294901760, %v125_v32 }
  0x7d   :  { %26795 = vst [vmem:[#allocation21_spill] sm:$0xff] %v24274_v18  ;;  %v26682_v37 = vand.u32 4294901760, %v24266_v26  ;;  %v24290_v38 = vpack.c.bf16 %v816_v7, %v809_v5  ;;  %v24293_v47 = vsub.f32 %v123_v21, %v1235_v29  ;;  %v24299_v17 = vpack.c.bf16 %v1229_v12, %v1226_v25 }
  0x7e   :  { %18098 = vmatmul.mubr.f32.vlgmr.msra.gmra.mrb[2].mxu0 %v26687_v1  ;;  %10966 = vperm.xlu0 %23635, %v10964_v44   ;;  %v26681_v41 = vand.u32 4294901760, %v24276_v22  ;;  %v126_v44 = vld [vmem:[#allocation10 + $0x30] sm:$0xff]  ;;  %v26683_v51 = vand.u32 4294901760, %v24282_v42  ;;  %v24305_v5 = vsub.f32 %v124_v34, %v1238_v31  ;;  %v24307_v7 = vsub.f32 %v125_v32, %v1241_v43 }
  0x7f   :  { %21507 = vmatpush3.bf16.msra.mxu1 %v23955_v27  ;;  %21513 = vmatpush3.bf16.msra.mxu0 %v24053_v62  ;;  %26796 = vst [vmem:[#allocation22_spill] sm:$0xff] %v24290_v38  ;;  %26797 = vst [vmem:[#allocation23_spill] sm:$0xff] %v24299_v17  ;;  %v1312_v49 = vsub.f32 %v24266_v26, %v26682_v37  ;;  %v26684_v25 = vand.u32 4294901760, %v24293_v47  ;;  %v1244_v12 = vand.u32 4294901760, %v126_v44 }
  0x80   :  { %21508 = vmatprep.subr.bf16.mxu1 %v26685_v0  ;;  %21514 = vmatprep.subr.bf16.mxu0 %v26685_v0  ;;  %v1319_v23 = vsub.f32 %v24276_v22, %v26681_v41  ;;  %v24317_v21 = vpack.c.bf16 %v1235_v29, %v1232_v28  ;;  %v1326_v32 = vsub.f32 %v24282_v42, %v26683_v51  ;;  %v26689_v8 = vand.u32 4294901760, %v24305_v5 }
  0x81   :  { %18135 = vmatprep.mubr.msk.f32.mxu0 %vm23798_vm0, %v26687_v1  ;;  %v1313_v34 = vand.u32 4294901760, %v1312_v49  ;;  %v1333_v28 = vsub.f32 %v24293_v47, %v26684_v25  ;;  %v24330_v29 = vsub.f32 %v126_v44, %v1244_v12  ;;  %v24338_v41 = vpack.c.bf16 %v1241_v43, %v1238_v31 }
  0x82   :  { %15298 = vperm.xlu0 %23635, %v15296_v2   ;;  %v127_v2 = vld [vmem:[#allocation10 + $0x38] sm:$0xff]  ;;  %26798 = vst [vmem:[#allocation24_spill] sm:$0xff] %v24317_v21  ;;  %v1320_v37 = vand.u32 4294901760, %v1319_v23  ;;  %v1327_v51 = vand.u32 4294901760, %v1326_v32  ;;  %v1340_v23 = vsub.f32 %v24305_v5, %v26689_v8  ;;  %v26800_v25 = vand.u32 4294901760, %v24307_v7 }
  0x83   :  { %21510 = vmatpush3.bf16.msra.mxu1 %v23991_v48  ;;  %21516 = vmatpush3.bf16.msra.mxu0 %v24064_v6  ;;  %v1247_v20 = vand.u32 4294901760, %v127_v2  ;;  %26799 = vst [vmem:[#allocation25_spill] sm:$0xff] %v24338_v41  ;;  %v26802_v43 = vmov 0.0|0.0  }
  0x84   :  { %21517 = vmatprep.subr.bf16.mxu0 %v26685_v0  ;;  %21523 = vmatprep.subr.bf16.mxu1 %v26685_v0  ;;  %v1347_v44 = vsub.f32 %v24307_v7, %v26800_v25  ;;  %v1341_v32 = vand.u32 4294901760, %v1340_v23  ;;  %v24377_v23 = vpack.c.bf16 %v24276_v22, %v24266_v26 }
  0x85   :  { %v24332_v49 = vsub.f32 %v127_v2, %v1247_v20  ;;  %v24347_v2 = vpack.c.bf16 %v1320_v37, %v1313_v34  ;;  %v24355_v8 = vpack.c.bf16 %v1247_v20, %v1244_v12  ;;  %v26805_v12 = vmov 0.0  }
  0x86   :  { %18117 = vmatmul.mubr.f32.vlgmr.msra.gmra.mrb[2].mxu1 %v26687_v1  ;;  %v1348_v25 = vand.u32 4294901760, %v1347_v44  ;;  %26807 = vst [vmem:[#allocation30_spill] sm:$0xff] %v24377_v23 }
  0x87   :  { %21519 = vmatpush3.bf16.msra.mxu0 %v24080_v13  ;;  %21525 = vmatpush3.bf16.msra.mxu1 %v23937_v16  ;;  %26801 = vst [vmem:[#allocation26_spill] sm:$0xff] %v24347_v2  ;;  %v26690_v31 = vand.u32 4294901760, %v24332_v49  ;;  %26803 = vst [vmem:[#allocation27_spill] sm:$0xff] %v24355_v8 }
  0x88   :  { %21520 = vmatprep.subr.bf16.mxu0 %v26685_v0  ;;  %21526 = vmatprep.subr.bf16.mxu1 %v26685_v0 }
  0x89   :  { %18154 = vmatprep.mubr.msk.f32.mxu1 %vm23798_vm0, %v26687_v1 }
  0x8b   :  { %21522 = vmatpush3.bf16.msra.mxu0 %v24101_v24  ;;  %21528 = vmatpush3.bf16.msra.mxu1 %v23943_v19 }
  0x8c   :  { %21529 = vmatprep.subr.bf16.mxu1 %v26685_v0  ;;  %21535 = vmatprep.subr.bf16.mxu0 %v26685_v0 }
  0x8e   :  { %18136 = vmatmul.mubr.f32.vlgmr.msra.gmra.mrb[4].mxu0 %v26687_v1 }
  0x8f   :  { %21531 = vmatpush3.bf16.msra.mxu1 %v23955_v27  ;;  %21537 = vmatpush3.bf16.msra.mxu0 %v24121_v35 }
  0x90   :  { %21532 = vmatprep.subr.bf16.mxu1 %v26685_v0  ;;  %21538 = vmatprep.subr.bf16.mxu0 %v26685_v0 }
  0x91   :  { %18173 = vmatprep.mubr.msk.f32.mxu0 %vm23798_vm0, %v26687_v1 }
  0x93   :  { %21534 = vmatpush3.bf16.msra.mxu1 %v23991_v48  ;;  %21540 = vmatpush3.bf16.msra.mxu0 %v24140_v45 }
  0x94   :  { %21541 = vmatprep.subr.bf16.mxu0 %v26685_v0  ;;  %21547 = vmatprep.subr.bf16.mxu1 %v26685_v0 }
  0x96   :  { %18155 = vmatmul.mubr.f32.vlgmr.msra.gmra.mrb[4].mxu1 %v26687_v1 }
  0x97   :  { %21543 = vmatpush3.bf16.msra.mxu0 %v24149_v52  ;;  %21549 = vmatpush3.bf16.msra.mxu1 %v24159_v63 }
  0x98   :  { %21544 = vmatprep.subr.bf16.mxu0 %v26685_v0  ;;  %21550 = vmatprep.subr.bf16.mxu1 %v26685_v0 }
  0x99   :  { %18192 = vmatprep.mubr.msk.f32.mxu1 %vm23798_vm0, %v26687_v1 }
  0x9b   :  { %21546 = vmatpush3.bf16.msra.mxu0 %v24178_v10  ;;  %21552 = vmatpush3.bf16.msra.mxu1 %v24180_v14 }
  0x9c   :  { %21553 = vmatprep.subr.bf16.mxu1 %v26685_v0  ;;  %21559 = vmatprep.subr.bf16.mxu0 %v26685_v0 }
  0x9e   :  { %18174 = vmatmul.mubr.f32.vlgmr.msra.gmra.mrb[6].mxu0 %v24197_v33 }
  0x9f   :  { %21555 = vmatpush3.bf16.msra.mxu1 %v24205_v39  ;;  %21561 = vmatpush3.bf16.msra.mxu0 %v24201_v36 }
  0xa0   :  { %21556 = vmatprep.subr.bf16.mxu1 %v26685_v0  ;;  %21562 = vmatprep.subr.bf16.mxu0 %v26685_v0 }
  0xa1   :  { %18211 = vmatprep.mubr.msk.f32.mxu0 %vm23798_vm0, %v26687_v1 }
  0xa3   :  { %21558 = vmatpush3.bf16.msra.mxu1 %v24213_v53  ;;  %21564 = vmatpush3.bf16.msra.mxu0 %v24217_v57 }
  0xa4   :  { %21565 = vmatprep.subr.bf16.mxu0 %v26685_v0  ;;  %21571 = vmatprep.subr.bf16.mxu1 %v26685_v0 }
  0xa6   :  { %18193 = vmatmul.mubr.f32.vlgmr.msra.gmra.mrb[6].mxu1 %v24108_v30 }
  0xa7   :  { %21567 = vmatpush3.bf16.msra.mxu0 %v24228_v4  ;;  %21573 = vmatpush3.bf16.msra.mxu1 %v24121_v35 }
  0xa8   :  { %21568 = vmatprep.subr.bf16.mxu0 %v26685_v0  ;;  %21574 = vmatprep.subr.bf16.mxu1 %v26685_v0 }
  0xa9   :  { %18230 = vmatprep.mubr.msk.f32.mxu1 %vm23798_vm0, %v26687_v1 }
  0xab   :  { %21570 = vmatpush3.bf16.msra.mxu0 %v24237_v9  ;;  %21576 = vmatpush3.bf16.msra.mxu1 %v24140_v45 }
  0xac   :  { %21577 = vmatprep.subr.bf16.mxu1 %v26685_v0  ;;  %21583 = vmatprep.subr.bf16.mxu0 %v26685_v0 }
  0xae   :  { %18212 = vmatmul.mubr.f32.vlgmr.msra.gmra.mrb[8].mxu0 %v24131_v40 }
  0xaf   :  { %21579 = vmatpush3.bf16.msra.mxu1 %v24149_v52  ;;  %21585 = vmatpush3.bf16.msra.mxu0 %v24249_v15 }
  0xb0   :  { %21580 = vmatprep.subr.bf16.mxu1 %v26685_v0  ;;  %21586 = vmatprep.subr.bf16.mxu0 %v26685_v0 }
  0xb1   :  { %18249 = vmatprep.mubr.msk.f32.mxu0 %vm23798_vm0, %v26687_v1 }
  0xb3   :  { %21582 = vmatpush3.bf16.msra.mxu1 %v24178_v10  ;;  %21588 = vmatpush3.bf16.msra.mxu0 %v24260_v11 }
  0xb4   :  { %21589 = vmatprep.subr.bf16.mxu0 %v26685_v0  ;;  %21595 = vmatprep.subr.bf16.mxu1 %v26685_v0 }
  0xb6   :  { %18231 = vmatmul.mubr.f32.vlgmr.msra.gmra.mrb[8].mxu1 %v24154_v56 }
  0xb7   :  { %21591 = vmatpush3.bf16.msra.mxu0 %v24274_v18  ;;  %21597 = vmatpush3.bf16.msra.mxu1 %v24121_v35 }
  0xb8   :  { %21592 = vmatprep.subr.bf16.mxu0 %v26685_v0  ;;  %21598 = vmatprep.subr.bf16.mxu1 %v26685_v0 }
  0xb9   :  { %18268 = vmatprep.mubr.msk.f32.mxu1 %vm23798_vm0, %v26687_v1 }
  0xbb   :  { %21594 = vmatpush3.bf16.msra.mxu0 %v24290_v38  ;;  %21600 = vmatpush3.bf16.msra.mxu1 %v24140_v45 }
  0xbc   :  { %21601 = vmatprep.subr.bf16.mxu1 %v26685_v0  ;;  %21607 = vmatprep.subr.bf16.mxu0 %v26685_v0 }
  0xbe   :  { %18250 = vmatmul.mubr.f32.vlgmr.msra.gmra.mrb[10].mxu0 %v24108_v30 }
  0xbf   :  { %21603 = vmatpush3.bf16.msra.mxu1 %v24149_v52  ;;  %21609 = vmatpush3.bf16.msra.mxu0 %v24299_v17 }
  0xc0   :  { %21604 = vmatprep.subr.bf16.mxu1 %v26685_v0  ;;  %21610 = vmatprep.subr.bf16.mxu0 %v26685_v0  ;;  %v1334_v0 = vand.u32 4294901760, %v1333_v28  ;;  %v1361_v28 = vsub.f32 %v24332_v49, %v26690_v31  ;;  %v112_v31 = vld [vmem:[#allocation8] sm:$0xff] }
  0xc1   :  { %18287 = vmatprep.mubr.msk.f32.mxu0 %vm23798_vm0, %v26687_v1  ;;  %v26691_v1 = vand.u32 4294901760, %v24330_v29 }
  0xc2   :  { %v24358_v37 = vpack.c.bf16 %v1334_v0, %v1327_v51  ;;  %v24372_v0 = vpack.c.bf16 %v1348_v25, %v1341_v32  ;;  %v1362_v20 = vand.u32 4294901760, %v1361_v28  ;;  %v24388_v32 = vpack.c.bf16 %v24293_v47, %v24282_v42 }
  0xc3   :  { %21606 = vmatpush3.bf16.msra.mxu1 %v24178_v10  ;;  %21612 = vmatpush3.bf16.msra.mxu0 %v24317_v21  ;;  %v1354_v34 = vsub.f32 %v24330_v29, %v26691_v1  ;;  %v24398_v25 = vpack.c.bf16 %v24307_v7, %v24305_v5  ;;  %v26812_v28 = vand.u32 4294901760, %v24266_v26  ;;  %v113_v1 = vld [vmem:[#allocation8 + $0x8] sm:$0xff]  ;;  %v26816_v26 = vand.u32 4294901760, %v24293_v47 }
  0xc4   :  { %21619 = vmatprep.subr.bf16.mxu1 %v26802_v43  ;;  %21613 = vmatprep.subr.bf16.mxu0 %v26802_v43  ;;  %26804 = vst [vmem:[#allocation28_spill] sm:$0xff] %v24358_v37  ;;  %26806 = vst [vmem:[#allocation29_spill] sm:$0xff] %v24372_v0  ;;  %v26819_v47 = vand.u32 4294901760, %v24307_v7  ;;  %v26822_v7 = vand.u32 4294901760, %v24332_v49 }
  0xc5   :  { %v1355_v51 = vand.u32 4294901760, %v1354_v34  ;;  %26809 = vst [vmem:[#allocation32_spill] sm:$0xff] %v24388_v32  ;;  %26810 = vst [vmem:[#allocation33_spill] sm:$0xff] %v24398_v25  ;;  %v24407_v34 = vpack.c.bf16 %v24332_v49, %v24330_v29 }
  0xc6   :  { %18269 = vmatmul.mubr.f32.vlgmr.msra.gmra.mrb[10].mxu1 %v24108_v30 }
  0xc7   :  { %21621 = vmatpush3.bf16.msra.mxu1 %v24347_v2  ;;  %21615 = vmatpush3.bf16.msra.mxu0 %v24338_v41  ;;  %v24383_v44 = vpack.c.bf16 %v1362_v20, %v1355_v51  ;;  %26811 = vst [vmem:[#allocation34_spill] sm:$0xff] %v24407_v34  ;;  %v26813_v51 = vand.u32 4294901760, %v24276_v22 }
  0xc8   :  { %21622 = vmatprep.subr.bf16.mxu1 %v26802_v43  ;;  %21616 = vmatprep.subr.bf16.mxu0 %v26802_v43 }
  0xc9   :  { %18306 = vmatprep.mubr.msk.f32.mxu1 %vm23798_vm0, %v26805_v12  ;;  %26808 = vst [vmem:[#allocation31_spill] sm:$0xff] %v24383_v44  ;;  %v24419_v20 = vpack.c.bf16 %v26813_v51, %v26812_v28  ;;  %v1766_v28 = vand.u32 4294901760, %v113_v1  ;;  %v114_v51 = vld [vmem:[#allocation8 + $0x10] sm:$0xff] }
  0xcb   :  { %21624 = vmatpush3.bf16.msra.mxu1 %v24358_v37  ;;  %21618 = vmatpush3.bf16.msra.mxu0 %v24355_v8  ;;  %26814 = vst [vmem:[#allocation35_spill] sm:$0xff] %v24419_v20  ;;  %v117_v37 = vld [vmem:[#allocation8 + $0x28] sm:$0xff] }
  0xcc   :  { %21625 = vmatprep.subr.bf16.mxu1 %v26802_v43  ;;  %21631 = vmatprep.subr.bf16.mxu0 %v26802_v43  ;;  %v1778_v38 = vand.u32 4294901760, %v117_v37 }
  0xce   :  { %18288 = vmatmul.mubr.f32.vlgmr.msra.gmra.mrb[12].mxu0 %v26805_v12 }
  0xcf   :  { %21627 = vmatpush3.bf16.msra.mxu1 %v24372_v0  ;;  %21633 = vmatpush3.bf16.msra.mxu0 %v24377_v23  ;;  %v116_v0 = vld [vmem:[#allocation8 + $0x20] sm:$0xff] }
  0xd0   :  { %21628 = vmatprep.subr.bf16.mxu1 %v26802_v43  ;;  %21634 = vmatprep.subr.bf16.mxu0 %v26802_v43 }
  0xd1   :  { %18325 = vmatprep.mubr.msk.f32.mxu0 %vm23798_vm0, %v26805_v12 }
  0xd3   :  { %21630 = vmatpush3.bf16.msra.mxu1 %v24383_v44  ;;  %21636 = vmatpush3.bf16.msra.mxu0 %v24388_v32  ;;  %v115_v32 = vld [vmem:[#allocation8 + $0x18] sm:$0xff]  ;;  %v1769_v44 = vand.u32 4294901760, %v114_v51 }
  0xd4   :  { %21643 = vmatprep.subr.bf16.mxu1 %v26802_v43  ;;  %21637 = vmatprep.subr.bf16.mxu0 %v26802_v43 }
  0xd6   :  { %18307 = vmatmul.mubr.f32.vlgmr.msra.gmra.mrb[12].mxu1 %v26805_v12 }
  0xd7   :  { %21645 = vmatpush3.bf16.msra.mxu1 %v24299_v17  ;;  %21639 = vmatpush3.bf16.msra.mxu0 %v24398_v25  ;;  %v1763_v25 = vand.u32 4294901760, %v112_v31 }
  0xd8   :  { %21646 = vmatprep.subr.bf16.mxu1 %v26802_v43  ;;  %21640 = vmatprep.subr.bf16.mxu0 %v26802_v43 }
  0xd9   :  { %18344 = vmatprep.mubr.msk.f32.mxu1 %vm23798_vm0, %v26805_v12  ;;  %v24436_v23 = vsub.f32 %v112_v31, %v1763_v25  ;;  %v119_v31 = vld [vmem:[#allocation8 + $0x38] sm:$0xff]  ;;  %v24467_v18 = vpack.c.bf16 %v1766_v28, %v1763_v25 }
  0xdb   :  { %21648 = vmatpush3.bf16.msra.mxu1 %v24317_v21  ;;  %21642 = vmatpush3.bf16.msra.mxu0 %v24407_v34  ;;  %v26815_v34 = vand.u32 4294901760, %v24282_v42  ;;  %v26818_v42 = vand.u32 4294901760, %v24305_v5  ;;  %v1775_v5 = vand.u32 4294901760, %v116_v0  ;;  %26824 = vst [vmem:[#allocation39_spill] sm:$0xff] %v24467_v18 }
  0xdc   :  { %21649 = vmatprep.subr.bf16.mxu1 %v26802_v43  ;;  %21655 = vmatprep.subr.bf16.mxu0 %v26802_v43 }
  0xdd   :  { %v24430_v22 = vpack.c.bf16 %v26816_v26, %v26815_v34  ;;  %v24444_v34 = vpack.c.bf16 %v26819_v47, %v26818_v42  ;;  %v24446_v26 = vsub.f32 %v113_v1, %v1766_v28  ;;  %v26821_v1 = vand.u32 4294901760, %v24330_v29 }
  0xde   :  { %18326 = vmatmul.mubr.f32.vlgmr.msra.gmra.mrb[14].mxu0 %v26805_v12  ;;  %v26825_v29 = vand.u32 4294901760, %v24436_v23 }
  0xdf   :  { %21651 = vmatpush3.bf16.msra.mxu1 %v24338_v41  ;;  %21657 = vmatpush3.bf16.msra.mxu0 %v24419_v20  ;;  %26817 = vst [vmem:[#allocation36_spill] sm:$0xff] %v24430_v22  ;;  %26820 = vst [vmem:[#allocation37_spill] sm:$0xff] %v24444_v34  ;;  %v1772_v20 = vand.u32 4294901760, %v115_v32  ;;  %v24460_v42 = vpack.c.bf16 %v26822_v7, %v26821_v1  ;;  %v26722_v47 = vand.u32 4294901760, %v24446_v26 }
  0xe0   :  { %21652 = vmatprep.subr.bf16.mxu1 %v26802_v43  ;;  %21658 = vmatprep.subr.bf16.mxu0 %v26802_v43  ;;  %v1849_v49 = vsub.f32 %v24436_v23, %v26825_v29  ;;  %v24475_v7 = vsub.f32 %v116_v0, %v1775_v5 }
  0xe1   :  { %18363 = vmatprep.mubr.msk.f32.mxu0 %vm23798_vm0, %v26805_v12  ;;  %26823 = vst [vmem:[#allocation38_spill] sm:$0xff] %v24460_v42  ;;  %v24463_v2 = vsub.f32 %v115_v32, %v1772_v20  ;;  %v24477_v32 = vsub.f32 %v117_v37, %v1778_v38  ;;  %v1856_v25 = vsub.f32 %v24446_v26, %v26722_v47 }
  0xe2   :  { %v24487_v0 = vpack.c.bf16 %v1772_v20, %v1769_v44  ;;  %v1850_v37 = vand.u32 4294901760, %v1849_v49  ;;  %v24508_v47 = vpack.c.bf16 %v1778_v38, %v1775_v5 }
  0xe3   :  { %21654 = vmatpush3.bf16.msra.mxu1 %v24355_v8  ;;  %21660 = vmatpush3.bf16.msra.mxu0 %v24430_v22  ;;  %v24452_v22 = vsub.f32 %v114_v51, %v1769_v44  ;;  %v118_v51 = vld [vmem:[#allocation8 + $0x30] sm:$0xff]  ;;  %v1857_v28 = vand.u32 4294901760, %v1856_v25 }
  0xe4   :  { %21667 = vmatprep.subr.bf16.mxu1 %v26802_v43  ;;  %21661 = vmatprep.subr.bf16.mxu0 %v26802_v43  ;;  %26826 = vst [vmem:[#allocation40_spill] sm:$0xff] %v24487_v0  ;;  %26828 = vst [vmem:[#allocation41_spill] sm:$0xff] %v24508_v47 }
  0xe5   :  { %v26725_v1 = vand.u32 4294901760, %v24452_v22 }
  0xe6   :  { %18345 = vmatmul.mubr.f32.vlgmr.msra.gmra.mrb[14].mxu1 %v26805_v12 }
  0xe7   :  { %21669 = vmatpush3.bf16.msra.mxu1 %v24299_v17  ;;  %21663 = vmatpush3.bf16.msra.mxu0 %v24444_v34  ;;  %v1781_v34 = vand.u32 4294901760, %v118_v51  ;;  %v1784_v17 = vand.u32 4294901760, %v119_v31  ;;  %v1863_v29 = vsub.f32 %v24452_v22, %v26725_v1 }
  0xe8   :  { %21670 = vmatprep.subr.bf16.mxu1 %v26802_v43  ;;  %21664 = vmatprep.subr.bf16.mxu0 %v26802_v43 }
  0xe9   :  { %18382 = vmatprep.mubr.msk.f32.mxu1 %vm23798_vm0, %v26805_v12  ;;  %v24500_v20 = vsub.f32 %v118_v51, %v1781_v34  ;;  %v24502_v49 = vsub.f32 %v119_v31, %v1784_v17  ;;  %v1864_v1 = vand.u32 4294901760, %v1863_v29  ;;  %v24517_v31 = vpack.c.bf16 %v1857_v28, %v1850_v37 }
  0xea   :  { %v24525_v29 = vpack.c.bf16 %v1784_v17, %v1781_v34 }
  0xeb   :  { %21672 = vmatpush3.bf16.msra.mxu1 %v24317_v21  ;;  %21666 = vmatpush3.bf16.msra.mxu0 %v24460_v42  ;;  %v1876_v42 = vand.u32 4294901760, %v24475_v7  ;;  %v26827_v21 = vand.u32 4294901760, %v24463_v2  ;;  %26830 = vst [vmem:[#allocation42_spill] sm:$0xff] %v24517_v31  ;;  %v1890_v11 = vand.u32 4294901760, %v24500_v20  ;;  %v26730_v38 = vand.u32 4294901760, %v24502_v49 }
  0xec   :  { %21673 = vmatprep.subr.bf16.mxu1 %v26802_v43  ;;  %21679 = vmatprep.subr.bf16.mxu0 %v26802_v43  ;;  %26831 = vst [vmem:[#allocation43_spill] sm:$0xff] %v24525_v29 }
  0xed   :  { %v1870_v44 = vsub.f32 %v24463_v2, %v26827_v21  ;;  %v1877_v25 = vsub.f32 %v24475_v7, %v1876_v42  ;;  %v26829_v21 = vand.u32 4294901760, %v24477_v32 }
  0xee   :  { %18364 = vmatmul.mubr.f32.vlgmr.msra.gmra.mrb[16].mxu0 %v26805_v12 }
  0xef   :  { %21675 = vmatpush3.bf16.msra.mxu1 %v24338_v41  ;;  %21681 = vmatpush3.bf16.msra.mxu0 %v24467_v18  ;;  %v1884_v51 = vsub.f32 %v24477_v32, %v26829_v21  ;;  %v1871_v41 = vand.u32 4294901760, %v1870_v44  ;;  %v1878_v5 = vand.u32 4294901760, %v1877_v25  ;;  %v1891_v44 = vsub.f32 %v24500_v20, %v1890_v11 }
  0xf0   :  { %21676 = vmatprep.subr.bf16.mxu1 %v26802_v43  ;;  %21682 = vmatprep.subr.bf16.mxu0 %v26802_v43  ;;  %v1898_v21 = vsub.f32 %v24502_v49, %v26730_v38 }
  0xf1   :  { %18401 = vmatprep.mubr.msk.f32.mxu0 %vm23798_vm0, %v26805_v12  ;;  %v24528_v28 = vpack.c.bf16 %v1871_v41, %v1864_v1  ;;  %v1885_v37 = vand.u32 4294901760, %v1884_v51  ;;  %v1892_v17 = vand.u32 4294901760, %v1891_v44  ;;  %v24547_v1 = vpack.c.bf16 %v24446_v26, %v24436_v23 }
  0xf2   :  { %v1899_v34 = vand.u32 4294901760, %v1898_v21  ;;  %v24558_v51 = vpack.c.bf16 %v24463_v2, %v24452_v22  ;;  %v26840_v44 = vand.u32 4294901760, %v24446_v26 }
  0xf3   :  { %21678 = vmatpush3.bf16.msra.mxu1 %v24355_v8  ;;  %21684 = vmatpush3.bf16.msra.mxu0 %v24487_v0  ;;  %26832 = vst [vmem:[#allocation44_spill] sm:$0xff] %v24528_v28  ;;  %v24542_v41 = vpack.c.bf16 %v1885_v37, %v1878_v5  ;;  %26834 = vst [vmem:[#allocation46_spill] sm:$0xff] %v24547_v1  ;;  %v24577_v5 = vpack.c.bf16 %v24502_v49, %v24500_v20  ;;  %v26839_v37 = vand.u32 4294901760, %v24436_v23 }
  0xf4   :  { %21691 = vmatprep.subr.bf16.mxu1 %v26802_v43  ;;  %21685 = vmatprep.subr.bf16.mxu0 %v26802_v43  ;;  %v24553_v25 = vpack.c.bf16 %v1899_v34, %v1892_v17  ;;  %26836 = vst [vmem:[#allocation48_spill] sm:$0xff] %v24558_v51  ;;  %v26842_v17 = vand.u32 4294901760, %v24452_v22  ;;  %v26843_v34 = vand.u32 4294901760, %v24463_v2  ;;  %v26847_v2 = vand.u32 4294901760, %v24502_v49 }
  0xf5   :  { %26833 = vst [vmem:[#allocation45_spill] sm:$0xff] %v24542_v41  ;;  %26838 = vst [vmem:[#allocation50_spill] sm:$0xff] %v24577_v5  ;;  %v24589_v21 = vpack.c.bf16 %v26840_v44, %v26839_v37 }
  0xf6   :  { %18383 = vmatmul.mubr.f32.vlgmr.msra.gmra.mrb[16].mxu1 %v26805_v12  ;;  %26835 = vst [vmem:[#allocation47_spill] sm:$0xff] %v24553_v25  ;;  %v24600_v38 = vpack.c.bf16 %v26843_v34, %v26842_v17  ;;  %v24623_v22 = vpack.c.bf16 %v26847_v2, %v1890_v11 }
  0xf7   :  { %21693 = vmatpush3.bf16.msra.mxu1 %v24517_v31  ;;  %21687 = vmatpush3.bf16.msra.mxu0 %v24508_v47  ;;  %26841 = vst [vmem:[#allocation51_spill] sm:$0xff] %v24589_v21 }
  0xf8   :  { %21694 = vmatprep.subr.bf16.mxu1 %v26802_v43  ;;  %21688 = vmatprep.subr.bf16.mxu0 %v26802_v43  ;;  %26844 = vst [vmem:[#allocation52_spill] sm:$0xff] %v24600_v38  ;;  %26848 = vst [vmem:[#allocation54_spill] sm:$0xff] %v24623_v22 }
  0xf9   :  { %18420 = vmatprep.mubr.msk.f32.mxu1 %vm23798_vm0, %v26805_v12 }
  0xfb   :  { %21696 = vmatpush3.bf16.msra.mxu1 %v24528_v28  ;;  %21690 = vmatpush3.bf16.msra.mxu0 %v24525_v29 }
  0xfc   :  { %21697 = vmatprep.subr.bf16.mxu1 %v26802_v43  ;;  %21703 = vmatprep.subr.bf16.mxu0 %v26802_v43 }
  0xfe   :  { %18402 = vmatmul.mubr.f32.vlgmr.msra.gmra.mrb[18].mxu0 %v24197_v33  ;;  %v24568_v33 = vpack.c.bf16 %v24477_v32, %v24475_v7 }
  0xff   :  { %21699 = vmatpush3.bf16.msra.mxu1 %v24542_v41  ;;  %21705 = vmatpush3.bf16.msra.mxu0 %v24547_v1 }
 0x100   :  { %21700 = vmatprep.subr.bf16.mxu1 %v26802_v43  ;;  %21706 = vmatprep.subr.bf16.mxu0 %v26802_v43  ;;  %26837 = vst [vmem:[#allocation49_spill] sm:$0xff] %v24568_v33 }
 0x101   :  { %18439 = vmatprep.mubr.msk.f32.mxu0 %vm23798_vm0, %v26805_v12 }
 0x103   :  { %21702 = vmatpush3.bf16.msra.mxu1 %v24553_v25  ;;  %21708 = vmatpush3.bf16.msra.mxu0 %v24558_v51 }
 0x104   :  { %21715 = vmatprep.subr.bf16.mxu1 %v26802_v43  ;;  %21709 = vmatprep.subr.bf16.mxu0 %v26802_v43 }
 0x106   :  { %18421 = vmatmul.mubr.f32.vlgmr.msra.gmra.mrb[18].mxu1 %v24108_v30 }
 0x107   :  { %21717 = vmatpush3.bf16.msra.mxu1 %v24467_v18  ;;  %21711 = vmatpush3.bf16.msra.mxu0 %v24568_v33 }
 0x108   :  { %21718 = vmatprep.subr.bf16.mxu1 %v26802_v43  ;;  %21712 = vmatprep.subr.bf16.mxu0 %v26802_v43 }
 0x109   :  { %18458 = vmatprep.mubr.msk.f32.mxu1 %vm23798_vm0, %v26805_v12 }
 0x10b   :  { %21720 = vmatpush3.bf16.msra.mxu1 %v24487_v0  ;;  %21714 = vmatpush3.bf16.msra.mxu0 %v24577_v5 }
 0x10c   :  { %21721 = vmatprep.subr.bf16.mxu1 %v26802_v43  ;;  %21727 = vmatprep.subr.bf16.mxu0 %v26802_v43 }
 0x10e   :  { %18440 = vmatmul.mubr.f32.vlgmr.msra.gmra.mrb[20].mxu0 %v24131_v40  ;;  %v26845_v40 = vand.u32 4294901760, %v24477_v32 }
 0x10f   :  { %21723 = vmatpush3.bf16.msra.mxu1 %v24508_v47  ;;  %21729 = vmatpush3.bf16.msra.mxu0 %v24589_v21 }
 0x110   :  { %21724 = vmatprep.subr.bf16.mxu1 %v26802_v43  ;;  %21730 = vmatprep.subr.bf16.mxu0 %v26802_v43  ;;  %v24612_v23 = vpack.c.bf16 %v26845_v40, %v1876_v42 }
 0x111   :  { %18477 = vmatprep.mubr.msk.f32.mxu0 %vm23798_vm0, %v26805_v12 }
 0x112   :  { %26846 = vst [vmem:[#allocation53_spill] sm:$0xff] %v24612_v23 }
 0x113   :  { %21726 = vmatpush3.bf16.msra.mxu1 %v24525_v29  ;;  %21732 = vmatpush3.bf16.msra.mxu0 %v24600_v38 }
 0x114   :  { %21739 = vmatprep.subr.bf16.mxu1 %v26802_v43  ;;  %21733 = vmatprep.subr.bf16.mxu0 %v26802_v43 }
 0x116   :  { %18459 = vmatmul.mubr.f32.vlgmr.msra.gmra.mrb[20].mxu1 %v24154_v56 }
 0x117   :  { %21741 = vmatpush3.bf16.msra.mxu1 %v24467_v18  ;;  %21735 = vmatpush3.bf16.msra.mxu0 %v24612_v23 }
 0x118   :  { %21742 = vmatprep.subr.bf16.mxu1 %v26802_v43  ;;  %21736 = vmatprep.subr.bf16.mxu0 %v26802_v43 }
 0x119   :  { %18496 = vmatprep.mubr.msk.f32.mxu1 %vm23798_vm0, %v26805_v12 }
 0x11b   :  { %21744 = vmatpush3.bf16.msra.mxu1 %v24487_v0  ;;  %21738 = vmatpush3.bf16.msra.mxu0 %v24623_v22 }
 0x11c   :  { %21745 = vmatprep.subr.bf16.mxu1 %v26802_v43  ;;  %21751 = vmatprep.subr.bf16.mxu0 %v26802_v43 }
 0x11e   :  { %18478 = vmatmul.mubr.f32.vlgmr.msra.gmra.mrb[22].mxu0 %v24108_v30 }
 0x11f   :  { %21747 = vmatpush3.bf16.msra.mxu1 %v24508_v47  ;;  %21753 = vmatpush3.bf16.msra.mxu0 %v23937_v16 }
 0x120   :  { %21748 = vmatprep.subr.bf16.mxu1 %v26802_v43  ;;  %21754 = vmatprep.subr.bf16.mxu0 %v26802_v43 }
 0x121   :  { %18515 = vmatprep.mubr.msk.f32.mxu0 %vm23798_vm0, %v26805_v12 }
 0x123   :  { %21750 = vmatpush3.bf16.msra.mxu1 %v24525_v29  ;;  %21756 = vmatpush3.bf16.msra.mxu0 %v23943_v19 }
 0x124   :  { %21763 = vmatprep.subr.bf16.mxu1 %v26802_v43  ;;  %21757 = vmatprep.subr.bf16.mxu0 %v26802_v43 }
 0x126   :  { %18497 = vmatmul.mubr.f32.vlgmr.msra.gmra.mrb[22].mxu1 %v24108_v30 }
 0x127   :  { %21765 = vmatpush3.bf16.msra.mxu1 %v23989_v46  ;;  %18534 = vmatprep.mubr.msk.f32.mxu1 %vm23798_vm0, %v26805_v12 }
 0x128   :  { %21766 = vmatprep.subr.bf16.mxu1 %v26802_v43  ;;  %21759 = vmatpush3.bf16.msra.mxu0 %v23955_v27 }
 0x129   :  { %21760 = vmatprep.subr.bf16.mxu0 %v26802_v43 }
 0x12b   :  { %21768 = vmatpush3.bf16.msra.mxu1 %v23995_v50 }
 0x12c   :  { %21769 = vmatprep.subr.bf16.mxu1 %v26802_v43  ;;  %21762 = vmatpush3.bf16.msra.mxu0 %v23991_v48 }
 0x12d   :  { %21775 = vmatprep.subr.bf16.mxu0 %v26802_v43 }
 0x12f   :  { %21771 = vmatpush3.bf16.msra.mxu1 %v24007_v54 }
 0x130   :  { %21772 = vmatprep.subr.bf16.mxu1 %v26802_v43 }
 0x133   :  { %21774 = vmatpush3.bf16.msra.mxu1 %v24018_v58 }
 0x134   :  { %21787 = vmatprep.subr.bf16.mxu1 %v26802_v43 }
 0x141   :  { %v220_v30 = vpop.f32.mrb[0].mxu0 }
 0x142   :  { %v18061_v56 = vpop.f32.mrb[1].mxu0 }
 0x149   :  { %v331_v11 = vpop.f32.mrb[0].mxu1 }
 0x14a   :  { %v332_v26 = vadd.f32 %v331_v11, %v220_v30  ;;  %v18080_v42 = vpop.f32.mrb[1].mxu1 }
 0x151   :  { %v419_v7 = vpop.f32.mrb[2].mxu0 }
 0x152   :  { %v420_v32 = vadd.f32 %v419_v7, %v332_v26  ;;  %v18099_v20 = vpop.f32.mrb[3].mxu0 }
 0x159   :  { %v500_v49 = vpop.f32.mrb[2].mxu1 }
 0x15a   :  { %v501_v37 = vadd.f32 %v500_v49, %v420_v32  ;;  %v18118_v44 = vpop.f32.mrb[3].mxu1 }
 0x161   :  { %v595_v17 = vpop.f32.mrb[4].mxu0 }
 0x162   :  { %v596_v34 = vadd.f32 %v595_v17, %v501_v37  ;;  %v18137_v40 = vpop.f32.mrb[5].mxu0  ;;  %v24662_v37 = vld [vmem:[%s26674_s3] ss:$0 sm:$0xff] }
 0x169   :  { %v674_v2 = vpop.f32.mrb[4].mxu1 }
 0x16a   :  { %v675_v54 = vadd.f32 %v674_v2, %v596_v34  ;;  %v18156_v50 = vpop.f32.mrb[5].mxu1 }
 0x171   :  { %v760_v58 = vpop.f32.mrb[6].mxu0 }
 0x172   :  { %v761_v22 = vadd.f32 %v760_v58, %v675_v54  ;;  %v18175_v46 = vpop.f32.mrb[7].mxu0  ;;  %v24664_v54 = vpop.permute.xlu0 %2302 }
 0x173   :  { %26849 = vst [vmem:[#allocation55_spill] sm:$0xff] %v24664_v54  ;;  %vm2304_vm6 = vcmp.eq.s32.totalorder %v24664_v54, 1  ;;  %v26858_v54 = vld [vmem:[#allocation31_spill] sm:$0xff] }
 0x179   :  { %v871_v23 = vpop.f32.mrb[6].mxu1 }
 0x17a   :  { %v872_v56 = vadd.f32 %v871_v23, %v761_v22  ;;  %v18194_v38 = vpop.f32.mrb[7].mxu1 }
 0x181   :  { %v959_v30 = vpop.f32.mrb[8].mxu0 }
 0x182   :  { %v960_v11 = vadd.f32 %v959_v30, %v872_v56  ;;  %v18213_v42 = vpop.f32.mrb[9].mxu0 }
 0x189   :  { %v1040_v26 = vpop.f32.mrb[8].mxu1 }
 0x18a   :  { %v1041_v7 = vadd.f32 %v1040_v26, %v960_v11  ;;  %v18232_v20 = vpop.f32.mrb[9].mxu1 }
 0x191   :  { %v1135_v32 = vpop.f32.mrb[10].mxu0 }
 0x192   :  { %v1136_v49 = vadd.f32 %v1135_v32, %v1041_v7  ;;  %v18251_v44 = vpop.f32.mrb[11].mxu0 }
 0x199   :  { %v1214_v50 = vpop.f32.mrb[10].mxu1 }
 0x19a   :  { %v1215_v46 = vadd.f32 %v1214_v50, %v1136_v49  ;;  %v18270_v58 = vpop.f32.mrb[11].mxu1 }
 0x19c   :  { %v1224_v38 = vadd.f32 %v24662_v37, %v1215_v46 }
 0x19e   :  { %v24670_v23 = vsel %vm2304_vm6, %v1224_v38, 0.0 }
 0x19f   :  { %v2311_v22 = vsel %vm137_vm1, %v24670_v23, 0 }
 0x1a0   :  { %v24674_v17 = vand.u32 4294901760, %v2311_v22 }
 0x1a1   :  { %v1304_v34 = vpop.f32.mrb[12].mxu0 }
 0x1a2   :  { %v24677_v40 = vsub.f32 %v2311_v22, %v24674_v17  ;;  %18535 = vmatmul.mubr.f32.vlgmr.msra.gmra.mrb[24].mxu1 %v24674_v17  ;;  %v18289_v2 = vpop.f32.mrb[13].mxu0 }
 0x1a3   :  { %21789 = vmatpush3.bf16.msra.mxu1 %v23937_v16  ;;  %18572 = vmatprep.mubr.msk.f32.mxu1 %vm23798_vm0, %v26805_v12 }
 0x1a4   :  { %21790 = vmatprep.subr.bf16.mxu1 %v26802_v43  ;;  %v24685_v56 = vand.u32 4294901760, %v24677_v40 }
 0x1a6   :  { %v2389_v30 = vsub.f32 %v24677_v40, %v24685_v56 }
 0x1a7   :  { %21792 = vmatpush3.bf16.msra.mxu1 %v23943_v19 }
 0x1a8   :  { %21793 = vmatprep.subr.bf16.mxu1 %v26802_v43  ;;  %v24691_v11 = vand.u32 4294901760, %v2389_v30 }
 0x1a9   :  { %v1415_v42 = vpop.f32.mrb[12].mxu1 }
 0x1aa   :  { %18516 = vmatmul.mubr.f32.vlgmr.msra.gmra.mrb[24].mxu0 %v24691_v11  ;;  %v1416_v26 = vadd.f32 %v1415_v42, %v1304_v34  ;;  %v18308_v7 = vpop.f32.mrb[13].mxu1  ;;  %v2851_v34 = vsel %vm137_vm1, %v24162_v3, 0 }
 0x1ab   :  { %21777 = vmatpush3.bf16.msra.mxu0 %v24011_v55  ;;  %21795 = vmatpush3.bf16.msra.mxu1 %v23955_v27  ;;  %v24735_v2 = vand.u32 4294901760, %v2851_v34 }
 0x1ac   :  { %21778 = vmatprep.subr.bf16.mxu0 %v26802_v43  ;;  %21796 = vmatprep.subr.bf16.mxu1 %v26802_v43 }
 0x1ad   :  { %18553 = vmatprep.mubr.msk.f32.mxu0 %vm23798_vm0, %v26805_v12  ;;  %v24742_v30 = vsub.f32 %v2851_v34, %v24735_v2 }
 0x1af   :  { %21780 = vmatpush3.bf16.msra.mxu0 %v24022_v59  ;;  %21798 = vmatpush3.bf16.msra.mxu1 %v23991_v48  ;;  %v24752_v7 = vand.u32 4294901760, %v24742_v30 }
 0x1b0   :  { %21781 = vmatprep.subr.bf16.mxu0 %v26802_v43  ;;  %21811 = vmatprep.subr.bf16.mxu1 %v26802_v43 }
 0x1b1   :  { %v1503_v20 = vpop.f32.mrb[14].mxu0 }
 0x1b2   :  { %18573 = vmatmul.mubr.f32.vlgmr.msra.gmra.mrb[26].mxu1 %v24685_v56  ;;  %v1504_v32 = vadd.f32 %v1503_v20, %v1416_v26  ;;  %v18327_v49 = vpop.f32.mrb[15].mxu0 }
 0x1b3   :  { %21783 = vmatpush3.bf16.msra.mxu0 %v24032_v60  ;;  %21813 = vmatpush3.bf16.msra.mxu1 %v23937_v16 }
 0x1b4   :  { %21784 = vmatprep.subr.bf16.mxu0 %v26802_v43  ;;  %21814 = vmatprep.subr.bf16.mxu1 %v26802_v43 }
 0x1b5   :  { %18610 = vmatprep.mubr.msk.f32.mxu1 %vm23798_vm0, %v26805_v12 }
 0x1b7   :  { %21786 = vmatpush3.bf16.msra.mxu0 %v24041_v61  ;;  %21816 = vmatpush3.bf16.msra.mxu1 %v23943_v19 }
 0x1b8   :  { %21799 = vmatprep.subr.bf16.mxu0 %v26802_v43  ;;  %21817 = vmatprep.subr.bf16.mxu1 %v26802_v43 }
 0x1b9   :  { %v1584_v44 = vpop.f32.mrb[14].mxu1 }
 0x1ba   :  { %18554 = vmatmul.mubr.f32.vlgmr.msra.gmra.mrb[26].mxu0 %v24677_v40  ;;  %v1585_v50 = vadd.f32 %v1584_v44, %v1504_v32  ;;  %v18346_v46 = vpop.f32.mrb[15].mxu1  ;;  %v2929_v32 = vsub.f32 %v24742_v30, %v24752_v7 }
 0x1bb   :  { %21801 = vmatpush3.bf16.msra.mxu0 %v24053_v62  ;;  %21819 = vmatpush3.bf16.msra.mxu1 %v23955_v27 }
 0x1bc   :  { %21802 = vmatprep.subr.bf16.mxu0 %v26802_v43  ;;  %21820 = vmatprep.subr.bf16.mxu1 %v26802_v43 }
 0x1bd   :  { %18591 = vmatprep.mubr.msk.f32.mxu0 %vm23798_vm0, %v26805_v12 }
 0x1bf   :  { %21804 = vmatpush3.bf16.msra.mxu0 %v24064_v6  ;;  %21822 = vmatpush3.bf16.msra.mxu1 %v23991_v48 }
 0x1c0   :  { %21805 = vmatprep.subr.bf16.mxu0 %v26802_v43  ;;  %21835 = vmatprep.subr.bf16.mxu1 %v26802_v43 }
 0x1c1   :  { %v1679_v58 = vpop.f32.mrb[16].mxu0 }
 0x1c2   :  { %18611 = vmatmul.mubr.f32.vlgmr.msra.gmra.mrb[28].mxu1 %v24674_v17  ;;  %v1680_v38 = vadd.f32 %v1679_v58, %v1585_v50  ;;  %v18365_v22 = vpop.f32.mrb[17].mxu0  ;;  %v24767_v50 = vand.u32 4294901760, %v2929_v32  ;;  %v26850_v32 = vld [vmem:[#allocation20_spill] sm:$0xff] }
 0x1c3   :  { %21807 = vmatpush3.bf16.msra.mxu0 %v24080_v13  ;;  %21837 = vmatpush3.bf16.msra.mxu1 %v24159_v63 }
 0x1c4   :  { %21808 = vmatprep.subr.bf16.mxu0 %v26802_v43  ;;  %21838 = vmatprep.subr.bf16.mxu1 %v26802_v43 }
 0x1c5   :  { %18648 = vmatprep.mubr.msk.f32.mxu1 %vm23798_vm0, %v26805_v12 }
 0x1c7   :  { %21810 = vmatpush3.bf16.msra.mxu0 %v24101_v24  ;;  %21840 = vmatpush3.bf16.msra.mxu1 %v24180_v14 }
 0x1c8   :  { %21823 = vmatprep.subr.bf16.mxu0 %v26802_v43  ;;  %21841 = vmatprep.subr.bf16.mxu1 %v26802_v43 }
 0x1c9   :  { %v1758_v3 = vpop.f32.mrb[16].mxu1 }
 0x1ca   :  { %18592 = vmatmul.mubr.f32.vlgmr.msra.gmra.mrb[28].mxu0 %v24674_v17  ;;  %v1759_v42 = vadd.f32 %v1758_v3, %v1680_v38  ;;  %v18384_v26 = vpop.f32.mrb[17].mxu1 }
 0x1cb   :  { %21825 = vmatpush3.bf16.msra.mxu0 %v24121_v35  ;;  %21843 = vmatpush3.bf16.msra.mxu1 %v24205_v39 }
 0x1cc   :  { %21826 = vmatprep.subr.bf16.mxu0 %v26802_v43  ;;  %21844 = vmatprep.subr.bf16.mxu1 %v26802_v43 }
 0x1cd   :  { %18629 = vmatprep.mubr.msk.f32.mxu0 %vm23798_vm0, %v26805_v12 }
 0x1cf   :  { %21828 = vmatpush3.bf16.msra.mxu0 %v24140_v45  ;;  %21846 = vmatpush3.bf16.msra.mxu1 %v24213_v53 }
 0x1d0   :  { %21829 = vmatprep.subr.bf16.mxu0 %v26802_v43  ;;  %21859 = vmatprep.subr.bf16.mxu1 %v26802_v43 }
 0x1d1   :  { %v1841_v20 = vpop.f32.mrb[18].mxu0 }
 0x1d2   :  { %18649 = vmatmul.mubr.f32.vlgmr.msra.gmra.mrb[30].mxu1 %v24735_v2  ;;  %v1842_v49 = vadd.f32 %v1841_v20, %v1759_v42  ;;  %v18403_v44 = vpop.f32.mrb[19].mxu0 }
 0x1d3   :  { %21831 = vmatpush3.bf16.msra.mxu0 %v24149_v52  ;;  %21861 = vmatpush3.bf16.msra.mxu1 %v24121_v35 }
 0x1d4   :  { %21832 = vmatprep.subr.bf16.mxu0 %v26802_v43  ;;  %21862 = vmatprep.subr.bf16.mxu1 %v26802_v43 }
 0x1d5   :  { %18686 = vmatprep.mubr.msk.f32.mxu1 %vm23798_vm0, %v26805_v12 }
 0x1d7   :  { %21834 = vmatpush3.bf16.msra.mxu0 %v24178_v10  ;;  %21864 = vmatpush3.bf16.msra.mxu1 %v24140_v45 }
 0x1d8   :  { %21847 = vmatprep.subr.bf16.mxu0 %v26802_v43  ;;  %21865 = vmatprep.subr.bf16.mxu1 %v26802_v43 }
 0x1d9   :  { %v1952_v46 = vpop.f32.mrb[18].mxu1 }
 0x1da   :  { %18630 = vmatmul.mubr.f32.vlgmr.msra.gmra.mrb[30].mxu0 %v24767_v50  ;;  %v1953_v58 = vadd.f32 %v1952_v46, %v1842_v49  ;;  %v18422_v38 = vpop.f32.mrb[19].mxu1 }
 0x1db   :  { %21849 = vmatpush3.bf16.msra.mxu0 %v24201_v36  ;;  %21867 = vmatpush3.bf16.msra.mxu1 %v24149_v52  ;;  %v26852_v38 = vld [vmem:[#allocation26_spill] sm:$0xff] }
 0x1dc   :  { %21850 = vmatprep.subr.bf16.mxu0 %v26802_v43  ;;  %21868 = vmatprep.subr.bf16.mxu1 %v26802_v43 }
 0x1dd   :  { %18667 = vmatprep.mubr.msk.f32.mxu0 %vm23798_vm0, %v26805_v12 }
 0x1df   :  { %21852 = vmatpush3.bf16.msra.mxu0 %v24217_v57  ;;  %21870 = vmatpush3.bf16.msra.mxu1 %v24178_v10 }
 0x1e0   :  { %21853 = vmatprep.subr.bf16.mxu0 %v26802_v43  ;;  %21883 = vmatprep.subr.bf16.mxu1 %v26802_v43 }
 0x1e1   :  { %v2040_v22 = vpop.f32.mrb[20].mxu0 }
 0x1e2   :  { %18687 = vmatmul.mubr.f32.vlgmr.msra.gmra.mrb[32].mxu1 %v24752_v7  ;;  %v2041_v34 = vadd.f32 %v2040_v22, %v1953_v58  ;;  %v18441_v3 = vpop.f32.mrb[21].mxu0  ;;  %v26851_v58 = vld [vmem:[#allocation21_spill] sm:$0xff]  ;;  %v26853_v22 = vld [vmem:[#allocation22_spill] sm:$0xff] }
 0x1e3   :  { %21855 = vmatpush3.bf16.msra.mxu0 %v24228_v4  ;;  %21885 = vmatpush3.bf16.msra.mxu1 %v24121_v35 }
 0x1e4   :  { %21856 = vmatprep.subr.bf16.mxu0 %v26802_v43  ;;  %21886 = vmatprep.subr.bf16.mxu1 %v26802_v43 }
 0x1e5   :  { %18724 = vmatprep.mubr.msk.f32.mxu1 %vm23798_vm0, %v26805_v12 }
 0x1e7   :  { %21858 = vmatpush3.bf16.msra.mxu0 %v24237_v9  ;;  %21888 = vmatpush3.bf16.msra.mxu1 %v24140_v45 }
 0x1e8   :  { %21871 = vmatprep.subr.bf16.mxu0 %v26802_v43  ;;  %21889 = vmatprep.subr.bf16.mxu1 %v26802_v43 }
 0x1e9   :  { %v2121_v42 = vpop.f32.mrb[20].mxu1 }
 0x1ea   :  { %18668 = vmatmul.mubr.f32.vlgmr.msra.gmra.mrb[32].mxu0 %v24742_v30  ;;  %v2122_v26 = vadd.f32 %v2121_v42, %v2041_v34  ;;  %v18460_v20 = vpop.f32.mrb[21].mxu1  ;;  %v26854_v34 = vld [vmem:[#allocation28_spill] sm:$0xff] }
 0x1eb   :  { %21873 = vmatpush3.bf16.msra.mxu0 %v24249_v15  ;;  %21891 = vmatpush3.bf16.msra.mxu1 %v24149_v52  ;;  %v26855_v20 = vld [vmem:[#allocation23_spill] sm:$0xff] }
 0x1ec   :  { %21874 = vmatprep.subr.bf16.mxu0 %v26802_v43  ;;  %21892 = vmatprep.subr.bf16.mxu1 %v26802_v43 }
 0x1ed   :  { %18705 = vmatprep.mubr.msk.f32.mxu0 %vm23798_vm0, %v26805_v12 }
 0x1ef   :  { %21876 = vmatpush3.bf16.msra.mxu0 %v26850_v32  ;;  %21894 = vmatpush3.bf16.msra.mxu1 %v24178_v10 }
 0x1f0   :  { %21877 = vmatprep.subr.bf16.mxu0 %v26802_v43  ;;  %21907 = vmatprep.subr.bf16.mxu1 %v26802_v43 }
 0x1f1   :  { %v2216_v49 = vpop.f32.mrb[22].mxu0 }
 0x1f2   :  { %18725 = vmatmul.mubr.f32.vlgmr.msra.gmra.mrb[34].mxu1 %v24735_v2  ;;  %v2217_v44 = vadd.f32 %v2216_v49, %v2122_v26  ;;  %v18479_v46 = vpop.f32.mrb[23].mxu0  ;;  %v26856_v49 = vld [vmem:[#allocation29_spill] sm:$0xff] }
 0x1f3   :  { %21879 = vmatpush3.bf16.msra.mxu0 %v26851_v58  ;;  %21909 = vmatpush3.bf16.msra.mxu1 %v26852_v38  ;;  %v26857_v46 = vld [vmem:[#allocation24_spill] sm:$0xff] }
 0x1f4   :  { %21880 = vmatprep.subr.bf16.mxu0 %v26802_v43  ;;  %21910 = vmatprep.subr.bf16.mxu1 %v26802_v43 }
 0x1f5   :  { %18762 = vmatprep.mubr.msk.f32.mxu1 %vm23798_vm0, %v26805_v12 }
 0x1f7   :  { %21882 = vmatpush3.bf16.msra.mxu0 %v26853_v22  ;;  %21912 = vmatpush3.bf16.msra.mxu1 %v26854_v34 }
 0x1f8   :  { %21895 = vmatprep.subr.bf16.mxu0 %v26802_v43  ;;  %21913 = vmatprep.subr.bf16.mxu1 %v26802_v43 }
 0x1f9   :  { %v2295_v3 = vpop.f32.mrb[22].mxu1 }
 0x1fa   :  { %v24817_v42 = vadd.f32 %v2295_v3, %v2217_v44  ;;  %18706 = vmatmul.mubr.f32.vlgmr.msra.gmra.mrb[34].mxu0 %v24735_v2  ;;  %v18498_v26 = vpop.f32.mrb[23].mxu1  ;;  %v26859_v44 = vld [vmem:[#allocation25_spill] sm:$0xff]  ;;  %v26860_v3 = vld [vmem:[#allocation30_spill] sm:$0xff] }
 0x1fb   :  { %21897 = vmatpush3.bf16.msra.mxu0 %v26855_v20  ;;  %21915 = vmatpush3.bf16.msra.mxu1 %v26856_v49  ;;  %v26861_v26 = vld [vmem:[#allocation32_spill] sm:$0xff] }
 0x1fc   :  { %21898 = vmatprep.subr.bf16.mxu0 %v26802_v43  ;;  %21916 = vmatprep.subr.bf16.mxu1 %v26802_v43 }
 0x1fd   :  { %18743 = vmatprep.mubr.msk.f32.mxu0 %vm23798_vm0, %v26805_v12 }
 0x1ff   :  { %21900 = vmatpush3.bf16.msra.mxu0 %v26857_v46  ;;  %21918 = vmatpush3.bf16.msra.mxu1 %v26858_v54 }
 0x200   :  { %21901 = vmatprep.subr.bf16.mxu0 %v26802_v43  ;;  %21931 = vmatprep.subr.bf16.mxu1 %v26802_v43 }
 0x202   :  { %18763 = vmatmul.mubr.f32.vlgmr.msra.gmra.mrb[36].mxu1 %v24674_v17 }
 0x203   :  { %21903 = vmatpush3.bf16.msra.mxu0 %v26859_v44  ;;  %21933 = vmatpush3.bf16.msra.mxu1 %v26855_v20 }
 0x204   :  { %21904 = vmatprep.subr.bf16.mxu0 %v26802_v43  ;;  %21934 = vmatprep.subr.bf16.mxu1 %v26802_v43 }
 0x205   :  { %18800 = vmatprep.mubr.msk.f32.mxu1 %vm23798_vm0, %v26805_v12 }
 0x207   :  { %21906 = vmatpush3.bf16.msra.mxu0 %v24355_v8  ;;  %21936 = vmatpush3.bf16.msra.mxu1 %v26857_v46 }
 0x208   :  { %21919 = vmatprep.subr.bf16.mxu0 %v26802_v43  ;;  %21937 = vmatprep.subr.bf16.mxu1 %v26802_v43 }
 0x20a   :  { %18744 = vmatmul.mubr.f32.vlgmr.msra.gmra.mrb[36].mxu0 %v24691_v11  ;;  %v26862_v11 = vld [vmem:[#allocation33_spill] sm:$0xff] }
 0x20b   :  { %21921 = vmatpush3.bf16.msra.mxu0 %v26860_v3  ;;  %21939 = vmatpush3.bf16.msra.mxu1 %v26859_v44 }
 0x20c   :  { %21922 = vmatprep.subr.bf16.mxu0 %v26802_v43  ;;  %21940 = vmatprep.subr.bf16.mxu1 %v26802_v43 }
 0x20d   :  { %18781 = vmatprep.mubr.msk.f32.mxu0 %vm23798_vm0, %v26805_v12 }
 0x20f   :  { %21924 = vmatpush3.bf16.msra.mxu0 %v26861_v26  ;;  %21942 = vmatpush3.bf16.msra.mxu1 %v24355_v8  ;;  %v26863_v26 = vld [vmem:[#allocation34_spill] sm:$0xff] }
 0x210   :  { %21925 = vmatprep.subr.bf16.mxu0 %v26802_v43  ;;  %21955 = vmatprep.subr.bf16.mxu1 %v26802_v43 }
 0x212   :  { %18801 = vmatmul.mubr.f32.vlgmr.msra.gmra.mrb[38].mxu1 %v24685_v56  ;;  %v26864_v56 = vld [vmem:[#allocation35_spill] sm:$0xff] }
 0x213   :  { %21927 = vmatpush3.bf16.msra.mxu0 %v26862_v11  ;;  %21957 = vmatpush3.bf16.msra.mxu1 %v26855_v20 }
 0x214   :  { %21928 = vmatprep.subr.bf16.mxu0 %v26802_v43  ;;  %21958 = vmatprep.subr.bf16.mxu1 %v26802_v43 }
 0x215   :  { %18838 = vmatprep.mubr.msk.f32.mxu1 %vm23798_vm0, %v26805_v12 }
 0x217   :  { %21930 = vmatpush3.bf16.msra.mxu0 %v26863_v26  ;;  %21960 = vmatpush3.bf16.msra.mxu1 %v26857_v46  ;;  %v26865_v26 = vld [vmem:[#allocation36_spill] sm:$0xff] }
 0x218   :  { %21943 = vmatprep.subr.bf16.mxu0 %v26802_v43  ;;  %21961 = vmatprep.subr.bf16.mxu1 %v26802_v43 }
 0x21a   :  { %18782 = vmatmul.mubr.f32.vlgmr.msra.gmra.mrb[38].mxu0 %v24677_v40  ;;  %v26866_v40 = vld [vmem:[#allocation37_spill] sm:$0xff] }
 0x21b   :  { %21945 = vmatpush3.bf16.msra.mxu0 %v26864_v56  ;;  %21963 = vmatpush3.bf16.msra.mxu1 %v26859_v44 }
 0x21c   :  { %21946 = vmatprep.subr.bf16.mxu0 %v26802_v43  ;;  %21964 = vmatprep.subr.bf16.mxu1 %v26802_v43 }
 0x21d   :  { %18819 = vmatprep.mubr.msk.f32.mxu0 %vm23798_vm0, %v26805_v12 }
 0x21f   :  { %21948 = vmatpush3.bf16.msra.mxu0 %v26865_v26  ;;  %21966 = vmatpush3.bf16.msra.mxu1 %v24355_v8  ;;  %v26867_v26 = vld [vmem:[#allocation38_spill] sm:$0xff] }
 0x220   :  { %21949 = vmatprep.subr.bf16.mxu0 %v26802_v43  ;;  %21979 = vmatprep.subr.bf16.mxu1 %v26802_v43 }
 0x222   :  { %18839 = vmatmul.mubr.f32.vlgmr.msra.gmra.mrb[40].mxu1 %v24674_v17 }
 0x223   :  { %21951 = vmatpush3.bf16.msra.mxu0 %v26866_v40  ;;  %21981 = vmatpush3.bf16.msra.mxu1 %v24517_v31 }
 0x224   :  { %21952 = vmatprep.subr.bf16.mxu0 %v26802_v43  ;;  %21982 = vmatprep.subr.bf16.mxu1 %v26802_v43 }
 0x225   :  { %18876 = vmatprep.mubr.msk.f32.mxu1 %vm23798_vm0, %v26805_v12 }
 0x227   :  { %21954 = vmatpush3.bf16.msra.mxu0 %v26867_v26  ;;  %21984 = vmatpush3.bf16.msra.mxu1 %v24528_v28 }
 0x228   :  { %21967 = vmatprep.subr.bf16.mxu0 %v26802_v43  ;;  %21985 = vmatprep.subr.bf16.mxu1 %v26802_v43 }
 0x22a   :  { %18820 = vmatmul.mubr.f32.vlgmr.msra.gmra.mrb[40].mxu0 %v24674_v17  ;;  %v26868_v17 = vld [vmem:[#allocation52_spill] sm:$0xff] }
 0x22b   :  { %21969 = vmatpush3.bf16.msra.mxu0 %v24467_v18  ;;  %21987 = vmatpush3.bf16.msra.mxu1 %v24542_v41 }
 0x22c   :  { %21970 = vmatprep.subr.bf16.mxu0 %v26802_v43  ;;  %21988 = vmatprep.subr.bf16.mxu1 %v26802_v43 }
 0x22d   :  { %18857 = vmatprep.mubr.msk.f32.mxu0 %vm23798_vm0, %v26805_v12 }
 0x22f   :  { %21972 = vmatpush3.bf16.msra.mxu0 %v24487_v0  ;;  %21990 = vmatpush3.bf16.msra.mxu1 %v24553_v25 }
 0x230   :  { %21973 = vmatprep.subr.bf16.mxu0 %v26802_v43  ;;  %22003 = vmatprep.subr.bf16.mxu1 %v26802_v43 }
 0x232   :  { %18877 = vmatmul.mubr.f32.vlgmr.msra.gmra.mrb[42].mxu1 %v24735_v2 }
 0x233   :  { %21975 = vmatpush3.bf16.msra.mxu0 %v24508_v47  ;;  %22005 = vmatpush3.bf16.msra.mxu1 %v24467_v18 }
 0x234   :  { %21976 = vmatprep.subr.bf16.mxu0 %v26802_v43  ;;  %22006 = vmatprep.subr.bf16.mxu1 %v26802_v43 }
 0x235   :  { %18914 = vmatprep.mubr.msk.f32.mxu1 %vm23798_vm0, %v26805_v12 }
 0x237   :  { %21978 = vmatpush3.bf16.msra.mxu0 %v24525_v29  ;;  %22008 = vmatpush3.bf16.msra.mxu1 %v24487_v0 }
 0x238   :  { %21991 = vmatprep.subr.bf16.mxu0 %v26802_v43  ;;  %22009 = vmatprep.subr.bf16.mxu1 %v26802_v43 }
 0x23a   :  { %18858 = vmatmul.mubr.f32.vlgmr.msra.gmra.mrb[42].mxu0 %v24767_v50  ;;  %v26871_v50 = vld [vmem:[#allocation54_spill] sm:$0xff] }
 0x23b   :  { %21993 = vmatpush3.bf16.msra.mxu0 %v24547_v1  ;;  %22011 = vmatpush3.bf16.msra.mxu1 %v24508_v47 }
 0x23c   :  { %21994 = vmatprep.subr.bf16.mxu0 %v26802_v43  ;;  %22012 = vmatprep.subr.bf16.mxu1 %v26802_v43 }
 0x23d   :  { %18895 = vmatprep.mubr.msk.f32.mxu0 %vm23798_vm0, %v26805_v12 }
 0x23f   :  { %21996 = vmatpush3.bf16.msra.mxu0 %v24558_v51  ;;  %22014 = vmatpush3.bf16.msra.mxu1 %v24525_v29 }
 0x240   :  { %21997 = vmatprep.subr.bf16.mxu0 %v26802_v43  ;;  %22027 = vmatprep.subr.bf16.mxu1 %v26802_v43 }
 0x242   :  { %18915 = vmatmul.mubr.f32.vlgmr.msra.gmra.mrb[44].mxu1 %v24752_v7  ;;  %v26870_v7 = vld [vmem:[#allocation16_spill] sm:$0xff] }
 0x243   :  { %21999 = vmatpush3.bf16.msra.mxu0 %v24568_v33  ;;  %22029 = vmatpush3.bf16.msra.mxu1 %v24467_v18 }
 0x244   :  { %22000 = vmatprep.subr.bf16.mxu0 %v26802_v43  ;;  %22030 = vmatprep.subr.bf16.mxu1 %v26802_v43 }
 0x245   :  { %18952 = vmatprep.mubr.msk.f32.mxu1 %vm23798_vm0, %v26805_v12 }
 0x247   :  { %22002 = vmatpush3.bf16.msra.mxu0 %v24577_v5  ;;  %22032 = vmatpush3.bf16.msra.mxu1 %v24487_v0 }
 0x248   :  { %22015 = vmatprep.subr.bf16.mxu0 %v26802_v43  ;;  %22033 = vmatprep.subr.bf16.mxu1 %v26802_v43 }
 0x24a   :  { %18896 = vmatmul.mubr.f32.vlgmr.msra.gmra.mrb[44].mxu0 %v24742_v30  ;;  %v26869_v30 = vld [vmem:[#allocation53_spill] sm:$0xff] }
 0x24b   :  { %22017 = vmatpush3.bf16.msra.mxu0 %v24589_v21  ;;  %22035 = vmatpush3.bf16.msra.mxu1 %v24508_v47 }
 0x24c   :  { %22018 = vmatprep.subr.bf16.mxu0 %v26802_v43  ;;  %22036 = vmatprep.subr.bf16.mxu1 %v26802_v43 }
 0x24d   :  { %18933 = vmatprep.mubr.msk.f32.mxu0 %vm23798_vm0, %v26805_v12 }
 0x24f   :  { %22020 = vmatpush3.bf16.msra.mxu0 %v26868_v17  ;;  %22038 = vmatpush3.bf16.msra.mxu1 %v24525_v29  ;;  %v26872_v17 = vld [vmem:[#allocation17_spill] sm:$0xff] }
 0x250   :  { %22021 = vmatprep.subr.bf16.mxu0 %v26802_v43  ;;  %22051 = vmatprep.subr.bf16.mxu1 %v26802_v43 }
 0x252   :  { %18953 = vmatmul.mubr.f32.vlgmr.msra.gmra.mrb[46].mxu1 %v24735_v2 }
 0x253   :  { %22023 = vmatpush3.bf16.msra.mxu0 %v26869_v30  ;;  %22053 = vmatpush3.bf16.msra.mxu1 %v26870_v7  ;;  %v26873_v7 = vld [vmem:[#allocation18_spill] sm:$0xff] }
 0x254   :  { %22024 = vmatprep.subr.bf16.mxu0 %v26802_v43  ;;  %22054 = vmatprep.subr.bf16.mxu1 %v26802_v43 }
 0x255   :  { %18990 = vmatprep.mubr.msk.f32.mxu1 %vm23798_vm0, %v26805_v12 }
 0x257   :  { %22026 = vmatpush3.bf16.msra.mxu0 %v26871_v50  ;;  %22056 = vmatpush3.bf16.msra.mxu1 %v26872_v17  ;;  %v26874_v17 = vld [vmem:[#allocation19_spill] sm:$0xff] }
 0x258   :  { %22039 = vmatprep.subr.bf16.mxu0 %v26802_v43  ;;  %22057 = vmatprep.subr.bf16.mxu1 %v26802_v43 }
 0x25a   :  { %18934 = vmatmul.mubr.f32.vlgmr.msra.gmra.mrb[46].mxu0 %v24735_v2 }
 0x25b   :  { %22041 = vmatpush3.bf16.msra.mxu0 %v23937_v16  ;;  %22059 = vmatpush3.bf16.msra.mxu1 %v26873_v7 }
 0x25c   :  { %22042 = vmatprep.subr.bf16.mxu0 %v26802_v43  ;;  %22060 = vmatprep.subr.bf16.mxu1 %v26802_v43 }
 0x25d   :  { %18971 = vmatprep.mubr.msk.f32.mxu0 %vm23798_vm0, %v26805_v12 }
 0x25f   :  { %22044 = vmatpush3.bf16.msra.mxu0 %v23943_v19  ;;  %22062 = vmatpush3.bf16.msra.mxu1 %v26874_v17 }
 0x260   :  { %22045 = vmatprep.subr.bf16.mxu0 %v26802_v43  ;;  %22075 = vmatprep.subr.bf16.mxu1 %v26802_v43 }
 0x263   :  { %22047 = vmatpush3.bf16.msra.mxu0 %v23955_v27 }
 0x264   :  { %22048 = vmatprep.subr.bf16.mxu0 %v26802_v43 }
 0x267   :  { %22050 = vmatpush3.bf16.msra.mxu0 %v23991_v48 }
 0x268   :  { %22063 = vmatprep.subr.bf16.mxu0 %v26802_v43 }
 0x275   :  { %v2503_v2 = vpop.f32.mrb[24].mxu1 }
 0x276   :  { %v18536_v7 = vpop.f32.mrb[25].mxu1 }
 0x27d   :  { %v2392_v50 = vpop.f32.mrb[24].mxu0 }
 0x27e   :  { %v2504_v30 = vadd.f32 %v2503_v2, %v2392_v50  ;;  %v18517_v21 = vpop.f32.mrb[25].mxu0 }
 0x285   :  { %v2672_v5 = vpop.f32.mrb[26].mxu1 }
 0x286   :  { %v18574_v33 = vpop.f32.mrb[27].mxu1 }
 0x28d   :  { %v2591_v17 = vpop.f32.mrb[26].mxu0 }
 0x28e   :  { %v2592_v51 = vadd.f32 %v2591_v17, %v2504_v30  ;;  %v18555_v1 = vpop.f32.mrb[27].mxu0 }
 0x290   :  { %v2673_v29 = vadd.f32 %v2672_v5, %v2592_v51 }
 0x295   :  { %v2846_v47 = vpop.f32.mrb[28].mxu1 }
 0x296   :  { %v18612_v25 = vpop.f32.mrb[29].mxu1 }
 0x29d   :  { %v2767_v0 = vpop.f32.mrb[28].mxu0 }
 0x29e   :  { %v2768_v41 = vadd.f32 %v2767_v0, %v2673_v29  ;;  %v18593_v18 = vpop.f32.mrb[29].mxu0 }
 0x29f   :  { %v24966_v18 = vpop.permute.xlu0 %4468 }
 0x2a0   :  { %v2847_v28 = vadd.f32 %v2846_v47, %v2768_v41  ;;  %vm4470_vm7 = vcmp.eq.s32.totalorder %v24966_v18, 1  ;;  %v26877_v18 = vld [vmem:[#allocation30_spill] sm:$0xff] }
 0x2a5   :  { %v3043_v26 = vpop.f32.mrb[30].mxu1 }
 0x2a6   :  { %v18650_v31 = vpop.f32.mrb[31].mxu1 }
 0x2ad   :  { %v2932_v40 = vpop.f32.mrb[30].mxu0 }
 0x2ae   :  { %v2933_v56 = vadd.f32 %v2932_v40, %v2847_v28  ;;  %v18631_v7 = vpop.f32.mrb[31].mxu0 }
 0x2b0   :  { %v3044_v11 = vadd.f32 %v3043_v26, %v2933_v56 }
 0x2b5   :  { %v3212_v50 = vpop.f32.mrb[32].mxu1 }
 0x2b6   :  { %v18688_v21 = vpop.f32.mrb[33].mxu1 }
 0x2bd   :  { %v3131_v2 = vpop.f32.mrb[32].mxu0 }
 0x2be   :  { %v3132_v33 = vadd.f32 %v3131_v2, %v3044_v11  ;;  %v18669_v3 = vpop.f32.mrb[33].mxu0 }
 0x2c0   :  { %v3213_v17 = vadd.f32 %v3212_v50, %v3132_v33 }
 0x2c5   :  { %v3386_v1 = vpop.f32.mrb[34].mxu1 }
 0x2c6   :  { %v18726_v51 = vpop.f32.mrb[35].mxu1 }
 0x2cd   :  { %v3307_v5 = vpop.f32.mrb[34].mxu0 }
 0x2ce   :  { %v3308_v25 = vadd.f32 %v3307_v5, %v3213_v17  ;;  %v18707_v30 = vpop.f32.mrb[35].mxu0 }
 0x2d0   :  { %v3387_v0 = vadd.f32 %v3386_v1, %v3308_v25  ;;  %v4474_v25 = vld [vmem:[#allocation2 + $0x10] sm:$0xff] }
 0x2d1   :  { %v5017_v30 = vsel %vm137_vm1, %v4474_v25, 0  ;;  %vm4475_vm8 = vcmp.ne.f32.partialorder %v4474_v25, -1.0 }
 0x2d2   :  { %v3390_v47 = vadd.f32 %v24662_v37, %v3387_v0  ;;  %v26875_v0 = vmov 0  }
 0x2d4   :  { %v24973_v31 = vsel %vm4470_vm7, %v3390_v47, %v24670_v23  ;;  %v6632_v47 = vsel %vm4475_vm8, 1, %v26875_v0 }
 0x2d5   :  { %v4477_v29 = vsel %vm137_vm1, %v24973_v31, 0  ;;  %v3581_v28 = vpop.f32.mrb[36].mxu1  ;;  %6634 = vperm.xlu1 %23636, %v6632_v47  }
 0x2d6   :  { %v24977_v41 = vand.u32 4294901760, %v4477_v29  ;;  %v18764_v3 = vpop.f32.mrb[37].mxu1 }
 0x2d8   :  { %v24980_v26 = vsub.f32 %v4477_v29, %v24977_v41  ;;  %18991 = vmatmul.mubr.f32.vlgmr.msra.gmra.mrb[48].mxu1 %v24977_v41  ;;  %v25038_v29 = vand.u32 4294901760, %v5017_v30 }
 0x2d9   :  { %22077 = vmatpush3.bf16.msra.mxu1 %v23937_v16  ;;  %19028 = vmatprep.mubr.msk.f32.mxu1 %vm23798_vm0, %v26805_v12 }
 0x2da   :  { %22078 = vmatprep.subr.bf16.mxu1 %v26802_v43  ;;  %v24988_v37 = vand.u32 4294901760, %v24980_v26 }
 0x2dc   :  { %v4555_v23 = vsub.f32 %v24980_v26, %v24988_v37 }
 0x2dd   :  { %22080 = vmatpush3.bf16.msra.mxu1 %v23943_v19  ;;  %v3470_v11 = vpop.f32.mrb[36].mxu0 }
 0x2de   :  { %v3582_v56 = vadd.f32 %v3581_v28, %v3470_v11  ;;  %v18745_v40 = vpop.f32.mrb[37].mxu0  ;;  %22081 = vmatprep.subr.bf16.mxu1 %v26802_v43  ;;  %v24994_v7 = vand.u32 4294901760, %v4555_v23  ;;  %v25044_v11 = vld [vmem:[#allocation2 + $0x18] sm:$0xff] }
 0x2df   :  { %vm6641_vm9 = vcmp.ne.f32.partialorder %v25044_v11, -1.0  ;;  %v25049_v40 = vsub.f32 %v5017_v30, %v25038_v29 }
 0x2e0   :  { %18972 = vmatmul.mubr.f32.vlgmr.msra.gmra.mrb[48].mxu0 %v24994_v7 }
 0x2e1   :  { %22065 = vmatpush3.bf16.msra.mxu0 %v24011_v55  ;;  %22083 = vmatpush3.bf16.msra.mxu1 %v23955_v27 }
 0x2e2   :  { %22066 = vmatprep.subr.bf16.mxu0 %v26802_v43  ;;  %22084 = vmatprep.subr.bf16.mxu1 %v26802_v43 }
 0x2e3   :  { %19009 = vmatprep.mubr.msk.f32.mxu0 %vm23798_vm0, %v26805_v12 }
 0x2e5   :  { %22068 = vmatpush3.bf16.msra.mxu0 %v24022_v59  ;;  %22086 = vmatpush3.bf16.msra.mxu1 %v23991_v48  ;;  %v3750_v50 = vpop.f32.mrb[38].mxu1 }
 0x2e6   :  { %v18802_v21 = vpop.f32.mrb[39].mxu1  ;;  %22069 = vmatprep.subr.bf16.mxu0 %v26802_v43  ;;  %22099 = vmatprep.subr.bf16.mxu1 %v26802_v43 }
 0x2e7   :  { %v10972_v21 = vld [vmem:[#allocation2 + $0x28] sm:$0xff] }
 0x2e8   :  { %19029 = vmatmul.mubr.f32.vlgmr.msra.gmra.mrb[50].mxu1 %v24988_v37  ;;  %vm10973_vm10 = vcmp.ne.f32.partialorder %v10972_v21, -1.0 }
 0x2e9   :  { %22071 = vmatpush3.bf16.msra.mxu0 %v24032_v60  ;;  %22101 = vmatpush3.bf16.msra.mxu1 %v23937_v16 }
 0x2ea   :  { %22072 = vmatprep.subr.bf16.mxu0 %v26802_v43  ;;  %22102 = vmatprep.subr.bf16.mxu1 %v26802_v43 }
 0x2eb   :  { %19066 = vmatprep.mubr.msk.f32.mxu1 %vm23798_vm0, %v26805_v12 }
 0x2ed   :  { %22074 = vmatpush3.bf16.msra.mxu0 %v24041_v61  ;;  %22104 = vmatpush3.bf16.msra.mxu1 %v23943_v19  ;;  %v3669_v2 = vpop.f32.mrb[38].mxu0 }
 0x2ee   :  { %v3670_v33 = vadd.f32 %v3669_v2, %v3582_v56  ;;  %v18783_v17 = vpop.f32.mrb[39].mxu0  ;;  %22087 = vmatprep.subr.bf16.mxu0 %v26802_v43  ;;  %22105 = vmatprep.subr.bf16.mxu1 %v26802_v43  ;;  %v25059_v2 = vand.u32 4294901760, %v25049_v40 }
 0x2f0   :  { %19010 = vmatmul.mubr.f32.vlgmr.msra.gmra.mrb[50].mxu0 %v24980_v26  ;;  %v3751_v1 = vadd.f32 %v3750_v50, %v3670_v33  ;;  %v8798_v50 = vsel %vm6641_vm9, 1, %v26875_v0  ;;  %v13130_v33 = vsel %vm10973_vm10, 1, %v26875_v0 }
 0x2f1   :  { %22089 = vmatpush3.bf16.msra.mxu0 %v24053_v62  ;;  %22107 = vmatpush3.bf16.msra.mxu1 %v23955_v27 }
 0x2f2   :  { %22090 = vmatprep.subr.bf16.mxu0 %v26802_v43  ;;  %22108 = vmatprep.subr.bf16.mxu1 %v26802_v43 }
 0x2f3   :  { %19047 = vmatprep.mubr.msk.f32.mxu0 %vm23798_vm0, %v26805_v12  ;;  %8800 = vperm.xlu1 %23636, %v8798_v50  }
 0x2f5   :  { %22092 = vmatpush3.bf16.msra.mxu0 %v24064_v6  ;;  %22110 = vmatpush3.bf16.msra.mxu1 %v23991_v48  ;;  %v3924_v51 = vpop.f32.mrb[40].mxu1 }
 0x2f6   :  { %v18840_v5 = vpop.f32.mrb[41].mxu1  ;;  %22093 = vmatprep.subr.bf16.mxu0 %v26802_v43  ;;  %22123 = vmatprep.subr.bf16.mxu1 %v26802_v43 }
 0x2f7   :  { %13132 = vperm.xlu1 %23636, %v13130_v33   ;;  %v5095_v5 = vsub.f32 %v25049_v40, %v25059_v2 }
 0x2f8   :  { %19067 = vmatmul.mubr.f32.vlgmr.msra.gmra.mrb[52].mxu1 %v24977_v41 }
 0x2f9   :  { %22095 = vmatpush3.bf16.msra.mxu0 %v24080_v13  ;;  %22125 = vmatpush3.bf16.msra.mxu1 %v24159_v63  ;;  %v25076_v30 = vand.u32 4294901760, %v5095_v5  ;;  %v25125_v5 = vld [vmem:[%s26677_s6] ss:$0 sm:$0xff] }
 0x2fa   :  { %22096 = vmatprep.subr.bf16.mxu0 %v26802_v43  ;;  %22126 = vmatprep.subr.bf16.mxu1 %v26802_v43 }
 0x2fb   :  { %19104 = vmatprep.mubr.msk.f32.mxu1 %vm23798_vm0, %v26805_v12 }
 0x2fd   :  { %22098 = vmatpush3.bf16.msra.mxu0 %v24101_v24  ;;  %22128 = vmatpush3.bf16.msra.mxu1 %v24180_v14  ;;  %v3845_v28 = vpop.f32.mrb[40].mxu0 }
 0x2fe   :  { %v3846_v3 = vadd.f32 %v3845_v28, %v3751_v1  ;;  %v18821_v23 = vpop.f32.mrb[41].mxu0  ;;  %22111 = vmatprep.subr.bf16.mxu0 %v26802_v43  ;;  %22129 = vmatprep.subr.bf16.mxu1 %v26802_v43 }
 0x300   :  { %19048 = vmatmul.mubr.f32.vlgmr.msra.gmra.mrb[52].mxu0 %v24977_v41  ;;  %v3925_v56 = vadd.f32 %v3924_v51, %v3846_v3  ;;  %v15304_v51 = vld [vmem:[#allocation2 + $0x38] sm:$0xff] }
 0x301   :  { %22113 = vmatpush3.bf16.msra.mxu0 %v24121_v35  ;;  %22131 = vmatpush3.bf16.msra.mxu1 %v24205_v39  ;;  %vm15305_vm11 = vcmp.ne.f32.partialorder %v15304_v51, -1.0 }
 0x302   :  { %22114 = vmatprep.subr.bf16.mxu0 %v26802_v43  ;;  %22132 = vmatprep.subr.bf16.mxu1 %v26802_v43  ;;  %v16387_v25 = vsel %vm15305_vm11, 1, %v26875_v0 }
 0x303   :  { %19085 = vmatprep.mubr.msk.f32.mxu0 %vm23798_vm0, %v26805_v12  ;;  %16389 = vperm.xlu1 %23636, %v16387_v25  }
 0x305   :  { %22116 = vmatpush3.bf16.msra.mxu0 %v24140_v45  ;;  %22134 = vmatpush3.bf16.msra.mxu1 %v24213_v53  ;;  %v4118_v17 = vpop.f32.mrb[42].mxu1 }
 0x306   :  { %22117 = vmatprep.subr.bf16.mxu0 %v26802_v43  ;;  %22147 = vmatprep.subr.bf16.mxu1 %v26802_v43  ;;  %v18878_v1 = vpop.f32.mrb[43].mxu1 }
 0x308   :  { %19105 = vmatmul.mubr.f32.vlgmr.msra.gmra.mrb[54].mxu1 %v25038_v29 }
 0x309   :  { %22119 = vmatpush3.bf16.msra.mxu0 %v24149_v52  ;;  %22149 = vmatpush3.bf16.msra.mxu1 %v24121_v35 }
 0x30a   :  { %22120 = vmatprep.subr.bf16.mxu0 %v26802_v43  ;;  %22150 = vmatprep.subr.bf16.mxu1 %v26802_v43 }
 0x30b   :  { %19142 = vmatprep.mubr.msk.f32.mxu1 %vm23798_vm0, %v26805_v12 }
 0x30d   :  { %22122 = vmatpush3.bf16.msra.mxu0 %v24178_v10  ;;  %22152 = vmatpush3.bf16.msra.mxu1 %v24140_v45  ;;  %v4007_v47 = vpop.f32.mrb[42].mxu0 }
 0x30e   :  { %v4008_v0 = vadd.f32 %v4007_v47, %v3925_v56  ;;  %22135 = vmatprep.subr.bf16.mxu0 %v26802_v43  ;;  %22153 = vmatprep.subr.bf16.mxu1 %v26802_v43  ;;  %v18859_v28 = vpop.f32.mrb[43].mxu0 }
 0x30f   :  { %v2299_v28 = vadd.f32 %v25125_v5, %v24817_v42 }
 0x310   :  { %v4119_v3 = vadd.f32 %v4118_v17, %v4008_v0  ;;  %19086 = vmatmul.mubr.f32.vlgmr.msra.gmra.mrb[54].mxu0 %v25076_v30 }
 0x311   :  { %22137 = vmatpush3.bf16.msra.mxu0 %v24201_v36  ;;  %22155 = vmatpush3.bf16.msra.mxu1 %v24149_v52 }
 0x312   :  { %22138 = vmatprep.subr.bf16.mxu0 %v26802_v43  ;;  %22156 = vmatprep.subr.bf16.mxu1 %v26802_v43 }
 0x313   :  { %19123 = vmatprep.mubr.msk.f32.mxu0 %vm23798_vm0, %v26805_v12 }
 0x315   :  { %22140 = vmatpush3.bf16.msra.mxu0 %v24217_v57  ;;  %22158 = vmatpush3.bf16.msra.mxu1 %v24178_v10  ;;  %v4287_v23 = vpop.f32.mrb[44].mxu1 }
 0x316   :  { %22141 = vmatprep.subr.bf16.mxu0 %v26802_v43  ;;  %22171 = vmatprep.subr.bf16.mxu1 %v26802_v43  ;;  %v18916_v56 = vpop.f32.mrb[45].mxu1 }
 0x317   :  { %v26893_v56 = vld [vmem:[#allocation46_spill] sm:$0xff] }
 0x318   :  { %19143 = vmatmul.mubr.f32.vlgmr.msra.gmra.mrb[56].mxu1 %v25059_v2 }
 0x319   :  { %22143 = vmatpush3.bf16.msra.mxu0 %v24228_v4  ;;  %22173 = vmatpush3.bf16.msra.mxu1 %v24121_v35 }
 0x31a   :  { %22144 = vmatprep.subr.bf16.mxu0 %v26802_v43  ;;  %22174 = vmatprep.subr.bf16.mxu1 %v26802_v43 }
 0x31b   :  { %19180 = vmatprep.mubr.msk.f32.mxu1 %vm23798_vm0, %v26805_v12 }
 0x31d   :  { %22146 = vmatpush3.bf16.msra.mxu0 %v24237_v9  ;;  %22176 = vmatpush3.bf16.msra.mxu1 %v24140_v45  ;;  %v4206_v50 = vpop.f32.mrb[44].mxu0 }
 0x31e   :  { %v4207_v21 = vadd.f32 %v4206_v50, %v4119_v3  ;;  %22159 = vmatprep.subr.bf16.mxu0 %v26802_v43  ;;  %22177 = vmatprep.subr.bf16.mxu1 %v26802_v43  ;;  %v18897_v33 = vpop.f32.mrb[45].mxu0  ;;  %v2306_v50 = vsel %vm2304_vm6, %v2299_v28, %v25125_v5  ;;  %v26889_v28 = vld [vmem:[#allocation40_spill] sm:$0xff] }
 0x31f   :  { %v26880_v33 = vld [vmem:[#allocation34_spill] sm:$0xff] }
 0x320   :  { %v4288_v17 = vadd.f32 %v4287_v23, %v4207_v21  ;;  %19124 = vmatmul.mubr.f32.vlgmr.msra.gmra.mrb[56].mxu0 %v25049_v40  ;;  %v26878_v21 = vld [vmem:[#allocation32_spill] sm:$0xff] }
 0x321   :  { %22161 = vmatpush3.bf16.msra.mxu0 %v24249_v15  ;;  %22179 = vmatpush3.bf16.msra.mxu1 %v24149_v52 }
 0x322   :  { %22162 = vmatprep.subr.bf16.mxu0 %v26802_v43  ;;  %22180 = vmatprep.subr.bf16.mxu1 %v26802_v43 }
 0x323   :  { %19161 = vmatprep.mubr.msk.f32.mxu0 %vm23798_vm0, %v26805_v12 }
 0x325   :  { %22164 = vmatpush3.bf16.msra.mxu0 %v26850_v32  ;;  %22182 = vmatpush3.bf16.msra.mxu1 %v24178_v10  ;;  %v4461_v1 = vpop.f32.mrb[46].mxu1 }
 0x326   :  { %22165 = vmatprep.subr.bf16.mxu0 %v26802_v43  ;;  %22195 = vmatprep.subr.bf16.mxu1 %v26802_v43  ;;  %v18954_v51 = vpop.f32.mrb[47].mxu1 }
 0x327   :  { %v26885_v51 = vld [vmem:[#allocation38_spill] sm:$0xff] }
 0x328   :  { %19181 = vmatmul.mubr.f32.vlgmr.msra.gmra.mrb[58].mxu1 %v25038_v29 }
 0x329   :  { %22167 = vmatpush3.bf16.msra.mxu0 %v26851_v58  ;;  %22197 = vmatpush3.bf16.msra.mxu1 %v26852_v38 }
 0x32a   :  { %22168 = vmatprep.subr.bf16.mxu0 %v26802_v43  ;;  %22198 = vmatprep.subr.bf16.mxu1 %v26802_v43 }
 0x32b   :  { %19218 = vmatprep.mubr.msk.f32.mxu1 %vm23798_vm0, %v26805_v12 }
 0x32d   :  { %22170 = vmatpush3.bf16.msra.mxu0 %v26853_v22  ;;  %22200 = vmatpush3.bf16.msra.mxu1 %v26854_v34  ;;  %v4382_v25 = vpop.f32.mrb[46].mxu0 }
 0x32e   :  { %v4383_v47 = vadd.f32 %v4382_v25, %v4288_v17  ;;  %22183 = vmatprep.subr.bf16.mxu0 %v26802_v43  ;;  %22201 = vmatprep.subr.bf16.mxu1 %v26802_v43  ;;  %v18935_v0 = vpop.f32.mrb[47].mxu0  ;;  %v26882_v17 = vld [vmem:[#allocation36_spill] sm:$0xff] }
 0x32f   :  { %v26886_v25 = vld [vmem:[#allocation44_spill] sm:$0xff]  ;;  %v26888_v0 = vld [vmem:[#allocation45_spill] sm:$0xff] }
 0x330   :  { %v4462_v3 = vadd.f32 %v4461_v1, %v4383_v47  ;;  %19162 = vmatmul.mubr.f32.vlgmr.msra.gmra.mrb[58].mxu0 %v25038_v29  ;;  %v26884_v1 = vld [vmem:[#allocation42_spill] sm:$0xff]  ;;  %v26887_v47 = vld [vmem:[#allocation39_spill] sm:$0xff] }
 0x331   :  { %22185 = vmatpush3.bf16.msra.mxu0 %v26855_v20  ;;  %22203 = vmatpush3.bf16.msra.mxu1 %v26856_v49 }
 0x332   :  { %v4465_v23 = vadd.f32 %v25125_v5, %v4462_v3  ;;  %22186 = vmatprep.subr.bf16.mxu0 %v26802_v43  ;;  %22204 = vmatprep.subr.bf16.mxu1 %v26802_v43  ;;  %v26890_v3 = vld [vmem:[#allocation47_spill] sm:$0xff] }
 0x333   :  { %19199 = vmatprep.mubr.msk.f32.mxu0 %vm23798_vm0, %v26805_v12 }
 0x334   :  { %v25146_v42 = vsel %vm4470_vm7, %v4465_v23, %v2306_v50  ;;  %v26892_v23 = vld [vmem:[#allocation43_spill] sm:$0xff]  ;;  %v26894_v50 = vld [vmem:[#allocation48_spill] sm:$0xff] }
 0x335   :  { %22188 = vmatpush3.bf16.msra.mxu0 %v26857_v46  ;;  %22206 = vmatpush3.bf16.msra.mxu1 %v26858_v54 }
 0x336   :  { %22189 = vmatprep.subr.bf16.mxu0 %v26802_v43  ;;  %22219 = vmatprep.subr.bf16.mxu1 %v26802_v43 }
 0x338   :  { %19219 = vmatmul.mubr.f32.vlgmr.msra.gmra.mrb[60].mxu1 %v24977_v41 }
 0x339   :  { %22191 = vmatpush3.bf16.msra.mxu0 %v26859_v44  ;;  %22221 = vmatpush3.bf16.msra.mxu1 %v26855_v20 }
 0x33a   :  { %22192 = vmatprep.subr.bf16.mxu0 %v26802_v43  ;;  %22222 = vmatprep.subr.bf16.mxu1 %v26802_v43 }
 0x33b   :  { %19256 = vmatprep.mubr.msk.f32.mxu1 %vm23798_vm0, %v26805_v12 }
 0x33d   :  { %22194 = vmatpush3.bf16.msra.mxu0 %v24355_v8  ;;  %22224 = vmatpush3.bf16.msra.mxu1 %v26857_v46 }
 0x33e   :  { %22207 = vmatprep.subr.bf16.mxu0 %v26802_v43  ;;  %22225 = vmatprep.subr.bf16.mxu1 %v26802_v43 }
 0x340   :  { %19200 = vmatmul.mubr.f32.vlgmr.msra.gmra.mrb[60].mxu0 %v24994_v7  ;;  %v26879_v7 = vld [vmem:[#allocation33_spill] sm:$0xff] }
 0x341   :  { %22209 = vmatpush3.bf16.msra.mxu0 %v26877_v18  ;;  %22227 = vmatpush3.bf16.msra.mxu1 %v26859_v44 }
 0x342   :  { %22210 = vmatprep.subr.bf16.mxu0 %v26802_v43  ;;  %22228 = vmatprep.subr.bf16.mxu1 %v26802_v43 }
 0x343   :  { %19237 = vmatprep.mubr.msk.f32.mxu0 %vm23798_vm0, %v26805_v12 }
 0x345   :  { %22212 = vmatpush3.bf16.msra.mxu0 %v26878_v21  ;;  %22230 = vmatpush3.bf16.msra.mxu1 %v24355_v8 }
 0x346   :  { %22213 = vmatprep.subr.bf16.mxu0 %v26802_v43  ;;  %22243 = vmatprep.subr.bf16.mxu1 %v26802_v43 }
 0x348   :  { %19257 = vmatmul.mubr.f32.vlgmr.msra.gmra.mrb[62].mxu1 %v24988_v37  ;;  %v26881_v37 = vld [vmem:[#allocation35_spill] sm:$0xff] }
 0x349   :  { %22215 = vmatpush3.bf16.msra.mxu0 %v26879_v7  ;;  %22245 = vmatpush3.bf16.msra.mxu1 %v26855_v20 }
 0x34a   :  { %22216 = vmatprep.subr.bf16.mxu0 %v26802_v43  ;;  %22246 = vmatprep.subr.bf16.mxu1 %v26802_v43 }
 0x34b   :  { %19294 = vmatprep.mubr.msk.f32.mxu1 %vm23798_vm0, %v26805_v12 }
 0x34d   :  { %22218 = vmatpush3.bf16.msra.mxu0 %v26880_v33  ;;  %22248 = vmatpush3.bf16.msra.mxu1 %v26857_v46 }
 0x34e   :  { %22231 = vmatprep.subr.bf16.mxu0 %v26802_v43  ;;  %22249 = vmatprep.subr.bf16.mxu1 %v26802_v43 }
 0x350   :  { %19238 = vmatmul.mubr.f32.vlgmr.msra.gmra.mrb[62].mxu0 %v24980_v26  ;;  %v26883_v26 = vld [vmem:[#allocation37_spill] sm:$0xff] }
 0x351   :  { %22233 = vmatpush3.bf16.msra.mxu0 %v26881_v37  ;;  %22251 = vmatpush3.bf16.msra.mxu1 %v26859_v44 }
 0x352   :  { %22234 = vmatprep.subr.bf16.mxu0 %v26802_v43  ;;  %22252 = vmatprep.subr.bf16.mxu1 %v26802_v43 }
 0x353   :  { %19275 = vmatprep.mubr.msk.f32.mxu0 %vm23798_vm0, %v26805_v12 }
 0x355   :  { %22236 = vmatpush3.bf16.msra.mxu0 %v26882_v17  ;;  %22254 = vmatpush3.bf16.msra.mxu1 %v24355_v8 }
 0x356   :  { %22237 = vmatprep.subr.bf16.mxu0 %v26802_v43  ;;  %22267 = vmatprep.subr.bf16.mxu1 %v26802_v43 }
 0x358   :  { %19295 = vmatmul.mubr.f32.vlgmr.msra.gmra.mrb[64].mxu1 %v24977_v41 }
 0x359   :  { %22239 = vmatpush3.bf16.msra.mxu0 %v26883_v26  ;;  %22269 = vmatpush3.bf16.msra.mxu1 %v26884_v1 }
 0x35a   :  { %22240 = vmatprep.subr.bf16.mxu0 %v26802_v43  ;;  %22270 = vmatprep.subr.bf16.mxu1 %v26802_v43 }
 0x35b   :  { %19332 = vmatprep.mubr.msk.f32.mxu1 %vm23798_vm0, %v26805_v12 }
 0x35d   :  { %22242 = vmatpush3.bf16.msra.mxu0 %v26885_v51  ;;  %22272 = vmatpush3.bf16.msra.mxu1 %v26886_v25 }
 0x35e   :  { %22255 = vmatprep.subr.bf16.mxu0 %v26802_v43  ;;  %22273 = vmatprep.subr.bf16.mxu1 %v26802_v43 }
 0x360   :  { %19276 = vmatmul.mubr.f32.vlgmr.msra.gmra.mrb[64].mxu0 %v24977_v41  ;;  %v26891_v41 = vld [vmem:[#allocation41_spill] sm:$0xff] }
 0x361   :  { %22257 = vmatpush3.bf16.msra.mxu0 %v26887_v47  ;;  %22275 = vmatpush3.bf16.msra.mxu1 %v26888_v0 }
 0x362   :  { %22258 = vmatprep.subr.bf16.mxu0 %v26802_v43  ;;  %22276 = vmatprep.subr.bf16.mxu1 %v26802_v43 }
 0x363   :  { %19313 = vmatprep.mubr.msk.f32.mxu0 %vm23798_vm0, %v26805_v12 }
 0x365   :  { %22260 = vmatpush3.bf16.msra.mxu0 %v26889_v28  ;;  %22278 = vmatpush3.bf16.msra.mxu1 %v26890_v3 }
 0x366   :  { %22261 = vmatprep.subr.bf16.mxu0 %v26802_v43  ;;  %22291 = vmatprep.subr.bf16.mxu1 %v26802_v43 }
 0x368   :  { %19333 = vmatmul.mubr.f32.vlgmr.msra.gmra.mrb[66].mxu1 %v25038_v29 }
 0x369   :  { %22263 = vmatpush3.bf16.msra.mxu0 %v26891_v41  ;;  %22293 = vmatpush3.bf16.msra.mxu1 %v26887_v47 }
 0x36a   :  { %22264 = vmatprep.subr.bf16.mxu0 %v26802_v43  ;;  %22294 = vmatprep.subr.bf16.mxu1 %v26802_v43 }
 0x36b   :  { %19370 = vmatprep.mubr.msk.f32.mxu1 %vm23798_vm0, %v26805_v12 }
 0x36d   :  { %22266 = vmatpush3.bf16.msra.mxu0 %v26892_v23  ;;  %22296 = vmatpush3.bf16.msra.mxu1 %v26889_v28 }
 0x36e   :  { %22279 = vmatprep.subr.bf16.mxu0 %v26802_v43  ;;  %22297 = vmatprep.subr.bf16.mxu1 %v26802_v43 }
 0x370   :  { %19314 = vmatmul.mubr.f32.vlgmr.msra.gmra.mrb[66].mxu0 %v25076_v30  ;;  %v26895_v30 = vld [vmem:[#allocation49_spill] sm:$0xff] }
 0x371   :  { %22281 = vmatpush3.bf16.msra.mxu0 %v26893_v56  ;;  %22299 = vmatpush3.bf16.msra.mxu1 %v26891_v41 }
 0x372   :  { %22282 = vmatprep.subr.bf16.mxu0 %v26802_v43  ;;  %22300 = vmatprep.subr.bf16.mxu1 %v26802_v43 }
 0x373   :  { %19351 = vmatprep.mubr.msk.f32.mxu0 %vm23798_vm0, %v26805_v12 }
 0x375   :  { %22284 = vmatpush3.bf16.msra.mxu0 %v26894_v50  ;;  %22302 = vmatpush3.bf16.msra.mxu1 %v26892_v23  ;;  %v26896_v50 = vld [vmem:[#allocation50_spill] sm:$0xff] }
 0x376   :  { %22285 = vmatprep.subr.bf16.mxu0 %v26802_v43  ;;  %22315 = vmatprep.subr.bf16.mxu1 %v26802_v43 }
 0x378   :  { %19371 = vmatmul.mubr.f32.vlgmr.msra.gmra.mrb[68].mxu1 %v25059_v2  ;;  %v26897_v2 = vld [vmem:[#allocation51_spill] sm:$0xff] }
 0x379   :  { %22287 = vmatpush3.bf16.msra.mxu0 %v26895_v30  ;;  %22317 = vmatpush3.bf16.msra.mxu1 %v26887_v47  ;;  %v26902_v30 = vld [vmem:[#allocation17_spill] sm:$0xff] }
 0x37a   :  { %22288 = vmatprep.subr.bf16.mxu0 %v26802_v43  ;;  %22318 = vmatprep.subr.bf16.mxu1 %v26802_v43 }
 0x37b   :  { %19408 = vmatprep.mubr.msk.f32.mxu1 %vm23798_vm0, %v26805_v12 }
 0x37d   :  { %22290 = vmatpush3.bf16.msra.mxu0 %v26896_v50  ;;  %22320 = vmatpush3.bf16.msra.mxu1 %v26889_v28  ;;  %v26898_v50 = vld [vmem:[#allocation52_spill] sm:$0xff] }
 0x37e   :  { %22303 = vmatprep.subr.bf16.mxu0 %v26802_v43  ;;  %22321 = vmatprep.subr.bf16.mxu1 %v26802_v43 }
 0x380   :  { %19352 = vmatmul.mubr.f32.vlgmr.msra.gmra.mrb[68].mxu0 %v25049_v40  ;;  %v26899_v40 = vld [vmem:[#allocation53_spill] sm:$0xff] }
 0x381   :  { %22305 = vmatpush3.bf16.msra.mxu0 %v26897_v2  ;;  %22323 = vmatpush3.bf16.msra.mxu1 %v26891_v41  ;;  %v26900_v2 = vld [vmem:[#allocation16_spill] sm:$0xff] }
 0x382   :  { %22306 = vmatprep.subr.bf16.mxu0 %v26802_v43  ;;  %22324 = vmatprep.subr.bf16.mxu1 %v26802_v43 }
 0x383   :  { %19389 = vmatprep.mubr.msk.f32.mxu0 %vm23798_vm0, %v26805_v12 }
 0x385   :  { %22308 = vmatpush3.bf16.msra.mxu0 %v26898_v50  ;;  %22326 = vmatpush3.bf16.msra.mxu1 %v26892_v23  ;;  %v26901_v50 = vld [vmem:[#allocation54_spill] sm:$0xff] }
 0x386   :  { %22309 = vmatprep.subr.bf16.mxu0 %v26802_v43  ;;  %22339 = vmatprep.subr.bf16.mxu1 %v26802_v43 }
 0x388   :  { %19409 = vmatmul.mubr.f32.vlgmr.msra.gmra.mrb[70].mxu1 %v25038_v29 }
 0x389   :  { %22311 = vmatpush3.bf16.msra.mxu0 %v26899_v40  ;;  %22341 = vmatpush3.bf16.msra.mxu1 %v26900_v2  ;;  %v26903_v2 = vld [vmem:[#allocation18_spill] sm:$0xff] }
 0x38a   :  { %22312 = vmatprep.subr.bf16.mxu0 %v26802_v43  ;;  %22342 = vmatprep.subr.bf16.mxu1 %v26802_v43 }
 0x38b   :  { %19446 = vmatprep.mubr.msk.f32.mxu1 %vm23798_vm0, %v26805_v12 }
 0x38d   :  { %22314 = vmatpush3.bf16.msra.mxu0 %v26901_v50  ;;  %22344 = vmatpush3.bf16.msra.mxu1 %v26902_v30  ;;  %v26904_v30 = vld [vmem:[#allocation19_spill] sm:$0xff] }
 0x38e   :  { %22327 = vmatprep.subr.bf16.mxu0 %v26802_v43  ;;  %22345 = vmatprep.subr.bf16.mxu1 %v26802_v43 }
 0x390   :  { %19390 = vmatmul.mubr.f32.vlgmr.msra.gmra.mrb[70].mxu0 %v25038_v29 }
 0x391   :  { %22329 = vmatpush3.bf16.msra.mxu0 %v23937_v16  ;;  %22347 = vmatpush3.bf16.msra.mxu1 %v26903_v2 }
 0x392   :  { %22330 = vmatprep.subr.bf16.mxu0 %v26802_v43  ;;  %22348 = vmatprep.subr.bf16.mxu1 %v26802_v43 }
 0x393   :  { %19427 = vmatprep.mubr.msk.f32.mxu0 %vm23798_vm0, %v26805_v12 }
 0x395   :  { %22332 = vmatpush3.bf16.msra.mxu0 %v23943_v19  ;;  %22350 = vmatpush3.bf16.msra.mxu1 %v26904_v30 }
 0x396   :  { %22333 = vmatprep.subr.bf16.mxu0 %v26802_v43  ;;  %22363 = vmatprep.subr.bf16.mxu1 %v26802_v43 }
 0x399   :  { %22335 = vmatpush3.bf16.msra.mxu0 %v23955_v27 }
 0x39a   :  { %22336 = vmatprep.subr.bf16.mxu0 %v26802_v43 }
 0x39d   :  { %22338 = vmatpush3.bf16.msra.mxu0 %v23991_v48 }
 0x39e   :  { %22351 = vmatprep.subr.bf16.mxu0 %v26802_v43 }
 0x3ab   :  { %v4669_v29 = vpop.f32.mrb[48].mxu1 }
 0x3ac   :  { %v18992_v2 = vpop.f32.mrb[49].mxu1 }
 0x3b3   :  { %v4558_v50 = vpop.f32.mrb[48].mxu0 }
 0x3b4   :  { %v4670_v40 = vadd.f32 %v4669_v29, %v4558_v50  ;;  %v18973_v56 = vpop.f32.mrb[49].mxu0 }
 0x3bb   :  { %v4838_v23 = vpop.f32.mrb[50].mxu1 }
 0x3bc   :  { %v19030_v41 = vpop.f32.mrb[51].mxu1 }
 0x3c3   :  { %v4757_v30 = vpop.f32.mrb[50].mxu0 }
 0x3c4   :  { %v4758_v3 = vadd.f32 %v4757_v30, %v4670_v40  ;;  %v19011_v28 = vpop.f32.mrb[51].mxu0 }
 0x3c6   :  { %v4839_v0 = vadd.f32 %v4838_v23, %v4758_v3 }
 0x3cb   :  { %v5012_v47 = vpop.f32.mrb[52].mxu1 }
 0x3cc   :  { %v19068_v25 = vpop.f32.mrb[53].mxu1 }
 0x3d3   :  { %v4933_v51 = vpop.f32.mrb[52].mxu0 }
 0x3d4   :  { %v4934_v1 = vadd.f32 %v4933_v51, %v4839_v0  ;;  %v19049_v26 = vpop.f32.mrb[53].mxu0  ;;  %v25288_v51 = vpop.permute.xlu1 %6634 }
 0x3d5   :  { %vm6636_vm12 = vcmp.eq.s32.totalorder %v25288_v51, 1  ;;  %v26907_v51 = vld [vmem:[#allocation32_spill] sm:$0xff] }
 0x3d6   :  { %v5013_v17 = vadd.f32 %v5012_v47, %v4934_v1 }
 0x3db   :  { %v5209_v37 = vpop.f32.mrb[54].mxu1 }
 0x3dc   :  { %v19106_v33 = vpop.f32.mrb[55].mxu1 }
 0x3e3   :  { %v5098_v7 = vpop.f32.mrb[54].mxu0 }
 0x3e4   :  { %v5099_v21 = vadd.f32 %v5098_v7, %v5013_v17  ;;  %v19087_v2 = vpop.f32.mrb[55].mxu0 }
 0x3e6   :  { %v5210_v18 = vadd.f32 %v5209_v37, %v5099_v21  ;;  %v25294_v21 = vld [vmem:[%s26674_s3] ss:$0 sm:$0xff] }
 0x3eb   :  { %v5378_v50 = vpop.f32.mrb[56].mxu1 }
 0x3ec   :  { %v19144_v56 = vpop.f32.mrb[57].mxu1 }
 0x3f3   :  { %v5297_v29 = vpop.f32.mrb[56].mxu0 }
 0x3f4   :  { %v5298_v41 = vadd.f32 %v5297_v29, %v5210_v18  ;;  %v19125_v8 = vpop.f32.mrb[57].mxu0 }
 0x3f6   :  { %v5379_v30 = vadd.f32 %v5378_v50, %v5298_v41 }
 0x3fb   :  { %v5552_v28 = vpop.f32.mrb[58].mxu1 }
 0x3fc   :  { %v19182_v3 = vpop.f32.mrb[59].mxu1 }
 0x403   :  { %v5473_v23 = vpop.f32.mrb[58].mxu0 }
 0x404   :  { %v5474_v25 = vadd.f32 %v5473_v23, %v5379_v30  ;;  %v19163_v40 = vpop.f32.mrb[59].mxu0 }
 0x406   :  { %v5553_v26 = vadd.f32 %v5552_v28, %v5474_v25 }
 0x408   :  { %v5556_v7 = vadd.f32 %v25294_v21, %v5553_v26  ;;  %v7183_v26 = vsel %vm137_vm1, %v25044_v11, 0 }
 0x40a   :  { %v25300_v8 = vsel %vm6636_vm12, %v5556_v7, %v24973_v31  ;;  %v25365_v7 = vand.u32 4294901760, %v7183_v26 }
 0x40b   :  { %v6643_v18 = vsel %vm137_vm1, %v25300_v8, 0  ;;  %v5747_v33 = vpop.f32.mrb[60].mxu1 }
 0x40c   :  { %v25304_v37 = vand.u32 4294901760, %v6643_v18  ;;  %v19220_v17 = vpop.f32.mrb[61].mxu1 }
 0x40d   :  { %v25372_v17 = vsub.f32 %v7183_v26, %v25365_v7 }
 0x40e   :  { %v25307_v1 = vsub.f32 %v6643_v18, %v25304_v37  ;;  %19447 = vmatmul.mubr.f32.vlgmr.msra.gmra.mrb[72].mxu1 %v25304_v37 }
 0x40f   :  { %22365 = vmatpush3.bf16.msra.mxu1 %v23937_v16  ;;  %19484 = vmatprep.mubr.msk.f32.mxu1 %vm23798_vm0, %v26805_v12 }
 0x410   :  { %22366 = vmatprep.subr.bf16.mxu1 %v26802_v43  ;;  %v25315_v31 = vand.u32 4294901760, %v25307_v1 }
 0x412   :  { %v6721_v47 = vsub.f32 %v25307_v1, %v25315_v31 }
 0x413   :  { %22368 = vmatpush3.bf16.msra.mxu1 %v23943_v19  ;;  %v5636_v0 = vpop.f32.mrb[60].mxu0 }
 0x414   :  { %v5748_v2 = vadd.f32 %v5747_v33, %v5636_v0  ;;  %v19201_v50 = vpop.f32.mrb[61].mxu0  ;;  %22369 = vmatprep.subr.bf16.mxu1 %v26802_v43  ;;  %v25321_v56 = vand.u32 4294901760, %v6721_v47  ;;  %v25382_v0 = vand.u32 4294901760, %v25372_v17 }
 0x416   :  { %19428 = vmatmul.mubr.f32.vlgmr.msra.gmra.mrb[72].mxu0 %v25321_v56 }
 0x417   :  { %22353 = vmatpush3.bf16.msra.mxu0 %v24011_v55  ;;  %22371 = vmatpush3.bf16.msra.mxu1 %v23955_v27 }
 0x418   :  { %22354 = vmatprep.subr.bf16.mxu0 %v26802_v43  ;;  %22372 = vmatprep.subr.bf16.mxu1 %v26802_v43 }
 0x419   :  { %19465 = vmatprep.mubr.msk.f32.mxu0 %vm23798_vm0, %v26805_v12 }
 0x41b   :  { %22356 = vmatpush3.bf16.msra.mxu0 %v24022_v59  ;;  %22374 = vmatpush3.bf16.msra.mxu1 %v23991_v48  ;;  %v5916_v29 = vpop.f32.mrb[62].mxu1 }
 0x41c   :  { %v19258_v41 = vpop.f32.mrb[63].mxu1  ;;  %22357 = vmatprep.subr.bf16.mxu0 %v26802_v43  ;;  %22387 = vmatprep.subr.bf16.mxu1 %v26802_v43 }
 0x41e   :  { %19485 = vmatmul.mubr.f32.vlgmr.msra.gmra.mrb[74].mxu1 %v25315_v31 }
 0x41f   :  { %22359 = vmatpush3.bf16.msra.mxu0 %v24032_v60  ;;  %22389 = vmatpush3.bf16.msra.mxu1 %v23937_v16 }
 0x420   :  { %22360 = vmatprep.subr.bf16.mxu0 %v26802_v43  ;;  %22390 = vmatprep.subr.bf16.mxu1 %v26802_v43 }
 0x421   :  { %19522 = vmatprep.mubr.msk.f32.mxu1 %vm23798_vm0, %v26805_v12 }
 0x423   :  { %22362 = vmatpush3.bf16.msra.mxu0 %v24041_v61  ;;  %22392 = vmatpush3.bf16.msra.mxu1 %v23943_v19  ;;  %v5835_v30 = vpop.f32.mrb[62].mxu0 }
 0x424   :  { %v5836_v28 = vadd.f32 %v5835_v30, %v5748_v2  ;;  %v19239_v3 = vpop.f32.mrb[63].mxu0  ;;  %22375 = vmatprep.subr.bf16.mxu0 %v26802_v43  ;;  %22393 = vmatprep.subr.bf16.mxu1 %v26802_v43 }
 0x426   :  { %19466 = vmatmul.mubr.f32.vlgmr.msra.gmra.mrb[74].mxu0 %v25307_v1  ;;  %v5917_v23 = vadd.f32 %v5916_v29, %v5836_v28  ;;  %v7261_v29 = vsub.f32 %v25372_v17, %v25382_v0 }
 0x427   :  { %22377 = vmatpush3.bf16.msra.mxu0 %v24053_v62  ;;  %22395 = vmatpush3.bf16.msra.mxu1 %v23955_v27 }
 0x428   :  { %22378 = vmatprep.subr.bf16.mxu0 %v26802_v43  ;;  %22396 = vmatprep.subr.bf16.mxu1 %v26802_v43  ;;  %v25397_v41 = vand.u32 4294901760, %v7261_v29 }
 0x429   :  { %19503 = vmatprep.mubr.msk.f32.mxu0 %vm23798_vm0, %v26805_v12 }
 0x42b   :  { %22380 = vmatpush3.bf16.msra.mxu0 %v24064_v6  ;;  %22398 = vmatpush3.bf16.msra.mxu1 %v23991_v48  ;;  %v6090_v25 = vpop.f32.mrb[64].mxu1 }
 0x42c   :  { %v19296_v40 = vpop.f32.mrb[65].mxu1  ;;  %22381 = vmatprep.subr.bf16.mxu0 %v26802_v43  ;;  %22411 = vmatprep.subr.bf16.mxu1 %v26802_v43 }
 0x42e   :  { %19523 = vmatmul.mubr.f32.vlgmr.msra.gmra.mrb[76].mxu1 %v25304_v37 }
 0x42f   :  { %22383 = vmatpush3.bf16.msra.mxu0 %v24080_v13  ;;  %22413 = vmatpush3.bf16.msra.mxu1 %v24159_v63 }
 0x430   :  { %22384 = vmatprep.subr.bf16.mxu0 %v26802_v43  ;;  %22414 = vmatprep.subr.bf16.mxu1 %v26802_v43 }
 0x431   :  { %19560 = vmatprep.mubr.msk.f32.mxu1 %vm23798_vm0, %v26805_v12 }
 0x433   :  { %22386 = vmatpush3.bf16.msra.mxu0 %v24101_v24  ;;  %22416 = vmatpush3.bf16.msra.mxu1 %v24180_v14  ;;  %v6011_v18 = vpop.f32.mrb[64].mxu0 }
 0x434   :  { %v6012_v33 = vadd.f32 %v6011_v18, %v5917_v23  ;;  %v19277_v11 = vpop.f32.mrb[65].mxu0  ;;  %22399 = vmatprep.subr.bf16.mxu0 %v26802_v43  ;;  %22417 = vmatprep.subr.bf16.mxu1 %v26802_v43 }
 0x436   :  { %19504 = vmatmul.mubr.f32.vlgmr.msra.gmra.mrb[76].mxu0 %v25304_v37  ;;  %v6091_v47 = vadd.f32 %v6090_v25, %v6012_v33 }
 0x437   :  { %22401 = vmatpush3.bf16.msra.mxu0 %v24121_v35  ;;  %22419 = vmatpush3.bf16.msra.mxu1 %v24205_v39 }
 0x438   :  { %22402 = vmatprep.subr.bf16.mxu0 %v26802_v43  ;;  %22420 = vmatprep.subr.bf16.mxu1 %v26802_v43 }
 0x439   :  { %19541 = vmatprep.mubr.msk.f32.mxu0 %vm23798_vm0, %v26805_v12 }
 0x43b   :  { %22404 = vmatpush3.bf16.msra.mxu0 %v24140_v45  ;;  %22422 = vmatpush3.bf16.msra.mxu1 %v24213_v53  ;;  %v6284_v2 = vpop.f32.mrb[66].mxu1 }
 0x43c   :  { %22405 = vmatprep.subr.bf16.mxu0 %v26802_v43  ;;  %22435 = vmatprep.subr.bf16.mxu1 %v26802_v43  ;;  %v19334_v50 = vpop.f32.mrb[67].mxu1 }
 0x43e   :  { %19561 = vmatmul.mubr.f32.vlgmr.msra.gmra.mrb[78].mxu1 %v25365_v7 }
 0x43f   :  { %22407 = vmatpush3.bf16.msra.mxu0 %v24149_v52  ;;  %22437 = vmatpush3.bf16.msra.mxu1 %v24121_v35 }
 0x440   :  { %22408 = vmatprep.subr.bf16.mxu0 %v26802_v43  ;;  %22438 = vmatprep.subr.bf16.mxu1 %v26802_v43 }
 0x441   :  { %19598 = vmatprep.mubr.msk.f32.mxu1 %vm23798_vm0, %v26805_v12 }
 0x443   :  { %22410 = vmatpush3.bf16.msra.mxu0 %v24178_v10  ;;  %22440 = vmatpush3.bf16.msra.mxu1 %v24140_v45  ;;  %v6173_v30 = vpop.f32.mrb[66].mxu0 }
 0x444   :  { %v6174_v28 = vadd.f32 %v6173_v30, %v6091_v47  ;;  %22423 = vmatprep.subr.bf16.mxu0 %v26802_v43  ;;  %22441 = vmatprep.subr.bf16.mxu1 %v26802_v43  ;;  %v19315_v3 = vpop.f32.mrb[67].mxu0 }
 0x446   :  { %v6285_v23 = vadd.f32 %v6284_v2, %v6174_v28  ;;  %19542 = vmatmul.mubr.f32.vlgmr.msra.gmra.mrb[78].mxu0 %v25397_v41 }
 0x447   :  { %22425 = vmatpush3.bf16.msra.mxu0 %v24201_v36  ;;  %22443 = vmatpush3.bf16.msra.mxu1 %v24149_v52 }
 0x448   :  { %22426 = vmatprep.subr.bf16.mxu0 %v26802_v43  ;;  %22444 = vmatprep.subr.bf16.mxu1 %v26802_v43 }
 0x449   :  { %19579 = vmatprep.mubr.msk.f32.mxu0 %vm23798_vm0, %v26805_v12 }
 0x44b   :  { %22428 = vmatpush3.bf16.msra.mxu0 %v24217_v57  ;;  %22446 = vmatpush3.bf16.msra.mxu1 %v24178_v10  ;;  %v6453_v25 = vpop.f32.mrb[68].mxu1 }
 0x44c   :  { %22429 = vmatprep.subr.bf16.mxu0 %v26802_v43  ;;  %22459 = vmatprep.subr.bf16.mxu1 %v26802_v43  ;;  %v19372_v40 = vpop.f32.mrb[69].mxu1 }
 0x44d   :  { %v26911_v40 = vld [vmem:[#allocation36_spill] sm:$0xff] }
 0x44e   :  { %19599 = vmatmul.mubr.f32.vlgmr.msra.gmra.mrb[80].mxu1 %v25382_v0 }
 0x44f   :  { %22431 = vmatpush3.bf16.msra.mxu0 %v24228_v4  ;;  %22461 = vmatpush3.bf16.msra.mxu1 %v24121_v35 }
 0x450   :  { %22432 = vmatprep.subr.bf16.mxu0 %v26802_v43  ;;  %22462 = vmatprep.subr.bf16.mxu1 %v26802_v43 }
 0x451   :  { %19636 = vmatprep.mubr.msk.f32.mxu1 %vm23798_vm0, %v26805_v12 }
 0x453   :  { %22434 = vmatpush3.bf16.msra.mxu0 %v24237_v9  ;;  %22464 = vmatpush3.bf16.msra.mxu1 %v24140_v45  ;;  %v6372_v26 = vpop.f32.mrb[68].mxu0 }
 0x454   :  { %v6373_v18 = vadd.f32 %v6372_v26, %v6285_v23  ;;  %22447 = vmatprep.subr.bf16.mxu0 %v26802_v43  ;;  %22465 = vmatprep.subr.bf16.mxu1 %v26802_v43  ;;  %v19353_v33 = vpop.f32.mrb[69].mxu0  ;;  %v26913_v26 = vld [vmem:[#allocation42_spill] sm:$0xff] }
 0x455   :  { %v26915_v33 = vld [vmem:[#allocation44_spill] sm:$0xff] }
 0x456   :  { %v6454_v11 = vadd.f32 %v6453_v25, %v6373_v18  ;;  %19580 = vmatmul.mubr.f32.vlgmr.msra.gmra.mrb[80].mxu0 %v25372_v17  ;;  %v26909_v25 = vld [vmem:[#allocation34_spill] sm:$0xff] }
 0x457   :  { %22449 = vmatpush3.bf16.msra.mxu0 %v24249_v15  ;;  %22467 = vmatpush3.bf16.msra.mxu1 %v24149_v52  ;;  %v26914_v18 = vld [vmem:[#allocation38_spill] sm:$0xff] }
 0x458   :  { %22450 = vmatprep.subr.bf16.mxu0 %v26802_v43  ;;  %22468 = vmatprep.subr.bf16.mxu1 %v26802_v43 }
 0x459   :  { %19617 = vmatprep.mubr.msk.f32.mxu0 %vm23798_vm0, %v26805_v12 }
 0x45b   :  { %22452 = vmatpush3.bf16.msra.mxu0 %v26850_v32  ;;  %22470 = vmatpush3.bf16.msra.mxu1 %v24178_v10  ;;  %v6627_v47 = vpop.f32.mrb[70].mxu1 }
 0x45c   :  { %22453 = vmatprep.subr.bf16.mxu0 %v26802_v43  ;;  %22483 = vmatprep.subr.bf16.mxu1 %v26802_v43  ;;  %v19410_v2 = vpop.f32.mrb[71].mxu1 }
 0x45d   :  { %v26918_v2 = vld [vmem:[#allocation40_spill] sm:$0xff] }
 0x45e   :  { %19637 = vmatmul.mubr.f32.vlgmr.msra.gmra.mrb[82].mxu1 %v25365_v7 }
 0x45f   :  { %22455 = vmatpush3.bf16.msra.mxu0 %v26851_v58  ;;  %22485 = vmatpush3.bf16.msra.mxu1 %v26852_v38 }
 0x460   :  { %22456 = vmatprep.subr.bf16.mxu0 %v26802_v43  ;;  %22486 = vmatprep.subr.bf16.mxu1 %v26802_v43 }
 0x461   :  { %19674 = vmatprep.mubr.msk.f32.mxu1 %vm23798_vm0, %v26805_v12 }
 0x463   :  { %22458 = vmatpush3.bf16.msra.mxu0 %v26853_v22  ;;  %22488 = vmatpush3.bf16.msra.mxu1 %v26854_v34  ;;  %v6548_v50 = vpop.f32.mrb[70].mxu0 }
 0x464   :  { %v6549_v29 = vadd.f32 %v6548_v50, %v6454_v11  ;;  %22471 = vmatprep.subr.bf16.mxu0 %v26802_v43  ;;  %22489 = vmatprep.subr.bf16.mxu1 %v26802_v43  ;;  %v19391_v30 = vpop.f32.mrb[71].mxu0  ;;  %v26916_v11 = vld [vmem:[#allocation39_spill] sm:$0xff] }
 0x465   :  { %v26919_v50 = vld [vmem:[#allocation47_spill] sm:$0xff]  ;;  %v26922_v30 = vld [vmem:[#allocation46_spill] sm:$0xff] }
 0x466   :  { %v6628_v28 = vadd.f32 %v6627_v47, %v6549_v29  ;;  %19618 = vmatmul.mubr.f32.vlgmr.msra.gmra.mrb[82].mxu0 %v25365_v7  ;;  %v26917_v47 = vld [vmem:[#allocation45_spill] sm:$0xff]  ;;  %v26921_v29 = vld [vmem:[#allocation43_spill] sm:$0xff] }
 0x467   :  { %22473 = vmatpush3.bf16.msra.mxu0 %v26855_v20  ;;  %22491 = vmatpush3.bf16.msra.mxu1 %v26856_v49 }
 0x468   :  { %v6631_v3 = vadd.f32 %v25125_v5, %v6628_v28  ;;  %22474 = vmatprep.subr.bf16.mxu0 %v26802_v43  ;;  %22492 = vmatprep.subr.bf16.mxu1 %v26802_v43  ;;  %v26905_v5 = vld [vmem:[#allocation27_spill] sm:$0xff]  ;;  %v26923_v28 = vld [vmem:[#allocation48_spill] sm:$0xff] }
 0x469   :  { %19655 = vmatprep.mubr.msk.f32.mxu0 %vm23798_vm0, %v26805_v12 }
 0x46a   :  { %v25458_v23 = vsel %vm6636_vm12, %v6631_v3, %v25146_v42  ;;  %v26906_v42 = vld [vmem:[#allocation30_spill] sm:$0xff] }
 0x46b   :  { %22476 = vmatpush3.bf16.msra.mxu0 %v26857_v46  ;;  %22494 = vmatpush3.bf16.msra.mxu1 %v26858_v54  ;;  %v26925_v3 = vld [vmem:[#allocation50_spill] sm:$0xff] }
 0x46c   :  { %22477 = vmatprep.subr.bf16.mxu0 %v26802_v43  ;;  %22507 = vmatprep.subr.bf16.mxu1 %v26802_v43 }
 0x46e   :  { %19675 = vmatmul.mubr.f32.vlgmr.msra.gmra.mrb[84].mxu1 %v25304_v37 }
 0x46f   :  { %22479 = vmatpush3.bf16.msra.mxu0 %v26859_v44  ;;  %22509 = vmatpush3.bf16.msra.mxu1 %v26855_v20 }
 0x470   :  { %22480 = vmatprep.subr.bf16.mxu0 %v26802_v43  ;;  %22510 = vmatprep.subr.bf16.mxu1 %v26802_v43 }
 0x471   :  { %19712 = vmatprep.mubr.msk.f32.mxu1 %vm23798_vm0, %v26805_v12 }
 0x473   :  { %22482 = vmatpush3.bf16.msra.mxu0 %v26905_v5  ;;  %22512 = vmatpush3.bf16.msra.mxu1 %v26857_v46 }
 0x474   :  { %22495 = vmatprep.subr.bf16.mxu0 %v26802_v43  ;;  %22513 = vmatprep.subr.bf16.mxu1 %v26802_v43 }
 0x476   :  { %19656 = vmatmul.mubr.f32.vlgmr.msra.gmra.mrb[84].mxu0 %v25321_v56  ;;  %v26908_v56 = vld [vmem:[#allocation33_spill] sm:$0xff] }
 0x477   :  { %22497 = vmatpush3.bf16.msra.mxu0 %v26906_v42  ;;  %22515 = vmatpush3.bf16.msra.mxu1 %v26859_v44 }
 0x478   :  { %22498 = vmatprep.subr.bf16.mxu0 %v26802_v43  ;;  %22516 = vmatprep.subr.bf16.mxu1 %v26802_v43 }
 0x479   :  { %19693 = vmatprep.mubr.msk.f32.mxu0 %vm23798_vm0, %v26805_v12 }
 0x47b   :  { %22500 = vmatpush3.bf16.msra.mxu0 %v26907_v51  ;;  %22518 = vmatpush3.bf16.msra.mxu1 %v26905_v5 }
 0x47c   :  { %22501 = vmatprep.subr.bf16.mxu0 %v26802_v43  ;;  %22531 = vmatprep.subr.bf16.mxu1 %v26802_v43 }
 0x47e   :  { %19713 = vmatmul.mubr.f32.vlgmr.msra.gmra.mrb[86].mxu1 %v25315_v31  ;;  %v26910_v31 = vld [vmem:[#allocation35_spill] sm:$0xff] }
 0x47f   :  { %22503 = vmatpush3.bf16.msra.mxu0 %v26908_v56  ;;  %22533 = vmatpush3.bf16.msra.mxu1 %v26855_v20 }
 0x480   :  { %22504 = vmatprep.subr.bf16.mxu0 %v26802_v43  ;;  %22534 = vmatprep.subr.bf16.mxu1 %v26802_v43 }
 0x481   :  { %19750 = vmatprep.mubr.msk.f32.mxu1 %vm23798_vm0, %v26805_v12 }
 0x483   :  { %22506 = vmatpush3.bf16.msra.mxu0 %v26909_v25  ;;  %22536 = vmatpush3.bf16.msra.mxu1 %v26857_v46 }
 0x484   :  { %22519 = vmatprep.subr.bf16.mxu0 %v26802_v43  ;;  %22537 = vmatprep.subr.bf16.mxu1 %v26802_v43 }
 0x486   :  { %19694 = vmatmul.mubr.f32.vlgmr.msra.gmra.mrb[86].mxu0 %v25307_v1  ;;  %v26912_v1 = vld [vmem:[#allocation37_spill] sm:$0xff] }
 0x487   :  { %22521 = vmatpush3.bf16.msra.mxu0 %v26910_v31  ;;  %22539 = vmatpush3.bf16.msra.mxu1 %v26859_v44 }
 0x488   :  { %22522 = vmatprep.subr.bf16.mxu0 %v26802_v43  ;;  %22540 = vmatprep.subr.bf16.mxu1 %v26802_v43 }
 0x489   :  { %19731 = vmatprep.mubr.msk.f32.mxu0 %vm23798_vm0, %v26805_v12 }
 0x48b   :  { %22524 = vmatpush3.bf16.msra.mxu0 %v26911_v40  ;;  %22542 = vmatpush3.bf16.msra.mxu1 %v26905_v5 }
 0x48c   :  { %22525 = vmatprep.subr.bf16.mxu0 %v26802_v43  ;;  %22555 = vmatprep.subr.bf16.mxu1 %v26802_v43 }
 0x48e   :  { %19751 = vmatmul.mubr.f32.vlgmr.msra.gmra.mrb[88].mxu1 %v25304_v37 }
 0x48f   :  { %22527 = vmatpush3.bf16.msra.mxu0 %v26912_v1  ;;  %22557 = vmatpush3.bf16.msra.mxu1 %v26913_v26 }
 0x490   :  { %22528 = vmatprep.subr.bf16.mxu0 %v26802_v43  ;;  %22558 = vmatprep.subr.bf16.mxu1 %v26802_v43 }
 0x491   :  { %19788 = vmatprep.mubr.msk.f32.mxu1 %vm23798_vm0, %v26805_v12 }
 0x493   :  { %22530 = vmatpush3.bf16.msra.mxu0 %v26914_v18  ;;  %22560 = vmatpush3.bf16.msra.mxu1 %v26915_v33 }
 0x494   :  { %22543 = vmatprep.subr.bf16.mxu0 %v26802_v43  ;;  %22561 = vmatprep.subr.bf16.mxu1 %v26802_v43 }
 0x496   :  { %19732 = vmatmul.mubr.f32.vlgmr.msra.gmra.mrb[88].mxu0 %v25304_v37  ;;  %v26920_v37 = vld [vmem:[#allocation41_spill] sm:$0xff] }
 0x497   :  { %22545 = vmatpush3.bf16.msra.mxu0 %v26916_v11  ;;  %22563 = vmatpush3.bf16.msra.mxu1 %v26917_v47 }
 0x498   :  { %22546 = vmatprep.subr.bf16.mxu0 %v26802_v43  ;;  %22564 = vmatprep.subr.bf16.mxu1 %v26802_v43 }
 0x499   :  { %19769 = vmatprep.mubr.msk.f32.mxu0 %vm23798_vm0, %v26805_v12 }
 0x49b   :  { %22548 = vmatpush3.bf16.msra.mxu0 %v26918_v2  ;;  %22566 = vmatpush3.bf16.msra.mxu1 %v26919_v50 }
 0x49c   :  { %22549 = vmatprep.subr.bf16.mxu0 %v26802_v43  ;;  %22579 = vmatprep.subr.bf16.mxu1 %v26802_v43 }
 0x49e   :  { %19789 = vmatmul.mubr.f32.vlgmr.msra.gmra.mrb[90].mxu1 %v25365_v7 }
 0x49f   :  { %22551 = vmatpush3.bf16.msra.mxu0 %v26920_v37  ;;  %22581 = vmatpush3.bf16.msra.mxu1 %v26916_v11 }
 0x4a0   :  { %22552 = vmatprep.subr.bf16.mxu0 %v26802_v43  ;;  %22582 = vmatprep.subr.bf16.mxu1 %v26802_v43 }
 0x4a1   :  { %19826 = vmatprep.mubr.msk.f32.mxu1 %vm23798_vm0, %v26805_v12 }
 0x4a3   :  { %22554 = vmatpush3.bf16.msra.mxu0 %v26921_v29  ;;  %22584 = vmatpush3.bf16.msra.mxu1 %v26918_v2 }
 0x4a4   :  { %22567 = vmatprep.subr.bf16.mxu0 %v26802_v43  ;;  %22585 = vmatprep.subr.bf16.mxu1 %v26802_v43 }
 0x4a6   :  { %19770 = vmatmul.mubr.f32.vlgmr.msra.gmra.mrb[90].mxu0 %v25397_v41  ;;  %v26924_v41 = vld [vmem:[#allocation49_spill] sm:$0xff] }
 0x4a7   :  { %22569 = vmatpush3.bf16.msra.mxu0 %v26922_v30  ;;  %22587 = vmatpush3.bf16.msra.mxu1 %v26920_v37 }
 0x4a8   :  { %22570 = vmatprep.subr.bf16.mxu0 %v26802_v43  ;;  %22588 = vmatprep.subr.bf16.mxu1 %v26802_v43 }
 0x4a9   :  { %19807 = vmatprep.mubr.msk.f32.mxu0 %vm23798_vm0, %v26805_v12 }
 0x4ab   :  { %22572 = vmatpush3.bf16.msra.mxu0 %v26923_v28  ;;  %22590 = vmatpush3.bf16.msra.mxu1 %v26921_v29 }
 0x4ac   :  { %22573 = vmatprep.subr.bf16.mxu0 %v26802_v43  ;;  %22603 = vmatprep.subr.bf16.mxu1 %v26802_v43 }
 0x4ae   :  { %19827 = vmatmul.mubr.f32.vlgmr.msra.gmra.mrb[92].mxu1 %v25382_v0  ;;  %v26926_v0 = vld [vmem:[#allocation51_spill] sm:$0xff] }
 0x4af   :  { %22575 = vmatpush3.bf16.msra.mxu0 %v26924_v41  ;;  %22605 = vmatpush3.bf16.msra.mxu1 %v26916_v11  ;;  %v26931_v41 = vld [vmem:[#allocation17_spill] sm:$0xff] }
 0x4b0   :  { %22576 = vmatprep.subr.bf16.mxu0 %v26802_v43  ;;  %22606 = vmatprep.subr.bf16.mxu1 %v26802_v43 }
 0x4b1   :  { %19864 = vmatprep.mubr.msk.f32.mxu1 %vm23798_vm0, %v26805_v12 }
 0x4b3   :  { %22578 = vmatpush3.bf16.msra.mxu0 %v26925_v3  ;;  %22608 = vmatpush3.bf16.msra.mxu1 %v26918_v2  ;;  %v26927_v3 = vld [vmem:[#allocation52_spill] sm:$0xff] }
 0x4b4   :  { %22591 = vmatprep.subr.bf16.mxu0 %v26802_v43  ;;  %22609 = vmatprep.subr.bf16.mxu1 %v26802_v43 }
 0x4b6   :  { %19808 = vmatmul.mubr.f32.vlgmr.msra.gmra.mrb[92].mxu0 %v25372_v17  ;;  %v26928_v17 = vld [vmem:[#allocation53_spill] sm:$0xff] }
 0x4b7   :  { %22593 = vmatpush3.bf16.msra.mxu0 %v26926_v0  ;;  %22611 = vmatpush3.bf16.msra.mxu1 %v26920_v37  ;;  %v26929_v0 = vld [vmem:[#allocation16_spill] sm:$0xff] }
 0x4b8   :  { %22594 = vmatprep.subr.bf16.mxu0 %v26802_v43  ;;  %22612 = vmatprep.subr.bf16.mxu1 %v26802_v43 }
 0x4b9   :  { %19845 = vmatprep.mubr.msk.f32.mxu0 %vm23798_vm0, %v26805_v12 }
 0x4bb   :  { %22596 = vmatpush3.bf16.msra.mxu0 %v26927_v3  ;;  %22614 = vmatpush3.bf16.msra.mxu1 %v26921_v29  ;;  %v26930_v3 = vld [vmem:[#allocation54_spill] sm:$0xff] }
 0x4bc   :  { %22597 = vmatprep.subr.bf16.mxu0 %v26802_v43  ;;  %22627 = vmatprep.subr.bf16.mxu1 %v26802_v43 }
 0x4be   :  { %19865 = vmatmul.mubr.f32.vlgmr.msra.gmra.mrb[94].mxu1 %v25365_v7 }
 0x4bf   :  { %22599 = vmatpush3.bf16.msra.mxu0 %v26928_v17  ;;  %22629 = vmatpush3.bf16.msra.mxu1 %v26929_v0  ;;  %v26932_v0 = vld [vmem:[#allocation18_spill] sm:$0xff] }
 0x4c0   :  { %22600 = vmatprep.subr.bf16.mxu0 %v26802_v43  ;;  %22630 = vmatprep.subr.bf16.mxu1 %v26802_v43 }
 0x4c1   :  { %19902 = vmatprep.mubr.msk.f32.mxu1 %vm23798_vm0, %v26805_v12 }
 0x4c3   :  { %22602 = vmatpush3.bf16.msra.mxu0 %v26930_v3  ;;  %22632 = vmatpush3.bf16.msra.mxu1 %v26931_v41  ;;  %v26933_v41 = vld [vmem:[#allocation19_spill] sm:$0xff] }
 0x4c4   :  { %22615 = vmatprep.subr.bf16.mxu0 %v26802_v43  ;;  %22633 = vmatprep.subr.bf16.mxu1 %v26802_v43 }
 0x4c6   :  { %19846 = vmatmul.mubr.f32.vlgmr.msra.gmra.mrb[94].mxu0 %v25365_v7 }
 0x4c7   :  { %22617 = vmatpush3.bf16.msra.mxu0 %v23937_v16  ;;  %22635 = vmatpush3.bf16.msra.mxu1 %v26932_v0 }
 0x4c8   :  { %22618 = vmatprep.subr.bf16.mxu0 %v26802_v43  ;;  %22636 = vmatprep.subr.bf16.mxu1 %v26802_v43 }
 0x4c9   :  { %19883 = vmatprep.mubr.msk.f32.mxu0 %vm23798_vm0, %v26805_v12 }
 0x4cb   :  { %22620 = vmatpush3.bf16.msra.mxu0 %v23943_v19  ;;  %22638 = vmatpush3.bf16.msra.mxu1 %v26933_v41 }
 0x4cc   :  { %22621 = vmatprep.subr.bf16.mxu0 %v26802_v43  ;;  %22651 = vmatprep.subr.bf16.mxu1 %v26802_v43 }
 0x4cf   :  { %22623 = vmatpush3.bf16.msra.mxu0 %v23955_v27 }
 0x4d0   :  { %22624 = vmatprep.subr.bf16.mxu0 %v26802_v43 }
 0x4d3   :  { %22626 = vmatpush3.bf16.msra.mxu0 %v23991_v48 }
 0x4d4   :  { %22639 = vmatprep.subr.bf16.mxu0 %v26802_v43 }
 0x4e1   :  { %v6835_v7 = vpop.f32.mrb[72].mxu1 }
 0x4e2   :  { %v19448_v0 = vpop.f32.mrb[73].mxu1 }
 0x4e9   :  { %v6724_v3 = vpop.f32.mrb[72].mxu0 }
 0x4ea   :  { %v6836_v17 = vadd.f32 %v6835_v7, %v6724_v3  ;;  %v19429_v28 = vpop.f32.mrb[73].mxu0 }
 0x4f1   :  { %v7004_v30 = vpop.f32.mrb[74].mxu1 }
 0x4f2   :  { %v19486_v29 = vpop.f32.mrb[75].mxu1 }
 0x4f9   :  { %v6923_v41 = vpop.f32.mrb[74].mxu0 }
 0x4fa   :  { %v6924_v37 = vadd.f32 %v6923_v41, %v6836_v17  ;;  %v19467_v50 = vpop.f32.mrb[75].mxu0 }
 0x4fc   :  { %v7005_v2 = vadd.f32 %v7004_v30, %v6924_v37 }
 0x501   :  { %v7178_v47 = vpop.f32.mrb[76].mxu1 }
 0x502   :  { %v19524_v11 = vpop.f32.mrb[77].mxu1 }
 0x509   :  { %v7099_v33 = vpop.f32.mrb[76].mxu0 }
 0x50a   :  { %v7100_v18 = vadd.f32 %v7099_v33, %v7005_v2  ;;  %v19505_v26 = vpop.f32.mrb[77].mxu0 }
 0x50b   :  { %v25600_v26 = vpop.permute.xlu1 %8800 }
 0x50c   :  { %v7179_v1 = vadd.f32 %v7178_v47, %v7100_v18  ;;  %vm8802_vm13 = vcmp.eq.s32.totalorder %v25600_v26, 1  ;;  %v26935_v26 = vld [vmem:[#allocation32_spill] sm:$0xff] }
 0x511   :  { %v7375_v40 = vpop.f32.mrb[78].mxu1 }
 0x512   :  { %v19562_v31 = vpop.f32.mrb[79].mxu1 }
 0x519   :  { %v7264_v25 = vpop.f32.mrb[78].mxu0 }
 0x51a   :  { %v7265_v56 = vadd.f32 %v7264_v25, %v7179_v1  ;;  %v19543_v0 = vpop.f32.mrb[79].mxu0 }
 0x51c   :  { %v7376_v51 = vadd.f32 %v7375_v40, %v7265_v56 }
 0x521   :  { %v7544_v3 = vpop.f32.mrb[80].mxu1 }
 0x522   :  { %v19600_v28 = vpop.f32.mrb[81].mxu1 }
 0x529   :  { %v7463_v7 = vpop.f32.mrb[80].mxu0 }
 0x52a   :  { %v7464_v29 = vadd.f32 %v7463_v7, %v7376_v51  ;;  %v19581_v42 = vpop.f32.mrb[81].mxu0 }
 0x52c   :  { %v7545_v41 = vadd.f32 %v7544_v3, %v7464_v29 }
 0x531   :  { %v7718_v50 = vpop.f32.mrb[82].mxu1 }
 0x532   :  { %v19638_v37 = vpop.f32.mrb[83].mxu1 }
 0x539   :  { %v7639_v30 = vpop.f32.mrb[82].mxu0 }
 0x53a   :  { %v7640_v11 = vadd.f32 %v7639_v30, %v7545_v41  ;;  %v19619_v17 = vpop.f32.mrb[83].mxu0 }
 0x53c   :  { %v7719_v33 = vadd.f32 %v7718_v50, %v7640_v11  ;;  %v23642_v11 = vld [vmem:[#allocation2 + $0x20] sm:$0xff] }
 0x53d   :  { %v9349_v17 = vsel %vm137_vm1, %v23642_v11, 0 }
 0x53e   :  { %v7722_v31 = vadd.f32 %v25294_v21, %v7719_v33  ;;  %v25671_v33 = vand.u32 4294901760, %v9349_v17 }
 0x540   :  { %v25607_v56 = vsel %vm8802_vm13, %v7722_v31, %v25300_v8 }
 0x541   :  { %v8809_v42 = vsel %vm137_vm1, %v25607_v56, 0  ;;  %v7913_v51 = vpop.f32.mrb[84].mxu1 }
 0x542   :  { %v25611_v25 = vand.u32 4294901760, %v8809_v42  ;;  %v19676_v40 = vpop.f32.mrb[85].mxu1 }
 0x543   :  { %v25678_v40 = vsub.f32 %v9349_v17, %v25671_v33 }
 0x544   :  { %v25614_v1 = vsub.f32 %v8809_v42, %v25611_v25  ;;  %19903 = vmatmul.mubr.f32.vlgmr.msra.gmra.mrb[96].mxu1 %v25611_v25 }
 0x545   :  { %22653 = vmatpush3.bf16.msra.mxu1 %v23937_v16  ;;  %19940 = vmatprep.mubr.msk.f32.mxu1 %vm23798_vm0, %v26805_v12 }
 0x546   :  { %22654 = vmatprep.subr.bf16.mxu1 %v26802_v43  ;;  %v25622_v21 = vand.u32 4294901760, %v25614_v1 }
 0x548   :  { %v8887_v8 = vsub.f32 %v25614_v1, %v25622_v21 }
 0x549   :  { %22656 = vmatpush3.bf16.msra.mxu1 %v23943_v19  ;;  %v7802_v18 = vpop.f32.mrb[84].mxu0 }
 0x54a   :  { %v7914_v47 = vadd.f32 %v7913_v51, %v7802_v18  ;;  %v19657_v2 = vpop.f32.mrb[85].mxu0  ;;  %22657 = vmatprep.subr.bf16.mxu1 %v26802_v43  ;;  %v25628_v0 = vand.u32 4294901760, %v8887_v8  ;;  %v25688_v18 = vand.u32 4294901760, %v25678_v40 }
 0x54c   :  { %19884 = vmatmul.mubr.f32.vlgmr.msra.gmra.mrb[96].mxu0 %v25628_v0 }
 0x54d   :  { %22641 = vmatpush3.bf16.msra.mxu0 %v24011_v55  ;;  %22659 = vmatpush3.bf16.msra.mxu1 %v23955_v27 }
 0x54e   :  { %22642 = vmatprep.subr.bf16.mxu0 %v26802_v43  ;;  %22660 = vmatprep.subr.bf16.mxu1 %v26802_v43 }
 0x54f   :  { %19921 = vmatprep.mubr.msk.f32.mxu0 %vm23798_vm0, %v26805_v12 }
 0x551   :  { %22644 = vmatpush3.bf16.msra.mxu0 %v24022_v59  ;;  %22662 = vmatpush3.bf16.msra.mxu1 %v23991_v48  ;;  %v8082_v3 = vpop.f32.mrb[86].mxu1 }
 0x552   :  { %v19714_v28 = vpop.f32.mrb[87].mxu1  ;;  %22645 = vmatprep.subr.bf16.mxu0 %v26802_v43  ;;  %22675 = vmatprep.subr.bf16.mxu1 %v26802_v43 }
 0x554   :  { %19941 = vmatmul.mubr.f32.vlgmr.msra.gmra.mrb[98].mxu1 %v25622_v21 }
 0x555   :  { %22647 = vmatpush3.bf16.msra.mxu0 %v24032_v60  ;;  %22677 = vmatpush3.bf16.msra.mxu1 %v23937_v16 }
 0x556   :  { %22648 = vmatprep.subr.bf16.mxu0 %v26802_v43  ;;  %22678 = vmatprep.subr.bf16.mxu1 %v26802_v43 }
 0x557   :  { %19978 = vmatprep.mubr.msk.f32.mxu1 %vm23798_vm0, %v26805_v12 }
 0x559   :  { %22650 = vmatpush3.bf16.msra.mxu0 %v24041_v61  ;;  %22680 = vmatpush3.bf16.msra.mxu1 %v23943_v19  ;;  %v8001_v7 = vpop.f32.mrb[86].mxu0 }
 0x55a   :  { %v8002_v29 = vadd.f32 %v8001_v7, %v7914_v47  ;;  %v19695_v41 = vpop.f32.mrb[87].mxu0  ;;  %22663 = vmatprep.subr.bf16.mxu0 %v26802_v43  ;;  %22681 = vmatprep.subr.bf16.mxu1 %v26802_v43 }
 0x55c   :  { %19922 = vmatmul.mubr.f32.vlgmr.msra.gmra.mrb[98].mxu0 %v25614_v1  ;;  %v8083_v50 = vadd.f32 %v8082_v3, %v8002_v29  ;;  %v9427_v3 = vsub.f32 %v25678_v40, %v25688_v18 }
 0x55d   :  { %22665 = vmatpush3.bf16.msra.mxu0 %v24053_v62  ;;  %22683 = vmatpush3.bf16.msra.mxu1 %v23955_v27 }
 0x55e   :  { %22666 = vmatprep.subr.bf16.mxu0 %v26802_v43  ;;  %22684 = vmatprep.subr.bf16.mxu1 %v26802_v43  ;;  %v25703_v28 = vand.u32 4294901760, %v9427_v3 }
 0x55f   :  { %19959 = vmatprep.mubr.msk.f32.mxu0 %vm23798_vm0, %v26805_v12 }
 0x561   :  { %22668 = vmatpush3.bf16.msra.mxu0 %v24064_v6  ;;  %22686 = vmatpush3.bf16.msra.mxu1 %v23991_v48  ;;  %v8256_v37 = vpop.f32.mrb[88].mxu1 }
 0x562   :  { %v19752_v30 = vpop.f32.mrb[89].mxu1  ;;  %22669 = vmatprep.subr.bf16.mxu0 %v26802_v43  ;;  %22699 = vmatprep.subr.bf16.mxu1 %v26802_v43 }
 0x564   :  { %19979 = vmatmul.mubr.f32.vlgmr.msra.gmra.mrb[100].mxu1 %v25611_v25 }
 0x565   :  { %22671 = vmatpush3.bf16.msra.mxu0 %v24080_v13  ;;  %22701 = vmatpush3.bf16.msra.mxu1 %v24159_v63 }
 0x566   :  { %22672 = vmatprep.subr.bf16.mxu0 %v26802_v43  ;;  %22702 = vmatprep.subr.bf16.mxu1 %v26802_v43 }
 0x567   :  { %20016 = vmatprep.mubr.msk.f32.mxu1 %vm23798_vm0, %v26805_v12 }
 0x569   :  { %22674 = vmatpush3.bf16.msra.mxu0 %v24101_v24  ;;  %22704 = vmatpush3.bf16.msra.mxu1 %v24180_v14  ;;  %v8177_v31 = vpop.f32.mrb[88].mxu0 }
 0x56a   :  { %v8178_v42 = vadd.f32 %v8177_v31, %v8083_v50  ;;  %v19733_v51 = vpop.f32.mrb[89].mxu0  ;;  %22687 = vmatprep.subr.bf16.mxu0 %v26802_v43  ;;  %22705 = vmatprep.subr.bf16.mxu1 %v26802_v43 }
 0x56c   :  { %19960 = vmatmul.mubr.f32.vlgmr.msra.gmra.mrb[100].mxu0 %v25611_v25  ;;  %v8257_v8 = vadd.f32 %v8256_v37, %v8178_v42 }
 0x56d   :  { %22689 = vmatpush3.bf16.msra.mxu0 %v24121_v35  ;;  %22707 = vmatpush3.bf16.msra.mxu1 %v24205_v39 }
 0x56e   :  { %22690 = vmatprep.subr.bf16.mxu0 %v26802_v43  ;;  %22708 = vmatprep.subr.bf16.mxu1 %v26802_v43 }
 0x56f   :  { %19997 = vmatprep.mubr.msk.f32.mxu0 %vm23798_vm0, %v26805_v12 }
 0x571   :  { %22692 = vmatpush3.bf16.msra.mxu0 %v24140_v45  ;;  %22710 = vmatpush3.bf16.msra.mxu1 %v24213_v53  ;;  %v8450_v47 = vpop.f32.mrb[90].mxu1 }
 0x572   :  { %22693 = vmatprep.subr.bf16.mxu0 %v26802_v43  ;;  %22723 = vmatprep.subr.bf16.mxu1 %v26802_v43  ;;  %v19790_v2 = vpop.f32.mrb[91].mxu1 }
 0x574   :  { %20017 = vmatmul.mubr.f32.vlgmr.msra.gmra.mrb[102].mxu1 %v25671_v33 }
 0x575   :  { %22695 = vmatpush3.bf16.msra.mxu0 %v24149_v52  ;;  %22725 = vmatpush3.bf16.msra.mxu1 %v24121_v35 }
 0x576   :  { %22696 = vmatprep.subr.bf16.mxu0 %v26802_v43  ;;  %22726 = vmatprep.subr.bf16.mxu1 %v26802_v43 }
 0x577   :  { %20054 = vmatprep.mubr.msk.f32.mxu1 %vm23798_vm0, %v26805_v12 }
 0x579   :  { %22698 = vmatpush3.bf16.msra.mxu0 %v24178_v10  ;;  %22728 = vmatpush3.bf16.msra.mxu1 %v24140_v45  ;;  %v8339_v7 = vpop.f32.mrb[90].mxu0 }
 0x57a   :  { %v8340_v29 = vadd.f32 %v8339_v7, %v8257_v8  ;;  %22711 = vmatprep.subr.bf16.mxu0 %v26802_v43  ;;  %22729 = vmatprep.subr.bf16.mxu1 %v26802_v43  ;;  %v19771_v41 = vpop.f32.mrb[91].mxu0 }
 0x57c   :  { %v8451_v50 = vadd.f32 %v8450_v47, %v8340_v29  ;;  %19998 = vmatmul.mubr.f32.vlgmr.msra.gmra.mrb[102].mxu0 %v25703_v28  ;;  %v25759_v29 = vld [vmem:[%s26677_s6] ss:$0 sm:$0xff] }
 0x57d   :  { %22713 = vmatpush3.bf16.msra.mxu0 %v24201_v36  ;;  %22731 = vmatpush3.bf16.msra.mxu1 %v24149_v52 }
 0x57e   :  { %22714 = vmatprep.subr.bf16.mxu0 %v26802_v43  ;;  %22732 = vmatprep.subr.bf16.mxu1 %v26802_v43 }
 0x57f   :  { %20035 = vmatprep.mubr.msk.f32.mxu0 %vm23798_vm0, %v26805_v12 }
 0x581   :  { %22716 = vmatpush3.bf16.msra.mxu0 %v24217_v57  ;;  %22734 = vmatpush3.bf16.msra.mxu1 %v24178_v10  ;;  %v8619_v37 = vpop.f32.mrb[92].mxu1 }
 0x582   :  { %22717 = vmatprep.subr.bf16.mxu0 %v26802_v43  ;;  %22747 = vmatprep.subr.bf16.mxu1 %v26802_v43  ;;  %v19828_v30 = vpop.f32.mrb[93].mxu1 }
 0x583   :  { %v26939_v30 = vld [vmem:[#allocation36_spill] sm:$0xff] }
 0x584   :  { %20055 = vmatmul.mubr.f32.vlgmr.msra.gmra.mrb[104].mxu1 %v25688_v18 }
 0x585   :  { %22719 = vmatpush3.bf16.msra.mxu0 %v24228_v4  ;;  %22749 = vmatpush3.bf16.msra.mxu1 %v24121_v35 }
 0x586   :  { %22720 = vmatprep.subr.bf16.mxu0 %v26802_v43  ;;  %22750 = vmatprep.subr.bf16.mxu1 %v26802_v43 }
 0x587   :  { %20092 = vmatprep.mubr.msk.f32.mxu1 %vm23798_vm0, %v26805_v12 }
 0x589   :  { %22722 = vmatpush3.bf16.msra.mxu0 %v24237_v9  ;;  %22752 = vmatpush3.bf16.msra.mxu1 %v24140_v45  ;;  %v8538_v11 = vpop.f32.mrb[92].mxu0 }
 0x58a   :  { %v8539_v17 = vadd.f32 %v8538_v11, %v8451_v50  ;;  %22735 = vmatprep.subr.bf16.mxu0 %v26802_v43  ;;  %22753 = vmatprep.subr.bf16.mxu1 %v26802_v43  ;;  %v19809_v31 = vpop.f32.mrb[93].mxu0  ;;  %v26941_v11 = vld [vmem:[#allocation42_spill] sm:$0xff] }
 0x58b   :  { %v26943_v31 = vld [vmem:[#allocation44_spill] sm:$0xff] }
 0x58c   :  { %v8620_v42 = vadd.f32 %v8619_v37, %v8539_v17  ;;  %20036 = vmatmul.mubr.f32.vlgmr.msra.gmra.mrb[104].mxu0 %v25678_v40  ;;  %v26937_v37 = vld [vmem:[#allocation34_spill] sm:$0xff] }
 0x58d   :  { %22737 = vmatpush3.bf16.msra.mxu0 %v24249_v15  ;;  %22755 = vmatpush3.bf16.msra.mxu1 %v24149_v52  ;;  %v26942_v17 = vld [vmem:[#allocation38_spill] sm:$0xff] }
 0x58e   :  { %22738 = vmatprep.subr.bf16.mxu0 %v26802_v43  ;;  %22756 = vmatprep.subr.bf16.mxu1 %v26802_v43 }
 0x58f   :  { %20073 = vmatprep.mubr.msk.f32.mxu0 %vm23798_vm0, %v26805_v12 }
 0x591   :  { %22740 = vmatpush3.bf16.msra.mxu0 %v26850_v32  ;;  %22758 = vmatpush3.bf16.msra.mxu1 %v24178_v10  ;;  %v8793_v51 = vpop.f32.mrb[94].mxu1 }
 0x592   :  { %22741 = vmatprep.subr.bf16.mxu0 %v26802_v43  ;;  %22771 = vmatprep.subr.bf16.mxu1 %v26802_v43  ;;  %v19866_v8 = vpop.f32.mrb[95].mxu1 }
 0x593   :  { %v26946_v8 = vld [vmem:[#allocation40_spill] sm:$0xff] }
 0x594   :  { %20093 = vmatmul.mubr.f32.vlgmr.msra.gmra.mrb[106].mxu1 %v25671_v33 }
 0x595   :  { %22743 = vmatpush3.bf16.msra.mxu0 %v26851_v58  ;;  %22773 = vmatpush3.bf16.msra.mxu1 %v26852_v38 }
 0x596   :  { %22744 = vmatprep.subr.bf16.mxu0 %v26802_v43  ;;  %22774 = vmatprep.subr.bf16.mxu1 %v26802_v43 }
 0x597   :  { %20130 = vmatprep.mubr.msk.f32.mxu1 %vm23798_vm0, %v26805_v12 }
 0x599   :  { %22746 = vmatpush3.bf16.msra.mxu0 %v26853_v22  ;;  %22776 = vmatpush3.bf16.msra.mxu1 %v26854_v34  ;;  %v8714_v47 = vpop.f32.mrb[94].mxu0 }
 0x59a   :  { %v8715_v2 = vadd.f32 %v8714_v47, %v8620_v42  ;;  %22759 = vmatprep.subr.bf16.mxu0 %v26802_v43  ;;  %22777 = vmatprep.subr.bf16.mxu1 %v26802_v43  ;;  %v19847_v3 = vpop.f32.mrb[95].mxu0  ;;  %v26944_v42 = vld [vmem:[#allocation39_spill] sm:$0xff] }
 0x59b   :  { %v26947_v47 = vld [vmem:[#allocation47_spill] sm:$0xff]  ;;  %v26950_v3 = vld [vmem:[#allocation46_spill] sm:$0xff] }
 0x59c   :  { %v8794_v7 = vadd.f32 %v8793_v51, %v8715_v2  ;;  %20074 = vmatmul.mubr.f32.vlgmr.msra.gmra.mrb[106].mxu0 %v25671_v33  ;;  %v26945_v51 = vld [vmem:[#allocation45_spill] sm:$0xff]  ;;  %v26949_v2 = vld [vmem:[#allocation43_spill] sm:$0xff] }
 0x59d   :  { %22761 = vmatpush3.bf16.msra.mxu0 %v26855_v20  ;;  %22779 = vmatpush3.bf16.msra.mxu1 %v26856_v49 }
 0x59e   :  { %v8797_v41 = vadd.f32 %v25759_v29, %v8794_v7  ;;  %22762 = vmatprep.subr.bf16.mxu0 %v26802_v43  ;;  %22780 = vmatprep.subr.bf16.mxu1 %v26802_v43  ;;  %v26951_v7 = vld [vmem:[#allocation48_spill] sm:$0xff] }
 0x59f   :  { %20111 = vmatprep.mubr.msk.f32.mxu0 %vm23798_vm0, %v26805_v12 }
 0x5a0   :  { %v25769_v50 = vsel %vm8802_vm13, %v8797_v41, %v25458_v23  ;;  %v26934_v23 = vld [vmem:[#allocation30_spill] sm:$0xff] }
 0x5a1   :  { %22764 = vmatpush3.bf16.msra.mxu0 %v26857_v46  ;;  %22782 = vmatpush3.bf16.msra.mxu1 %v26858_v54  ;;  %v26953_v41 = vld [vmem:[#allocation50_spill] sm:$0xff] }
 0x5a2   :  { %22765 = vmatprep.subr.bf16.mxu0 %v26802_v43  ;;  %22795 = vmatprep.subr.bf16.mxu1 %v26802_v43 }
 0x5a4   :  { %20131 = vmatmul.mubr.f32.vlgmr.msra.gmra.mrb[108].mxu1 %v25611_v25 }
 0x5a5   :  { %22767 = vmatpush3.bf16.msra.mxu0 %v26859_v44  ;;  %22797 = vmatpush3.bf16.msra.mxu1 %v26855_v20 }
 0x5a6   :  { %22768 = vmatprep.subr.bf16.mxu0 %v26802_v43  ;;  %22798 = vmatprep.subr.bf16.mxu1 %v26802_v43 }
 0x5a7   :  { %20168 = vmatprep.mubr.msk.f32.mxu1 %vm23798_vm0, %v26805_v12 }
 0x5a9   :  { %22770 = vmatpush3.bf16.msra.mxu0 %v26905_v5  ;;  %22800 = vmatpush3.bf16.msra.mxu1 %v26857_v46 }
 0x5aa   :  { %22783 = vmatprep.subr.bf16.mxu0 %v26802_v43  ;;  %22801 = vmatprep.subr.bf16.mxu1 %v26802_v43 }
 0x5ac   :  { %20112 = vmatmul.mubr.f32.vlgmr.msra.gmra.mrb[108].mxu0 %v25628_v0  ;;  %v26936_v0 = vld [vmem:[#allocation33_spill] sm:$0xff] }
 0x5ad   :  { %22785 = vmatpush3.bf16.msra.mxu0 %v26934_v23  ;;  %22803 = vmatpush3.bf16.msra.mxu1 %v26859_v44 }
 0x5ae   :  { %22786 = vmatprep.subr.bf16.mxu0 %v26802_v43  ;;  %22804 = vmatprep.subr.bf16.mxu1 %v26802_v43 }
 0x5af   :  { %20149 = vmatprep.mubr.msk.f32.mxu0 %vm23798_vm0, %v26805_v12 }
 0x5b1   :  { %22788 = vmatpush3.bf16.msra.mxu0 %v26935_v26  ;;  %22806 = vmatpush3.bf16.msra.mxu1 %v26905_v5 }
 0x5b2   :  { %22789 = vmatprep.subr.bf16.mxu0 %v26802_v43  ;;  %22819 = vmatprep.subr.bf16.mxu1 %v26802_v43 }
 0x5b4   :  { %20169 = vmatmul.mubr.f32.vlgmr.msra.gmra.mrb[110].mxu1 %v25622_v21  ;;  %v26938_v21 = vld [vmem:[#allocation35_spill] sm:$0xff] }
 0x5b5   :  { %22791 = vmatpush3.bf16.msra.mxu0 %v26936_v0  ;;  %22821 = vmatpush3.bf16.msra.mxu1 %v26855_v20 }
 0x5b6   :  { %22792 = vmatprep.subr.bf16.mxu0 %v26802_v43  ;;  %22822 = vmatprep.subr.bf16.mxu1 %v26802_v43 }
 0x5b7   :  { %20206 = vmatprep.mubr.msk.f32.mxu1 %vm23798_vm0, %v26805_v12 }
 0x5b9   :  { %22794 = vmatpush3.bf16.msra.mxu0 %v26937_v37  ;;  %22824 = vmatpush3.bf16.msra.mxu1 %v26857_v46 }
 0x5ba   :  { %22807 = vmatprep.subr.bf16.mxu0 %v26802_v43  ;;  %22825 = vmatprep.subr.bf16.mxu1 %v26802_v43 }
 0x5bc   :  { %20150 = vmatmul.mubr.f32.vlgmr.msra.gmra.mrb[110].mxu0 %v25614_v1  ;;  %v26940_v1 = vld [vmem:[#allocation37_spill] sm:$0xff] }
 0x5bd   :  { %22809 = vmatpush3.bf16.msra.mxu0 %v26938_v21  ;;  %22827 = vmatpush3.bf16.msra.mxu1 %v26859_v44 }
 0x5be   :  { %22810 = vmatprep.subr.bf16.mxu0 %v26802_v43  ;;  %22828 = vmatprep.subr.bf16.mxu1 %v26802_v43 }
 0x5bf   :  { %20187 = vmatprep.mubr.msk.f32.mxu0 %vm23798_vm0, %v26805_v12 }
 0x5c1   :  { %22812 = vmatpush3.bf16.msra.mxu0 %v26939_v30  ;;  %22830 = vmatpush3.bf16.msra.mxu1 %v26905_v5 }
 0x5c2   :  { %22813 = vmatprep.subr.bf16.mxu0 %v26802_v43  ;;  %22843 = vmatprep.subr.bf16.mxu1 %v26802_v43 }
 0x5c4   :  { %20207 = vmatmul.mubr.f32.vlgmr.msra.gmra.mrb[112].mxu1 %v25611_v25 }
 0x5c5   :  { %22815 = vmatpush3.bf16.msra.mxu0 %v26940_v1  ;;  %22845 = vmatpush3.bf16.msra.mxu1 %v26941_v11 }
 0x5c6   :  { %22816 = vmatprep.subr.bf16.mxu0 %v26802_v43  ;;  %22846 = vmatprep.subr.bf16.mxu1 %v26802_v43 }
 0x5c7   :  { %20244 = vmatprep.mubr.msk.f32.mxu1 %vm23798_vm0, %v26805_v12 }
 0x5c9   :  { %22818 = vmatpush3.bf16.msra.mxu0 %v26942_v17  ;;  %22848 = vmatpush3.bf16.msra.mxu1 %v26943_v31 }
 0x5ca   :  { %22831 = vmatprep.subr.bf16.mxu0 %v26802_v43  ;;  %22849 = vmatprep.subr.bf16.mxu1 %v26802_v43 }
 0x5cc   :  { %20188 = vmatmul.mubr.f32.vlgmr.msra.gmra.mrb[112].mxu0 %v25611_v25  ;;  %v26948_v25 = vld [vmem:[#allocation41_spill] sm:$0xff] }
 0x5cd   :  { %22833 = vmatpush3.bf16.msra.mxu0 %v26944_v42  ;;  %22851 = vmatpush3.bf16.msra.mxu1 %v26945_v51 }
 0x5ce   :  { %22834 = vmatprep.subr.bf16.mxu0 %v26802_v43  ;;  %22852 = vmatprep.subr.bf16.mxu1 %v26802_v43 }
 0x5cf   :  { %20225 = vmatprep.mubr.msk.f32.mxu0 %vm23798_vm0, %v26805_v12 }
 0x5d1   :  { %22836 = vmatpush3.bf16.msra.mxu0 %v26946_v8  ;;  %22854 = vmatpush3.bf16.msra.mxu1 %v26947_v47 }
 0x5d2   :  { %22837 = vmatprep.subr.bf16.mxu0 %v26802_v43  ;;  %22867 = vmatprep.subr.bf16.mxu1 %v26802_v43 }
 0x5d4   :  { %20245 = vmatmul.mubr.f32.vlgmr.msra.gmra.mrb[114].mxu1 %v25671_v33 }
 0x5d5   :  { %22839 = vmatpush3.bf16.msra.mxu0 %v26948_v25  ;;  %22869 = vmatpush3.bf16.msra.mxu1 %v26944_v42 }
 0x5d6   :  { %22840 = vmatprep.subr.bf16.mxu0 %v26802_v43  ;;  %22870 = vmatprep.subr.bf16.mxu1 %v26802_v43 }
 0x5d7   :  { %20282 = vmatprep.mubr.msk.f32.mxu1 %vm23798_vm0, %v26805_v12 }
 0x5d9   :  { %22842 = vmatpush3.bf16.msra.mxu0 %v26949_v2  ;;  %22872 = vmatpush3.bf16.msra.mxu1 %v26946_v8 }
 0x5da   :  { %22855 = vmatprep.subr.bf16.mxu0 %v26802_v43  ;;  %22873 = vmatprep.subr.bf16.mxu1 %v26802_v43 }
 0x5dc   :  { %20226 = vmatmul.mubr.f32.vlgmr.msra.gmra.mrb[114].mxu0 %v25703_v28  ;;  %v26952_v28 = vld [vmem:[#allocation49_spill] sm:$0xff] }
 0x5dd   :  { %22857 = vmatpush3.bf16.msra.mxu0 %v26950_v3  ;;  %22875 = vmatpush3.bf16.msra.mxu1 %v26948_v25 }
 0x5de   :  { %22858 = vmatprep.subr.bf16.mxu0 %v26802_v43  ;;  %22876 = vmatprep.subr.bf16.mxu1 %v26802_v43 }
 0x5df   :  { %20263 = vmatprep.mubr.msk.f32.mxu0 %vm23798_vm0, %v26805_v12 }
 0x5e1   :  { %22860 = vmatpush3.bf16.msra.mxu0 %v26951_v7  ;;  %22878 = vmatpush3.bf16.msra.mxu1 %v26949_v2 }
 0x5e2   :  { %22861 = vmatprep.subr.bf16.mxu0 %v26802_v43  ;;  %22891 = vmatprep.subr.bf16.mxu1 %v26802_v43 }
 0x5e4   :  { %20283 = vmatmul.mubr.f32.vlgmr.msra.gmra.mrb[116].mxu1 %v25688_v18  ;;  %v26954_v18 = vld [vmem:[#allocation51_spill] sm:$0xff] }
 0x5e5   :  { %22863 = vmatpush3.bf16.msra.mxu0 %v26952_v28  ;;  %22893 = vmatpush3.bf16.msra.mxu1 %v26944_v42  ;;  %v26959_v28 = vld [vmem:[#allocation17_spill] sm:$0xff] }
 0x5e6   :  { %22864 = vmatprep.subr.bf16.mxu0 %v26802_v43  ;;  %22894 = vmatprep.subr.bf16.mxu1 %v26802_v43 }
 0x5e7   :  { %20320 = vmatprep.mubr.msk.f32.mxu1 %vm23798_vm0, %v26805_v12 }
 0x5e9   :  { %22866 = vmatpush3.bf16.msra.mxu0 %v26953_v41  ;;  %22896 = vmatpush3.bf16.msra.mxu1 %v26946_v8  ;;  %v26955_v41 = vld [vmem:[#allocation52_spill] sm:$0xff] }
 0x5ea   :  { %22879 = vmatprep.subr.bf16.mxu0 %v26802_v43  ;;  %22897 = vmatprep.subr.bf16.mxu1 %v26802_v43 }
 0x5ec   :  { %20264 = vmatmul.mubr.f32.vlgmr.msra.gmra.mrb[116].mxu0 %v25678_v40  ;;  %v26956_v40 = vld [vmem:[#allocation53_spill] sm:$0xff] }
 0x5ed   :  { %22881 = vmatpush3.bf16.msra.mxu0 %v26954_v18  ;;  %22899 = vmatpush3.bf16.msra.mxu1 %v26948_v25  ;;  %v26957_v18 = vld [vmem:[#allocation16_spill] sm:$0xff] }
 0x5ee   :  { %22882 = vmatprep.subr.bf16.mxu0 %v26802_v43  ;;  %22900 = vmatprep.subr.bf16.mxu1 %v26802_v43 }
 0x5ef   :  { %20301 = vmatprep.mubr.msk.f32.mxu0 %vm23798_vm0, %v26805_v12 }
 0x5f1   :  { %22884 = vmatpush3.bf16.msra.mxu0 %v26955_v41  ;;  %22902 = vmatpush3.bf16.msra.mxu1 %v26949_v2  ;;  %v26958_v41 = vld [vmem:[#allocation54_spill] sm:$0xff] }
 0x5f2   :  { %22885 = vmatprep.subr.bf16.mxu0 %v26802_v43  ;;  %22915 = vmatprep.subr.bf16.mxu1 %v26802_v43 }
 0x5f4   :  { %20321 = vmatmul.mubr.f32.vlgmr.msra.gmra.mrb[118].mxu1 %v25671_v33 }
 0x5f5   :  { %22887 = vmatpush3.bf16.msra.mxu0 %v26956_v40  ;;  %22917 = vmatpush3.bf16.msra.mxu1 %v26957_v18  ;;  %v26960_v18 = vld [vmem:[#allocation18_spill] sm:$0xff] }
 0x5f6   :  { %22888 = vmatprep.subr.bf16.mxu0 %v26802_v43  ;;  %22918 = vmatprep.subr.bf16.mxu1 %v26802_v43 }
 0x5f7   :  { %20358 = vmatprep.mubr.msk.f32.mxu1 %vm23798_vm0, %v26805_v12 }
 0x5f9   :  { %22890 = vmatpush3.bf16.msra.mxu0 %v26958_v41  ;;  %22920 = vmatpush3.bf16.msra.mxu1 %v26959_v28  ;;  %v26961_v28 = vld [vmem:[#allocation19_spill] sm:$0xff] }
 0x5fa   :  { %22903 = vmatprep.subr.bf16.mxu0 %v26802_v43  ;;  %22921 = vmatprep.subr.bf16.mxu1 %v26802_v43 }
 0x5fc   :  { %20302 = vmatmul.mubr.f32.vlgmr.msra.gmra.mrb[118].mxu0 %v25671_v33 }
 0x5fd   :  { %22905 = vmatpush3.bf16.msra.mxu0 %v23937_v16  ;;  %22923 = vmatpush3.bf16.msra.mxu1 %v26960_v18 }
 0x5fe   :  { %22906 = vmatprep.subr.bf16.mxu0 %v26802_v43  ;;  %22924 = vmatprep.subr.bf16.mxu1 %v26802_v43 }
 0x5ff   :  { %20339 = vmatprep.mubr.msk.f32.mxu0 %vm23798_vm0, %v26805_v12 }
 0x601   :  { %22908 = vmatpush3.bf16.msra.mxu0 %v23943_v19  ;;  %22926 = vmatpush3.bf16.msra.mxu1 %v26961_v28 }
 0x602   :  { %22909 = vmatprep.subr.bf16.mxu0 %v26802_v43  ;;  %22939 = vmatprep.subr.bf16.mxu1 %v26802_v43 }
 0x605   :  { %22911 = vmatpush3.bf16.msra.mxu0 %v23955_v27 }
 0x606   :  { %22912 = vmatprep.subr.bf16.mxu0 %v26802_v43 }
 0x609   :  { %22914 = vmatpush3.bf16.msra.mxu0 %v23991_v48 }
 0x60a   :  { %22927 = vmatprep.subr.bf16.mxu0 %v26802_v43 }
 0x617   :  { %v9001_v33 = vpop.f32.mrb[96].mxu1 }
 0x618   :  { %v19904_v18 = vpop.f32.mrb[97].mxu1 }
 0x61f   :  { %v8890_v41 = vpop.f32.mrb[96].mxu0 }
 0x620   :  { %v9002_v40 = vadd.f32 %v9001_v33, %v8890_v41  ;;  %v19885_v7 = vpop.f32.mrb[97].mxu0 }
 0x627   :  { %v9170_v3 = vpop.f32.mrb[98].mxu1 }
 0x628   :  { %v19942_v2 = vpop.f32.mrb[99].mxu1 }
 0x62f   :  { %v9089_v28 = vpop.f32.mrb[98].mxu0 }
 0x630   :  { %v9090_v25 = vadd.f32 %v9089_v28, %v9002_v40  ;;  %v19923_v47 = vpop.f32.mrb[99].mxu0 }
 0x632   :  { %v9171_v8 = vadd.f32 %v9170_v3, %v9090_v25 }
 0x637   :  { %v9344_v51 = vpop.f32.mrb[100].mxu1 }
 0x638   :  { %v19980_v42 = vpop.f32.mrb[101].mxu1 }
 0x63f   :  { %v9265_v31 = vpop.f32.mrb[100].mxu0 }
 0x640   :  { %v9266_v17 = vadd.f32 %v9265_v31, %v9171_v8  ;;  %v19961_v11 = vpop.f32.mrb[101].mxu0 }
 0x641   :  { %v25911_v11 = vpop.permute.xlu0 %10966 }
 0x642   :  { %v9345_v1 = vadd.f32 %v9344_v51, %v9266_v17  ;;  %vm10968_vm14 = vcmp.eq.s32.totalorder %v25911_v11, 1  ;;  %v26964_v11 = vld [vmem:[#allocation33_spill] sm:$0xff] }
 0x647   :  { %v9541_v30 = vpop.f32.mrb[102].mxu1 }
 0x648   :  { %v20018_v21 = vpop.f32.mrb[103].mxu1 }
 0x64f   :  { %v9430_v37 = vpop.f32.mrb[102].mxu0 }
 0x650   :  { %v9431_v0 = vadd.f32 %v9430_v37, %v9345_v1  ;;  %v19999_v18 = vpop.f32.mrb[103].mxu0  ;;  %v25916_v37 = vld [vmem:[%s26674_s3] ss:$0 sm:$0xff] }
 0x652   :  { %v9542_v26 = vadd.f32 %v9541_v30, %v9431_v0 }
 0x657   :  { %v9710_v41 = vpop.f32.mrb[104].mxu1 }
 0x658   :  { %v20056_v7 = vpop.f32.mrb[105].mxu1 }
 0x65f   :  { %v9629_v33 = vpop.f32.mrb[104].mxu0 }
 0x660   :  { %v9630_v2 = vadd.f32 %v9629_v33, %v9542_v26  ;;  %v20037_v23 = vpop.f32.mrb[105].mxu0 }
 0x662   :  { %v9711_v28 = vadd.f32 %v9710_v41, %v9630_v2 }
 0x667   :  { %v9884_v47 = vpop.f32.mrb[106].mxu1 }
 0x668   :  { %v20094_v25 = vpop.f32.mrb[107].mxu1 }
 0x66f   :  { %v9805_v3 = vpop.f32.mrb[106].mxu0 }
 0x670   :  { %v9806_v42 = vadd.f32 %v9805_v3, %v9711_v28  ;;  %v20075_v40 = vpop.f32.mrb[107].mxu0 }
 0x672   :  { %v9885_v31 = vadd.f32 %v9884_v47, %v9806_v42 }
 0x674   :  { %v9888_v0 = vadd.f32 %v25916_v37, %v9885_v31  ;;  %v23645_v31 = vld [vmem:[#allocation2 + $0x28] sm:$0xff] }
 0x676   :  { %v25923_v23 = vsel %vm10968_vm14, %v9888_v0, %v25607_v56  ;;  %v11515_v0 = vsel %vm137_vm1, %v23645_v31, 0 }
 0x677   :  { %v10975_v26 = vsel %vm137_vm1, %v25923_v23, 0  ;;  %v10079_v21 = vpop.f32.mrb[108].mxu1 }
 0x678   :  { %v25927_v30 = vand.u32 4294901760, %v10975_v26  ;;  %v20132_v1 = vpop.f32.mrb[109].mxu1 }
 0x67a   :  { %v25930_v17 = vsub.f32 %v10975_v26, %v25927_v30  ;;  %20359 = vmatmul.mubr.f32.vlgmr.msra.gmra.mrb[120].mxu1 %v25927_v30  ;;  %v25987_v26 = vand.u32 4294901760, %v11515_v0 }
 0x67b   :  { %22941 = vmatpush3.bf16.msra.mxu1 %v23937_v16  ;;  %20396 = vmatprep.mubr.msk.f32.mxu1 %vm23798_vm0, %v26805_v12 }
 0x67c   :  { %22942 = vmatprep.subr.bf16.mxu1 %v26802_v43  ;;  %v25938_v56 = vand.u32 4294901760, %v25930_v17 }
 0x67e   :  { %v11053_v51 = vsub.f32 %v25930_v17, %v25938_v56 }
 0x67f   :  { %22944 = vmatpush3.bf16.msra.mxu1 %v23943_v19  ;;  %v9968_v8 = vpop.f32.mrb[108].mxu0 }
 0x680   :  { %v10080_v18 = vadd.f32 %v10079_v21, %v9968_v8  ;;  %v20113_v41 = vpop.f32.mrb[109].mxu0  ;;  %22945 = vmatprep.subr.bf16.mxu1 %v26802_v43  ;;  %v25944_v7 = vand.u32 4294901760, %v11053_v51  ;;  %v25994_v8 = vsub.f32 %v11515_v0, %v25987_v26 }
 0x682   :  { %20340 = vmatmul.mubr.f32.vlgmr.msra.gmra.mrb[120].mxu0 %v25944_v7  ;;  %v26004_v41 = vand.u32 4294901760, %v25994_v8 }
 0x683   :  { %22929 = vmatpush3.bf16.msra.mxu0 %v24011_v55  ;;  %22947 = vmatpush3.bf16.msra.mxu1 %v23955_v27 }
 0x684   :  { %22930 = vmatprep.subr.bf16.mxu0 %v26802_v43  ;;  %22948 = vmatprep.subr.bf16.mxu1 %v26802_v43 }
 0x685   :  { %20377 = vmatprep.mubr.msk.f32.mxu0 %vm23798_vm0, %v26805_v12 }
 0x687   :  { %22932 = vmatpush3.bf16.msra.mxu0 %v24022_v59  ;;  %22950 = vmatpush3.bf16.msra.mxu1 %v23991_v48  ;;  %v10248_v33 = vpop.f32.mrb[110].mxu1 }
 0x688   :  { %v20170_v2 = vpop.f32.mrb[111].mxu1  ;;  %22933 = vmatprep.subr.bf16.mxu0 %v26802_v43  ;;  %22963 = vmatprep.subr.bf16.mxu1 %v26802_v43 }
 0x68a   :  { %20397 = vmatmul.mubr.f32.vlgmr.msra.gmra.mrb[122].mxu1 %v25938_v56 }
 0x68b   :  { %22935 = vmatpush3.bf16.msra.mxu0 %v24032_v60  ;;  %22965 = vmatpush3.bf16.msra.mxu1 %v23937_v16 }
 0x68c   :  { %22936 = vmatprep.subr.bf16.mxu0 %v26802_v43  ;;  %22966 = vmatprep.subr.bf16.mxu1 %v26802_v43 }
 0x68d   :  { %20434 = vmatprep.mubr.msk.f32.mxu1 %vm23798_vm0, %v26805_v12 }
 0x68f   :  { %22938 = vmatpush3.bf16.msra.mxu0 %v24041_v61  ;;  %22968 = vmatpush3.bf16.msra.mxu1 %v23943_v19  ;;  %v10167_v28 = vpop.f32.mrb[110].mxu0 }
 0x690   :  { %v10168_v47 = vadd.f32 %v10167_v28, %v10080_v18  ;;  %v20151_v25 = vpop.f32.mrb[111].mxu0  ;;  %22951 = vmatprep.subr.bf16.mxu0 %v26802_v43  ;;  %22969 = vmatprep.subr.bf16.mxu1 %v26802_v43  ;;  %v11593_v28 = vsub.f32 %v25994_v8, %v26004_v41 }
 0x692   :  { %20378 = vmatmul.mubr.f32.vlgmr.msra.gmra.mrb[122].mxu0 %v25930_v17  ;;  %v10249_v3 = vadd.f32 %v10248_v33, %v10168_v47  ;;  %v26019_v47 = vand.u32 4294901760, %v11593_v28 }
 0x693   :  { %22953 = vmatpush3.bf16.msra.mxu0 %v24053_v62  ;;  %22971 = vmatpush3.bf16.msra.mxu1 %v23955_v27 }
 0x694   :  { %22954 = vmatprep.subr.bf16.mxu0 %v26802_v43  ;;  %22972 = vmatprep.subr.bf16.mxu1 %v26802_v43 }
 0x695   :  { %20415 = vmatprep.mubr.msk.f32.mxu0 %vm23798_vm0, %v26805_v12 }
 0x697   :  { %22956 = vmatpush3.bf16.msra.mxu0 %v24064_v6  ;;  %22974 = vmatpush3.bf16.msra.mxu1 %v23991_v48  ;;  %v10422_v42 = vpop.f32.mrb[112].mxu1 }
 0x698   :  { %v20208_v40 = vpop.f32.mrb[113].mxu1  ;;  %22957 = vmatprep.subr.bf16.mxu0 %v26802_v43  ;;  %22987 = vmatprep.subr.bf16.mxu1 %v26802_v43 }
 0x69a   :  { %20435 = vmatmul.mubr.f32.vlgmr.msra.gmra.mrb[124].mxu1 %v25927_v30 }
 0x69b   :  { %22959 = vmatpush3.bf16.msra.mxu0 %v24080_v13  ;;  %22989 = vmatpush3.bf16.msra.mxu1 %v24159_v63 }
 0x69c   :  { %22960 = vmatprep.subr.bf16.mxu0 %v26802_v43  ;;  %22990 = vmatprep.subr.bf16.mxu1 %v26802_v43 }
 0x69d   :  { %20472 = vmatprep.mubr.msk.f32.mxu1 %vm23798_vm0, %v26805_v12 }
 0x69f   :  { %22962 = vmatpush3.bf16.msra.mxu0 %v24101_v24  ;;  %22992 = vmatpush3.bf16.msra.mxu1 %v24180_v14  ;;  %v10343_v21 = vpop.f32.mrb[112].mxu0 }
 0x6a0   :  { %v10344_v1 = vadd.f32 %v10343_v21, %v10249_v3  ;;  %v20189_v51 = vpop.f32.mrb[113].mxu0  ;;  %22975 = vmatprep.subr.bf16.mxu0 %v26802_v43  ;;  %22993 = vmatprep.subr.bf16.mxu1 %v26802_v43 }
 0x6a2   :  { %20416 = vmatmul.mubr.f32.vlgmr.msra.gmra.mrb[124].mxu0 %v25927_v30  ;;  %v10423_v18 = vadd.f32 %v10422_v42, %v10344_v1 }
 0x6a3   :  { %22977 = vmatpush3.bf16.msra.mxu0 %v24121_v35  ;;  %22995 = vmatpush3.bf16.msra.mxu1 %v24205_v39 }
 0x6a4   :  { %22978 = vmatprep.subr.bf16.mxu0 %v26802_v43  ;;  %22996 = vmatprep.subr.bf16.mxu1 %v26802_v43 }
 0x6a5   :  { %20453 = vmatprep.mubr.msk.f32.mxu0 %vm23798_vm0, %v26805_v12 }
 0x6a7   :  { %22980 = vmatpush3.bf16.msra.mxu0 %v24140_v45  ;;  %22998 = vmatpush3.bf16.msra.mxu1 %v24213_v53  ;;  %v10616_v33 = vpop.f32.mrb[114].mxu1 }
 0x6a8   :  { %22981 = vmatprep.subr.bf16.mxu0 %v26802_v43  ;;  %23011 = vmatprep.subr.bf16.mxu1 %v26802_v43  ;;  %v20246_v2 = vpop.f32.mrb[115].mxu1 }
 0x6aa   :  { %20473 = vmatmul.mubr.f32.vlgmr.msra.gmra.mrb[126].mxu1 %v25987_v26 }
 0x6ab   :  { %22983 = vmatpush3.bf16.msra.mxu0 %v24149_v52  ;;  %23013 = vmatpush3.bf16.msra.mxu1 %v24121_v35 }
 0x6ac   :  { %22984 = vmatprep.subr.bf16.mxu0 %v26802_v43  ;;  %23014 = vmatprep.subr.bf16.mxu1 %v26802_v43 }
 0x6ad   :  { %20510 = vmatprep.mubr.msk.f32.mxu1 %vm23798_vm0, %v26805_v12 }
 0x6af   :  { %22986 = vmatpush3.bf16.msra.mxu0 %v24178_v10  ;;  %23016 = vmatpush3.bf16.msra.mxu1 %v24140_v45  ;;  %v10505_v25 = vpop.f32.mrb[114].mxu0 }
 0x6b0   :  { %v10506_v3 = vadd.f32 %v10505_v25, %v10423_v18  ;;  %22999 = vmatprep.subr.bf16.mxu0 %v26802_v43  ;;  %23017 = vmatprep.subr.bf16.mxu1 %v26802_v43  ;;  %v20227_v42 = vpop.f32.mrb[115].mxu0 }
 0x6b2   :  { %v10617_v40 = vadd.f32 %v10616_v33, %v10506_v3  ;;  %20454 = vmatmul.mubr.f32.vlgmr.msra.gmra.mrb[126].mxu0 %v26019_v47 }
 0x6b3   :  { %23001 = vmatpush3.bf16.msra.mxu0 %v24201_v36  ;;  %23019 = vmatpush3.bf16.msra.mxu1 %v24149_v52 }
 0x6b4   :  { %23002 = vmatprep.subr.bf16.mxu0 %v26802_v43  ;;  %23020 = vmatprep.subr.bf16.mxu1 %v26802_v43 }
 0x6b5   :  { %20491 = vmatprep.mubr.msk.f32.mxu0 %vm23798_vm0, %v26805_v12 }
 0x6b7   :  { %23004 = vmatpush3.bf16.msra.mxu0 %v24217_v57  ;;  %23022 = vmatpush3.bf16.msra.mxu1 %v24178_v10  ;;  %v10785_v31 = vpop.f32.mrb[116].mxu1 }
 0x6b8   :  { %23005 = vmatprep.subr.bf16.mxu0 %v26802_v43  ;;  %23035 = vmatprep.subr.bf16.mxu1 %v26802_v43  ;;  %v20284_v0 = vpop.f32.mrb[117].mxu1 }
 0x6b9   :  { %v26967_v0 = vld [vmem:[#allocation36_spill] sm:$0xff] }
 0x6ba   :  { %20511 = vmatmul.mubr.f32.vlgmr.msra.gmra.mrb[128].mxu1 %v26004_v41 }
 0x6bb   :  { %23007 = vmatpush3.bf16.msra.mxu0 %v24228_v4  ;;  %23037 = vmatpush3.bf16.msra.mxu1 %v24121_v35 }
 0x6bc   :  { %23008 = vmatprep.subr.bf16.mxu0 %v26802_v43  ;;  %23038 = vmatprep.subr.bf16.mxu1 %v26802_v43 }
 0x6bd   :  { %20548 = vmatprep.mubr.msk.f32.mxu1 %vm23798_vm0, %v26805_v12 }
 0x6bf   :  { %23010 = vmatpush3.bf16.msra.mxu0 %v24237_v9  ;;  %23040 = vmatpush3.bf16.msra.mxu1 %v24140_v45  ;;  %v10704_v21 = vpop.f32.mrb[116].mxu0 }
 0x6c0   :  { %v10705_v1 = vadd.f32 %v10704_v21, %v10617_v40  ;;  %23023 = vmatprep.subr.bf16.mxu0 %v26802_v43  ;;  %23041 = vmatprep.subr.bf16.mxu1 %v26802_v43  ;;  %v20265_v51 = vpop.f32.mrb[117].mxu0  ;;  %v26969_v21 = vld [vmem:[#allocation42_spill] sm:$0xff] }
 0x6c1   :  { %v26971_v51 = vld [vmem:[#allocation44_spill] sm:$0xff] }
 0x6c2   :  { %v10786_v18 = vadd.f32 %v10785_v31, %v10705_v1  ;;  %20492 = vmatmul.mubr.f32.vlgmr.msra.gmra.mrb[128].mxu0 %v25994_v8  ;;  %v26970_v1 = vld [vmem:[#allocation38_spill] sm:$0xff] }
 0x6c3   :  { %23025 = vmatpush3.bf16.msra.mxu0 %v24249_v15  ;;  %23043 = vmatpush3.bf16.msra.mxu1 %v24149_v52 }
 0x6c4   :  { %23026 = vmatprep.subr.bf16.mxu0 %v26802_v43  ;;  %23044 = vmatprep.subr.bf16.mxu1 %v26802_v43 }
 0x6c5   :  { %20529 = vmatprep.mubr.msk.f32.mxu0 %vm23798_vm0, %v26805_v12 }
 0x6c7   :  { %23028 = vmatpush3.bf16.msra.mxu0 %v26850_v32  ;;  %23046 = vmatpush3.bf16.msra.mxu1 %v24178_v10  ;;  %v10959_v33 = vpop.f32.mrb[118].mxu1 }
 0x6c8   :  { %23029 = vmatprep.subr.bf16.mxu0 %v26802_v43  ;;  %23059 = vmatprep.subr.bf16.mxu1 %v26802_v43  ;;  %v20322_v2 = vpop.f32.mrb[119].mxu1 }
 0x6c9   :  { %v26974_v2 = vld [vmem:[#allocation40_spill] sm:$0xff] }
 0x6ca   :  { %20549 = vmatmul.mubr.f32.vlgmr.msra.gmra.mrb[130].mxu1 %v25987_v26 }
 0x6cb   :  { %23031 = vmatpush3.bf16.msra.mxu0 %v26851_v58  ;;  %23061 = vmatpush3.bf16.msra.mxu1 %v26852_v38 }
 0x6cc   :  { %23032 = vmatprep.subr.bf16.mxu0 %v26802_v43  ;;  %23062 = vmatprep.subr.bf16.mxu1 %v26802_v43 }
 0x6cd   :  { %20586 = vmatprep.mubr.msk.f32.mxu1 %vm23798_vm0, %v26805_v12 }
 0x6cf   :  { %23034 = vmatpush3.bf16.msra.mxu0 %v26853_v22  ;;  %23064 = vmatpush3.bf16.msra.mxu1 %v26854_v34  ;;  %v10880_v28 = vpop.f32.mrb[118].mxu0 }
 0x6d0   :  { %v10881_v25 = vadd.f32 %v10880_v28, %v10786_v18  ;;  %23047 = vmatprep.subr.bf16.mxu0 %v26802_v43  ;;  %23065 = vmatprep.subr.bf16.mxu1 %v26802_v43  ;;  %v20303_v3 = vpop.f32.mrb[119].mxu0  ;;  %v26972_v18 = vld [vmem:[#allocation39_spill] sm:$0xff] }
 0x6d1   :  { %v26975_v28 = vld [vmem:[#allocation47_spill] sm:$0xff]  ;;  %v26978_v3 = vld [vmem:[#allocation46_spill] sm:$0xff] }
 0x6d2   :  { %v10960_v42 = vadd.f32 %v10959_v33, %v10881_v25  ;;  %20530 = vmatmul.mubr.f32.vlgmr.msra.gmra.mrb[130].mxu0 %v25987_v26  ;;  %v26973_v33 = vld [vmem:[#allocation45_spill] sm:$0xff]  ;;  %v26977_v25 = vld [vmem:[#allocation43_spill] sm:$0xff] }
 0x6d3   :  { %23049 = vmatpush3.bf16.msra.mxu0 %v26855_v20  ;;  %23067 = vmatpush3.bf16.msra.mxu1 %v26856_v49 }
 0x6d4   :  { %v10963_v40 = vadd.f32 %v25759_v29, %v10960_v42  ;;  %23050 = vmatprep.subr.bf16.mxu0 %v26802_v43  ;;  %23068 = vmatprep.subr.bf16.mxu1 %v26802_v43  ;;  %v26962_v29 = vld [vmem:[#allocation30_spill] sm:$0xff]  ;;  %v26979_v42 = vld [vmem:[#allocation48_spill] sm:$0xff] }
 0x6d5   :  { %20567 = vmatprep.mubr.msk.f32.mxu0 %vm23798_vm0, %v26805_v12 }
 0x6d6   :  { %v26080_v31 = vsel %vm10968_vm14, %v10963_v40, %v25769_v50  ;;  %v26963_v50 = vld [vmem:[#allocation32_spill] sm:$0xff]  ;;  %v26981_v40 = vld [vmem:[#allocation50_spill] sm:$0xff] }
 0x6d7   :  { %23052 = vmatpush3.bf16.msra.mxu0 %v26857_v46  ;;  %23070 = vmatpush3.bf16.msra.mxu1 %v26858_v54 }
 0x6d8   :  { %23053 = vmatprep.subr.bf16.mxu0 %v26802_v43  ;;  %23083 = vmatprep.subr.bf16.mxu1 %v26802_v43 }
 0x6da   :  { %20587 = vmatmul.mubr.f32.vlgmr.msra.gmra.mrb[132].mxu1 %v25927_v30 }
 0x6db   :  { %23055 = vmatpush3.bf16.msra.mxu0 %v26859_v44  ;;  %23085 = vmatpush3.bf16.msra.mxu1 %v26855_v20 }
 0x6dc   :  { %23056 = vmatprep.subr.bf16.mxu0 %v26802_v43  ;;  %23086 = vmatprep.subr.bf16.mxu1 %v26802_v43 }
 0x6dd   :  { %20624 = vmatprep.mubr.msk.f32.mxu1 %vm23798_vm0, %v26805_v12 }
 0x6df   :  { %23058 = vmatpush3.bf16.msra.mxu0 %v26905_v5  ;;  %23088 = vmatpush3.bf16.msra.mxu1 %v26857_v46 }
 0x6e0   :  { %23071 = vmatprep.subr.bf16.mxu0 %v26802_v43  ;;  %23089 = vmatprep.subr.bf16.mxu1 %v26802_v43 }
 0x6e2   :  { %20568 = vmatmul.mubr.f32.vlgmr.msra.gmra.mrb[132].mxu0 %v25944_v7  ;;  %v26965_v7 = vld [vmem:[#allocation34_spill] sm:$0xff] }
 0x6e3   :  { %23073 = vmatpush3.bf16.msra.mxu0 %v26962_v29  ;;  %23091 = vmatpush3.bf16.msra.mxu1 %v26859_v44 }
 0x6e4   :  { %23074 = vmatprep.subr.bf16.mxu0 %v26802_v43  ;;  %23092 = vmatprep.subr.bf16.mxu1 %v26802_v43 }
 0x6e5   :  { %20605 = vmatprep.mubr.msk.f32.mxu0 %vm23798_vm0, %v26805_v12 }
 0x6e7   :  { %23076 = vmatpush3.bf16.msra.mxu0 %v26963_v50  ;;  %23094 = vmatpush3.bf16.msra.mxu1 %v26905_v5 }
 0x6e8   :  { %23077 = vmatprep.subr.bf16.mxu0 %v26802_v43  ;;  %23107 = vmatprep.subr.bf16.mxu1 %v26802_v43 }
 0x6ea   :  { %20625 = vmatmul.mubr.f32.vlgmr.msra.gmra.mrb[134].mxu1 %v25938_v56  ;;  %v26966_v56 = vld [vmem:[#allocation35_spill] sm:$0xff] }
 0x6eb   :  { %23079 = vmatpush3.bf16.msra.mxu0 %v26964_v11  ;;  %23109 = vmatpush3.bf16.msra.mxu1 %v26855_v20 }
 0x6ec   :  { %23080 = vmatprep.subr.bf16.mxu0 %v26802_v43  ;;  %23110 = vmatprep.subr.bf16.mxu1 %v26802_v43 }
 0x6ed   :  { %20662 = vmatprep.mubr.msk.f32.mxu1 %vm23798_vm0, %v26805_v12 }
 0x6ef   :  { %23082 = vmatpush3.bf16.msra.mxu0 %v26965_v7  ;;  %23112 = vmatpush3.bf16.msra.mxu1 %v26857_v46 }
 0x6f0   :  { %23095 = vmatprep.subr.bf16.mxu0 %v26802_v43  ;;  %23113 = vmatprep.subr.bf16.mxu1 %v26802_v43 }
 0x6f2   :  { %20606 = vmatmul.mubr.f32.vlgmr.msra.gmra.mrb[134].mxu0 %v25930_v17  ;;  %v26968_v17 = vld [vmem:[#allocation37_spill] sm:$0xff] }
 0x6f3   :  { %23097 = vmatpush3.bf16.msra.mxu0 %v26966_v56  ;;  %23115 = vmatpush3.bf16.msra.mxu1 %v26859_v44 }
 0x6f4   :  { %23098 = vmatprep.subr.bf16.mxu0 %v26802_v43  ;;  %23116 = vmatprep.subr.bf16.mxu1 %v26802_v43 }
 0x6f5   :  { %20643 = vmatprep.mubr.msk.f32.mxu0 %vm23798_vm0, %v26805_v12 }
 0x6f7   :  { %23100 = vmatpush3.bf16.msra.mxu0 %v26967_v0  ;;  %23118 = vmatpush3.bf16.msra.mxu1 %v26905_v5 }
 0x6f8   :  { %23101 = vmatprep.subr.bf16.mxu0 %v26802_v43  ;;  %23131 = vmatprep.subr.bf16.mxu1 %v26802_v43 }
 0x6fa   :  { %20663 = vmatmul.mubr.f32.vlgmr.msra.gmra.mrb[136].mxu1 %v25927_v30 }
 0x6fb   :  { %23103 = vmatpush3.bf16.msra.mxu0 %v26968_v17  ;;  %23133 = vmatpush3.bf16.msra.mxu1 %v26969_v21 }
 0x6fc   :  { %23104 = vmatprep.subr.bf16.mxu0 %v26802_v43  ;;  %23134 = vmatprep.subr.bf16.mxu1 %v26802_v43 }
 0x6fd   :  { %20700 = vmatprep.mubr.msk.f32.mxu1 %vm23798_vm0, %v26805_v12 }
 0x6ff   :  { %23106 = vmatpush3.bf16.msra.mxu0 %v26970_v1  ;;  %23136 = vmatpush3.bf16.msra.mxu1 %v26971_v51 }
 0x700   :  { %23119 = vmatprep.subr.bf16.mxu0 %v26802_v43  ;;  %23137 = vmatprep.subr.bf16.mxu1 %v26802_v43 }
 0x702   :  { %20644 = vmatmul.mubr.f32.vlgmr.msra.gmra.mrb[136].mxu0 %v25927_v30  ;;  %v26976_v30 = vld [vmem:[#allocation41_spill] sm:$0xff] }
 0x703   :  { %23121 = vmatpush3.bf16.msra.mxu0 %v26972_v18  ;;  %23139 = vmatpush3.bf16.msra.mxu1 %v26973_v33 }
 0x704   :  { %23122 = vmatprep.subr.bf16.mxu0 %v26802_v43  ;;  %23140 = vmatprep.subr.bf16.mxu1 %v26802_v43 }
 0x705   :  { %20681 = vmatprep.mubr.msk.f32.mxu0 %vm23798_vm0, %v26805_v12 }
 0x707   :  { %23124 = vmatpush3.bf16.msra.mxu0 %v26974_v2  ;;  %23142 = vmatpush3.bf16.msra.mxu1 %v26975_v28 }
 0x708   :  { %23125 = vmatprep.subr.bf16.mxu0 %v26802_v43  ;;  %23155 = vmatprep.subr.bf16.mxu1 %v26802_v43 }
 0x70a   :  { %20701 = vmatmul.mubr.f32.vlgmr.msra.gmra.mrb[138].mxu1 %v25987_v26 }
 0x70b   :  { %23127 = vmatpush3.bf16.msra.mxu0 %v26976_v30  ;;  %23157 = vmatpush3.bf16.msra.mxu1 %v26972_v18 }
 0x70c   :  { %23128 = vmatprep.subr.bf16.mxu0 %v26802_v43  ;;  %23158 = vmatprep.subr.bf16.mxu1 %v26802_v43 }
 0x70d   :  { %20738 = vmatprep.mubr.msk.f32.mxu1 %vm23798_vm0, %v26805_v12 }
 0x70f   :  { %23130 = vmatpush3.bf16.msra.mxu0 %v26977_v25  ;;  %23160 = vmatpush3.bf16.msra.mxu1 %v26974_v2 }
 0x710   :  { %23143 = vmatprep.subr.bf16.mxu0 %v26802_v43  ;;  %23161 = vmatprep.subr.bf16.mxu1 %v26802_v43 }
 0x712   :  { %20682 = vmatmul.mubr.f32.vlgmr.msra.gmra.mrb[138].mxu0 %v26019_v47  ;;  %v26980_v47 = vld [vmem:[#allocation49_spill] sm:$0xff] }
 0x713   :  { %23145 = vmatpush3.bf16.msra.mxu0 %v26978_v3  ;;  %23163 = vmatpush3.bf16.msra.mxu1 %v26976_v30 }
 0x714   :  { %23146 = vmatprep.subr.bf16.mxu0 %v26802_v43  ;;  %23164 = vmatprep.subr.bf16.mxu1 %v26802_v43 }
 0x715   :  { %20719 = vmatprep.mubr.msk.f32.mxu0 %vm23798_vm0, %v26805_v12 }
 0x717   :  { %23148 = vmatpush3.bf16.msra.mxu0 %v26979_v42  ;;  %23166 = vmatpush3.bf16.msra.mxu1 %v26977_v25 }
 0x718   :  { %23149 = vmatprep.subr.bf16.mxu0 %v26802_v43  ;;  %23179 = vmatprep.subr.bf16.mxu1 %v26802_v43 }
 0x71a   :  { %20739 = vmatmul.mubr.f32.vlgmr.msra.gmra.mrb[140].mxu1 %v26004_v41  ;;  %v26982_v41 = vld [vmem:[#allocation51_spill] sm:$0xff] }
 0x71b   :  { %23151 = vmatpush3.bf16.msra.mxu0 %v26980_v47  ;;  %23181 = vmatpush3.bf16.msra.mxu1 %v26972_v18  ;;  %v26987_v47 = vld [vmem:[#allocation17_spill] sm:$0xff] }
 0x71c   :  { %23152 = vmatprep.subr.bf16.mxu0 %v26802_v43  ;;  %23182 = vmatprep.subr.bf16.mxu1 %v26802_v43 }
 0x71d   :  { %20776 = vmatprep.mubr.msk.f32.mxu1 %vm23798_vm0, %v26805_v12 }
 0x71f   :  { %23154 = vmatpush3.bf16.msra.mxu0 %v26981_v40  ;;  %23184 = vmatpush3.bf16.msra.mxu1 %v26974_v2  ;;  %v26983_v40 = vld [vmem:[#allocation52_spill] sm:$0xff] }
 0x720   :  { %23167 = vmatprep.subr.bf16.mxu0 %v26802_v43  ;;  %23185 = vmatprep.subr.bf16.mxu1 %v26802_v43 }
 0x722   :  { %20720 = vmatmul.mubr.f32.vlgmr.msra.gmra.mrb[140].mxu0 %v25994_v8  ;;  %v26984_v8 = vld [vmem:[#allocation53_spill] sm:$0xff] }
 0x723   :  { %23169 = vmatpush3.bf16.msra.mxu0 %v26982_v41  ;;  %23187 = vmatpush3.bf16.msra.mxu1 %v26976_v30  ;;  %v26985_v41 = vld [vmem:[#allocation16_spill] sm:$0xff] }
 0x724   :  { %23170 = vmatprep.subr.bf16.mxu0 %v26802_v43  ;;  %23188 = vmatprep.subr.bf16.mxu1 %v26802_v43 }
 0x725   :  { %20757 = vmatprep.mubr.msk.f32.mxu0 %vm23798_vm0, %v26805_v12 }
 0x727   :  { %23172 = vmatpush3.bf16.msra.mxu0 %v26983_v40  ;;  %23190 = vmatpush3.bf16.msra.mxu1 %v26977_v25  ;;  %v26986_v40 = vld [vmem:[#allocation54_spill] sm:$0xff] }
 0x728   :  { %23173 = vmatprep.subr.bf16.mxu0 %v26802_v43  ;;  %23203 = vmatprep.subr.bf16.mxu1 %v26802_v43 }
 0x72a   :  { %20777 = vmatmul.mubr.f32.vlgmr.msra.gmra.mrb[142].mxu1 %v25987_v26 }
 0x72b   :  { %23175 = vmatpush3.bf16.msra.mxu0 %v26984_v8  ;;  %23205 = vmatpush3.bf16.msra.mxu1 %v26985_v41  ;;  %v26988_v41 = vld [vmem:[#allocation18_spill] sm:$0xff] }
 0x72c   :  { %23176 = vmatprep.subr.bf16.mxu0 %v26802_v43  ;;  %23206 = vmatprep.subr.bf16.mxu1 %v26802_v43 }
 0x72d   :  { %20814 = vmatprep.mubr.msk.f32.mxu1 %vm23798_vm0, %v26805_v12 }
 0x72f   :  { %23178 = vmatpush3.bf16.msra.mxu0 %v26986_v40  ;;  %23208 = vmatpush3.bf16.msra.mxu1 %v26987_v47  ;;  %v26989_v47 = vld [vmem:[#allocation19_spill] sm:$0xff] }
 0x730   :  { %23191 = vmatprep.subr.bf16.mxu0 %v26802_v43  ;;  %23209 = vmatprep.subr.bf16.mxu1 %v26802_v43 }
 0x732   :  { %20758 = vmatmul.mubr.f32.vlgmr.msra.gmra.mrb[142].mxu0 %v25987_v26 }
 0x733   :  { %23193 = vmatpush3.bf16.msra.mxu0 %v23937_v16  ;;  %23211 = vmatpush3.bf16.msra.mxu1 %v26988_v41 }
 0x734   :  { %23194 = vmatprep.subr.bf16.mxu0 %v26802_v43  ;;  %23212 = vmatprep.subr.bf16.mxu1 %v26802_v43 }
 0x735   :  { %20795 = vmatprep.mubr.msk.f32.mxu0 %vm23798_vm0, %v26805_v12 }
 0x737   :  { %23196 = vmatpush3.bf16.msra.mxu0 %v23943_v19  ;;  %23214 = vmatpush3.bf16.msra.mxu1 %v26989_v47 }
 0x738   :  { %23197 = vmatprep.subr.bf16.mxu0 %v26802_v43  ;;  %23227 = vmatprep.subr.bf16.mxu1 %v26802_v43 }
 0x73b   :  { %23199 = vmatpush3.bf16.msra.mxu0 %v23955_v27 }
 0x73c   :  { %23200 = vmatprep.subr.bf16.mxu0 %v26802_v43 }
 0x73f   :  { %23202 = vmatpush3.bf16.msra.mxu0 %v23991_v48 }
 0x740   :  { %23215 = vmatprep.subr.bf16.mxu0 %v26802_v43 }
 0x74d   :  { %v11167_v26 = vpop.f32.mrb[120].mxu1 }
 0x74e   :  { %v20360_v41 = vpop.f32.mrb[121].mxu1 }
 0x755   :  { %v11056_v40 = vpop.f32.mrb[120].mxu0 }
 0x756   :  { %v11168_v8 = vadd.f32 %v11167_v26, %v11056_v40  ;;  %v20341_v42 = vpop.f32.mrb[121].mxu0 }
 0x75d   :  { %v11336_v3 = vpop.f32.mrb[122].mxu1 }
 0x75e   :  { %v20398_v25 = vpop.f32.mrb[123].mxu1 }
 0x765   :  { %v11255_v47 = vpop.f32.mrb[122].mxu0 }
 0x766   :  { %v11256_v30 = vadd.f32 %v11255_v47, %v11168_v8  ;;  %v20379_v28 = vpop.f32.mrb[123].mxu0 }
 0x768   :  { %v11337_v2 = vadd.f32 %v11336_v3, %v11256_v30 }
 0x76d   :  { %v11510_v33 = vpop.f32.mrb[124].mxu1 }
 0x76e   :  { %v20436_v18 = vpop.f32.mrb[125].mxu1 }
 0x775   :  { %v11431_v51 = vpop.f32.mrb[124].mxu0 }
 0x776   :  { %v11432_v1 = vadd.f32 %v11431_v51, %v11337_v2  ;;  %v20417_v21 = vpop.f32.mrb[125].mxu0 }
 0x777   :  { %v26222_v21 = vpop.permute.xlu1 %13132 }
 0x778   :  { %v11511_v17 = vadd.f32 %v11510_v33, %v11432_v1  ;;  %vm13134_vm15 = vcmp.eq.s32.totalorder %v26222_v21, 1  ;;  %v26991_v21 = vld [vmem:[#allocation32_spill] sm:$0xff] }
 0x77d   :  { %v11707_v0 = vpop.f32.mrb[126].mxu1 }
 0x77e   :  { %v20474_v56 = vpop.f32.mrb[127].mxu1 }
 0x785   :  { %v11596_v7 = vpop.f32.mrb[126].mxu0 }
 0x786   :  { %v11597_v11 = vadd.f32 %v11596_v7, %v11511_v17  ;;  %v20455_v41 = vpop.f32.mrb[127].mxu0 }
 0x788   :  { %v11708_v50 = vadd.f32 %v11707_v0, %v11597_v11 }
 0x78d   :  { %v11876_v40 = vpop.f32.mrb[128].mxu1 }
 0x78e   :  { %v20512_v42 = vpop.f32.mrb[129].mxu1 }
 0x795   :  { %v11795_v26 = vpop.f32.mrb[128].mxu0 }
 0x796   :  { %v11796_v25 = vadd.f32 %v11795_v26, %v11708_v50  ;;  %v20493_v29 = vpop.f32.mrb[129].mxu0 }
 0x798   :  { %v11877_v8 = vadd.f32 %v11876_v40, %v11796_v25 }
 0x79d   :  { %v12050_v28 = vpop.f32.mrb[130].mxu1 }
 0x79e   :  { %v20550_v30 = vpop.f32.mrb[131].mxu1 }
 0x7a5   :  { %v11971_v3 = vpop.f32.mrb[130].mxu0 }
 0x7a6   :  { %v11972_v18 = vadd.f32 %v11971_v3, %v11877_v8  ;;  %v20531_v47 = vpop.f32.mrb[131].mxu0 }
 0x7a8   :  { %v12051_v51 = vadd.f32 %v12050_v28, %v11972_v18 }
 0x7aa   :  { %v12054_v56 = vadd.f32 %v25916_v37, %v12051_v51 }
 0x7ac   :  { %v26229_v11 = vsel %vm13134_vm15, %v12054_v56, %v25923_v23 }
 0x7ad   :  { %v13141_v29 = vsel %vm137_vm1, %v26229_v11, 0  ;;  %v12245_v50 = vpop.f32.mrb[132].mxu1 }
 0x7ae   :  { %v26233_v7 = vand.u32 4294901760, %v13141_v29  ;;  %v20588_v0 = vpop.f32.mrb[133].mxu1 }
 0x7af   :  { %v26994_v0 = vld [vmem:[#allocation35_spill] sm:$0xff] }
 0x7b0   :  { %v26236_v17 = vsub.f32 %v13141_v29, %v26233_v7  ;;  %20815 = vmatmul.mubr.f32.vlgmr.msra.gmra.mrb[144].mxu1 %v26233_v7  ;;  %v26992_v29 = vld [vmem:[#allocation33_spill] sm:$0xff] }
 0x7b1   :  { %23229 = vmatpush3.bf16.msra.mxu1 %v23937_v16  ;;  %20852 = vmatprep.mubr.msk.f32.mxu1 %vm23798_vm0, %v26805_v12 }
 0x7b2   :  { %23230 = vmatprep.subr.bf16.mxu1 %v26802_v43  ;;  %v26244_v37 = vand.u32 4294901760, %v26236_v17 }
 0x7b4   :  { %v13219_v23 = vsub.f32 %v26236_v17, %v26244_v37 }
 0x7b5   :  { %23232 = vmatpush3.bf16.msra.mxu1 %v23943_v19  ;;  %v12134_v1 = vpop.f32.mrb[132].mxu0 }
 0x7b6   :  { %v12246_v33 = vadd.f32 %v12245_v50, %v12134_v1  ;;  %v20569_v2 = vpop.f32.mrb[133].mxu0  ;;  %23233 = vmatprep.subr.bf16.mxu1 %v26802_v43  ;;  %v26250_v41 = vand.u32 4294901760, %v13219_v23  ;;  %v26993_v50 = vld [vmem:[#allocation34_spill] sm:$0xff] }
 0x7b7   :  { %v26997_v23 = vld [vmem:[#allocation42_spill] sm:$0xff]  ;;  %v27000_v2 = vld [vmem:[#allocation39_spill] sm:$0xff] }
 0x7b8   :  { %20796 = vmatmul.mubr.f32.vlgmr.msra.gmra.mrb[144].mxu0 %v26250_v41  ;;  %v26998_v1 = vld [vmem:[#allocation38_spill] sm:$0xff] }
 0x7b9   :  { %23217 = vmatpush3.bf16.msra.mxu0 %v24011_v55  ;;  %23235 = vmatpush3.bf16.msra.mxu1 %v23955_v27 }
 0x7ba   :  { %23218 = vmatprep.subr.bf16.mxu0 %v26802_v43  ;;  %23236 = vmatprep.subr.bf16.mxu1 %v26802_v43 }
 0x7bb   :  { %20833 = vmatprep.mubr.msk.f32.mxu0 %vm23798_vm0, %v26805_v12 }
 0x7bd   :  { %23220 = vmatpush3.bf16.msra.mxu0 %v24022_v59  ;;  %23238 = vmatpush3.bf16.msra.mxu1 %v23991_v48  ;;  %v12414_v40 = vpop.f32.mrb[134].mxu1 }
 0x7be   :  { %v20626_v42 = vpop.f32.mrb[135].mxu1  ;;  %23221 = vmatprep.subr.bf16.mxu0 %v26802_v43  ;;  %23251 = vmatprep.subr.bf16.mxu1 %v26802_v43 }
 0x7bf   :  { %v27003_v42 = vld [vmem:[#allocation47_spill] sm:$0xff] }
 0x7c0   :  { %20853 = vmatmul.mubr.f32.vlgmr.msra.gmra.mrb[146].mxu1 %v26244_v37 }
 0x7c1   :  { %23223 = vmatpush3.bf16.msra.mxu0 %v24032_v60  ;;  %23253 = vmatpush3.bf16.msra.mxu1 %v23937_v16 }
 0x7c2   :  { %23224 = vmatprep.subr.bf16.mxu0 %v26802_v43  ;;  %23254 = vmatprep.subr.bf16.mxu1 %v26802_v43 }
 0x7c3   :  { %20890 = vmatprep.mubr.msk.f32.mxu1 %vm23798_vm0, %v26805_v12 }
 0x7c5   :  { %23226 = vmatpush3.bf16.msra.mxu0 %v24041_v61  ;;  %23256 = vmatpush3.bf16.msra.mxu1 %v23943_v19  ;;  %v12333_v55 = vpop.f32.mrb[134].mxu0 }
 0x7c6   :  { %v12334_v59 = vadd.f32 %v12333_v55, %v12246_v33  ;;  %v20607_v26 = vpop.f32.mrb[135].mxu0  ;;  %23239 = vmatprep.subr.bf16.mxu0 %v26802_v43  ;;  %23257 = vmatprep.subr.bf16.mxu1 %v26802_v43  ;;  %v26999_v33 = vld [vmem:[#allocation44_spill] sm:$0xff]  ;;  %v27005_v55 = vld [vmem:[#allocation43_spill] sm:$0xff] }
 0x7c7   :  { %v27007_v26 = vld [vmem:[#allocation48_spill] sm:$0xff] }
 0x7c8   :  { %20834 = vmatmul.mubr.f32.vlgmr.msra.gmra.mrb[146].mxu0 %v26236_v17  ;;  %v12415_v16 = vadd.f32 %v12414_v40, %v12334_v59  ;;  %v27002_v40 = vld [vmem:[#allocation40_spill] sm:$0xff]  ;;  %v27006_v59 = vld [vmem:[#allocation46_spill] sm:$0xff] }
 0x7c9   :  { %23241 = vmatpush3.bf16.msra.mxu0 %v24053_v62  ;;  %23259 = vmatpush3.bf16.msra.mxu1 %v23955_v27  ;;  %v23646_v27 = vld [vmem:[#allocation2 + $0x30] sm:$0xff] }
 0x7ca   :  { %23242 = vmatprep.subr.bf16.mxu0 %v26802_v43  ;;  %23260 = vmatprep.subr.bf16.mxu1 %v26802_v43  ;;  %v13681_v61 = vsel %vm137_vm1, %v23646_v27, 0  ;;  %v27011_v27 = vld [vmem:[#allocation52_spill] sm:$0xff] }
 0x7cb   :  { %20871 = vmatprep.mubr.msk.f32.mxu0 %vm23798_vm0, %v26805_v12 }
 0x7cd   :  { %23244 = vmatpush3.bf16.msra.mxu0 %v24064_v6  ;;  %23262 = vmatpush3.bf16.msra.mxu1 %v23991_v48  ;;  %v12588_v19 = vpop.f32.mrb[136].mxu1  ;;  %v26293_v48 = vand.u32 4294901760, %v13681_v61 }
 0x7ce   :  { %v20664_v60 = vpop.f32.mrb[137].mxu1  ;;  %23245 = vmatprep.subr.bf16.mxu0 %v26802_v43  ;;  %23275 = vmatprep.subr.bf16.mxu1 %v26802_v43 }
 0x7cf   :  { %v27010_v60 = vld [vmem:[#allocation51_spill] sm:$0xff] }
 0x7d0   :  { %20891 = vmatmul.mubr.f32.vlgmr.msra.gmra.mrb[148].mxu1 %v26233_v7 }
 0x7d1   :  { %23247 = vmatpush3.bf16.msra.mxu0 %v24080_v13  ;;  %23277 = vmatpush3.bf16.msra.mxu1 %v24159_v63  ;;  %v26300_v13 = vsub.f32 %v13681_v61, %v26293_v48  ;;  %v27012_v61 = vld [vmem:[#allocation53_spill] sm:$0xff] }
 0x7d2   :  { %23248 = vmatprep.subr.bf16.mxu0 %v26802_v43  ;;  %23278 = vmatprep.subr.bf16.mxu1 %v26802_v43 }
 0x7d3   :  { %20928 = vmatprep.mubr.msk.f32.mxu1 %vm23798_vm0, %v26805_v12 }
 0x7d5   :  { %23250 = vmatpush3.bf16.msra.mxu0 %v24101_v24  ;;  %23280 = vmatpush3.bf16.msra.mxu1 %v24180_v14  ;;  %v12509_v62 = vpop.f32.mrb[136].mxu0  ;;  %v26310_v24 = vand.u32 4294901760, %v26300_v13 }
 0x7d6   :  { %v12510_v6 = vadd.f32 %v12509_v62, %v12415_v16  ;;  %v20645_v25 = vpop.f32.mrb[137].mxu0  ;;  %23263 = vmatprep.subr.bf16.mxu0 %v26802_v43  ;;  %23281 = vmatprep.subr.bf16.mxu1 %v26802_v43  ;;  %v27008_v16 = vld [vmem:[#allocation49_spill] sm:$0xff]  ;;  %v27013_v62 = vld [vmem:[#allocation54_spill] sm:$0xff] }
 0x7d7   :  { %v13759_v8 = vsub.f32 %v26300_v13, %v26310_v24 }
 0x7d8   :  { %20872 = vmatmul.mubr.f32.vlgmr.msra.gmra.mrb[148].mxu0 %v26233_v7  ;;  %v12589_v63 = vadd.f32 %v12588_v19, %v12510_v6  ;;  %v27009_v19 = vld [vmem:[#allocation50_spill] sm:$0xff] }
 0x7d9   :  { %23265 = vmatpush3.bf16.msra.mxu0 %v24121_v35  ;;  %23283 = vmatpush3.bf16.msra.mxu1 %v24205_v39 }
 0x7da   :  { %23266 = vmatprep.subr.bf16.mxu0 %v26802_v43  ;;  %23284 = vmatprep.subr.bf16.mxu1 %v26802_v43 }
 0x7db   :  { %20909 = vmatprep.mubr.msk.f32.mxu0 %vm23798_vm0, %v26805_v12 }
 0x7dd   :  { %23268 = vmatpush3.bf16.msra.mxu0 %v24140_v45  ;;  %23286 = vmatpush3.bf16.msra.mxu1 %v24213_v53  ;;  %v12782_v14 = vpop.f32.mrb[138].mxu1  ;;  %v26325_v53 = vand.u32 4294901760, %v13759_v8 }
 0x7de   :  { %23269 = vmatprep.subr.bf16.mxu0 %v26802_v43  ;;  %23299 = vmatprep.subr.bf16.mxu1 %v26802_v43  ;;  %v20702_v39 = vpop.f32.mrb[139].mxu1 }
 0x7e0   :  { %20929 = vmatmul.mubr.f32.vlgmr.msra.gmra.mrb[150].mxu1 %v26293_v48 }
 0x7e1   :  { %23271 = vmatpush3.bf16.msra.mxu0 %v24149_v52  ;;  %23301 = vmatpush3.bf16.msra.mxu1 %v24121_v35 }
 0x7e2   :  { %23272 = vmatprep.subr.bf16.mxu0 %v26802_v43  ;;  %23302 = vmatprep.subr.bf16.mxu1 %v26802_v43 }
 0x7e3   :  { %20966 = vmatprep.mubr.msk.f32.mxu1 %vm23798_vm0, %v26805_v12 }
 0x7e5   :  { %23274 = vmatpush3.bf16.msra.mxu0 %v24178_v10  ;;  %23304 = vmatpush3.bf16.msra.mxu1 %v24140_v45  ;;  %v12671_v28 = vpop.f32.mrb[138].mxu0 }
 0x7e6   :  { %v12672_v30 = vadd.f32 %v12671_v28, %v12589_v63  ;;  %23287 = vmatprep.subr.bf16.mxu0 %v26802_v43  ;;  %23305 = vmatprep.subr.bf16.mxu1 %v26802_v43  ;;  %v20683_v3 = vpop.f32.mrb[139].mxu0 }
 0x7e8   :  { %v12783_v18 = vadd.f32 %v12782_v14, %v12672_v30  ;;  %20910 = vmatmul.mubr.f32.vlgmr.msra.gmra.mrb[150].mxu0 %v26325_v53 }
 0x7e9   :  { %23289 = vmatpush3.bf16.msra.mxu0 %v24201_v36  ;;  %23307 = vmatpush3.bf16.msra.mxu1 %v24149_v52 }
 0x7ea   :  { %23290 = vmatprep.subr.bf16.mxu0 %v26802_v43  ;;  %23308 = vmatprep.subr.bf16.mxu1 %v26802_v43 }
 0x7eb   :  { %20947 = vmatprep.mubr.msk.f32.mxu0 %vm23798_vm0, %v26805_v12 }
 0x7ed   :  { %23292 = vmatpush3.bf16.msra.mxu0 %v24217_v57  ;;  %23310 = vmatpush3.bf16.msra.mxu1 %v24178_v10  ;;  %v12951_v47 = vpop.f32.mrb[140].mxu1 }
 0x7ee   :  { %23293 = vmatprep.subr.bf16.mxu0 %v26802_v43  ;;  %23323 = vmatprep.subr.bf16.mxu1 %v26802_v43  ;;  %v20740_v51 = vpop.f32.mrb[141].mxu1 }
 0x7f0   :  { %20967 = vmatmul.mubr.f32.vlgmr.msra.gmra.mrb[152].mxu1 %v26310_v24 }
 0x7f1   :  { %23295 = vmatpush3.bf16.msra.mxu0 %v24228_v4  ;;  %23325 = vmatpush3.bf16.msra.mxu1 %v24121_v35 }
 0x7f2   :  { %23296 = vmatprep.subr.bf16.mxu0 %v26802_v43  ;;  %23326 = vmatprep.subr.bf16.mxu1 %v26802_v43 }
 0x7f3   :  { %21004 = vmatprep.mubr.msk.f32.mxu1 %vm23798_vm0, %v26805_v12 }
 0x7f5   :  { %23298 = vmatpush3.bf16.msra.mxu0 %v24237_v9  ;;  %23328 = vmatpush3.bf16.msra.mxu1 %v24140_v45  ;;  %v12870_v36 = vpop.f32.mrb[140].mxu0 }
 0x7f6   :  { %v12871_v57 = vadd.f32 %v12870_v36, %v12783_v18  ;;  %23311 = vmatprep.subr.bf16.mxu0 %v26802_v43  ;;  %23329 = vmatprep.subr.bf16.mxu1 %v26802_v43  ;;  %v20721_v4 = vpop.f32.mrb[141].mxu0 }
 0x7f8   :  { %v12952_v56 = vadd.f32 %v12951_v47, %v12871_v57  ;;  %20948 = vmatmul.mubr.f32.vlgmr.msra.gmra.mrb[152].mxu0 %v26300_v13 }
 0x7f9   :  { %23313 = vmatpush3.bf16.msra.mxu0 %v24249_v15  ;;  %23331 = vmatpush3.bf16.msra.mxu1 %v24149_v52 }
 0x7fa   :  { %23314 = vmatprep.subr.bf16.mxu0 %v26802_v43  ;;  %23332 = vmatprep.subr.bf16.mxu1 %v26802_v43 }
 0x7fb   :  { %20985 = vmatprep.mubr.msk.f32.mxu0 %vm23798_vm0, %v26805_v12 }
 0x7fd   :  { %23316 = vmatpush3.bf16.msra.mxu0 %v26850_v32  ;;  %23334 = vmatpush3.bf16.msra.mxu1 %v24178_v10  ;;  %v13125_v35 = vpop.f32.mrb[142].mxu1  ;;  %v26381_v32 = vld [vmem:[%s26677_s6] ss:$0 sm:$0xff] }
 0x7fe   :  { %23317 = vmatprep.subr.bf16.mxu0 %v26802_v43  ;;  %23347 = vmatprep.subr.bf16.mxu1 %v26802_v43  ;;  %v20778_v45 = vpop.f32.mrb[143].mxu1 }
 0x800   :  { %21005 = vmatmul.mubr.f32.vlgmr.msra.gmra.mrb[154].mxu1 %v26293_v48 }
 0x801   :  { %23319 = vmatpush3.bf16.msra.mxu0 %v26851_v58  ;;  %23349 = vmatpush3.bf16.msra.mxu1 %v26852_v38 }
 0x802   :  { %23320 = vmatprep.subr.bf16.mxu0 %v26802_v43  ;;  %23350 = vmatprep.subr.bf16.mxu1 %v26802_v43 }
 0x803   :  { %21042 = vmatprep.mubr.msk.f32.mxu1 %vm23798_vm0, %v26805_v12 }
 0x805   :  { %23322 = vmatpush3.bf16.msra.mxu0 %v26853_v22  ;;  %23352 = vmatpush3.bf16.msra.mxu1 %v26854_v34  ;;  %v13046_v52 = vpop.f32.mrb[142].mxu0 }
 0x806   :  { %v13047_v10 = vadd.f32 %v13046_v52, %v12952_v56  ;;  %23335 = vmatprep.subr.bf16.mxu0 %v26802_v43  ;;  %23353 = vmatprep.subr.bf16.mxu1 %v26802_v43  ;;  %v20759_v9 = vpop.f32.mrb[143].mxu0 }
 0x808   :  { %v13126_v15 = vadd.f32 %v13125_v35, %v13047_v10  ;;  %20986 = vmatmul.mubr.f32.vlgmr.msra.gmra.mrb[154].mxu0 %v26293_v48 }
 0x809   :  { %23337 = vmatpush3.bf16.msra.mxu0 %v26855_v20  ;;  %23355 = vmatpush3.bf16.msra.mxu1 %v26856_v49 }
 0x80a   :  { %v13129_v58 = vadd.f32 %v26381_v32, %v13126_v15  ;;  %23338 = vmatprep.subr.bf16.mxu0 %v26802_v43  ;;  %23356 = vmatprep.subr.bf16.mxu1 %v26802_v43 }
 0x80b   :  { %21023 = vmatprep.mubr.msk.f32.mxu0 %vm23798_vm0, %v26805_v12 }
 0x80c   :  { %v26391_v22 = vsel %vm13134_vm15, %v13129_v58, %v26080_v31  ;;  %v26990_v31 = vld [vmem:[#allocation30_spill] sm:$0xff] }
 0x80d   :  { %23340 = vmatpush3.bf16.msra.mxu0 %v26857_v46  ;;  %23358 = vmatpush3.bf16.msra.mxu1 %v26858_v54 }
 0x80e   :  { %23341 = vmatprep.subr.bf16.mxu0 %v26802_v43  ;;  %23371 = vmatprep.subr.bf16.mxu1 %v26802_v43 }
 0x810   :  { %21043 = vmatmul.mubr.f32.vlgmr.msra.gmra.mrb[156].mxu1 %v26233_v7 }
 0x811   :  { %23343 = vmatpush3.bf16.msra.mxu0 %v26859_v44  ;;  %23373 = vmatpush3.bf16.msra.mxu1 %v26855_v20 }
 0x812   :  { %23344 = vmatprep.subr.bf16.mxu0 %v26802_v43  ;;  %23374 = vmatprep.subr.bf16.mxu1 %v26802_v43 }
 0x813   :  { %21080 = vmatprep.mubr.msk.f32.mxu1 %vm23798_vm0, %v26805_v12 }
 0x815   :  { %23346 = vmatpush3.bf16.msra.mxu0 %v26905_v5  ;;  %23376 = vmatpush3.bf16.msra.mxu1 %v26857_v46 }
 0x816   :  { %23359 = vmatprep.subr.bf16.mxu0 %v26802_v43  ;;  %23377 = vmatprep.subr.bf16.mxu1 %v26802_v43 }
 0x818   :  { %21024 = vmatmul.mubr.f32.vlgmr.msra.gmra.mrb[156].mxu0 %v26250_v41  ;;  %v27001_v41 = vld [vmem:[#allocation45_spill] sm:$0xff] }
 0x819   :  { %23361 = vmatpush3.bf16.msra.mxu0 %v26990_v31  ;;  %23379 = vmatpush3.bf16.msra.mxu1 %v26859_v44 }
 0x81a   :  { %23362 = vmatprep.subr.bf16.mxu0 %v26802_v43  ;;  %23380 = vmatprep.subr.bf16.mxu1 %v26802_v43 }
 0x81b   :  { %21061 = vmatprep.mubr.msk.f32.mxu0 %vm23798_vm0, %v26805_v12 }
 0x81d   :  { %23364 = vmatpush3.bf16.msra.mxu0 %v26991_v21  ;;  %23382 = vmatpush3.bf16.msra.mxu1 %v26905_v5 }
 0x81e   :  { %23365 = vmatprep.subr.bf16.mxu0 %v26802_v43  ;;  %23395 = vmatprep.subr.bf16.mxu1 %v26802_v43 }
 0x820   :  { %21081 = vmatmul.mubr.f32.vlgmr.msra.gmra.mrb[158].mxu1 %v26244_v37  ;;  %v26995_v37 = vld [vmem:[#allocation36_spill] sm:$0xff] }
 0x821   :  { %23367 = vmatpush3.bf16.msra.mxu0 %v26992_v29  ;;  %23397 = vmatpush3.bf16.msra.mxu1 %v26855_v20 }
 0x822   :  { %23368 = vmatprep.subr.bf16.mxu0 %v26802_v43  ;;  %23398 = vmatprep.subr.bf16.mxu1 %v26802_v43 }
 0x823   :  { %21118 = vmatprep.mubr.msk.f32.mxu1 %vm23798_vm0, %v26805_v12 }
 0x825   :  { %23370 = vmatpush3.bf16.msra.mxu0 %v26993_v50  ;;  %23400 = vmatpush3.bf16.msra.mxu1 %v26857_v46 }
 0x826   :  { %23383 = vmatprep.subr.bf16.mxu0 %v26802_v43  ;;  %23401 = vmatprep.subr.bf16.mxu1 %v26802_v43 }
 0x828   :  { %21062 = vmatmul.mubr.f32.vlgmr.msra.gmra.mrb[158].mxu0 %v26236_v17  ;;  %v26996_v17 = vld [vmem:[#allocation37_spill] sm:$0xff] }
 0x829   :  { %23385 = vmatpush3.bf16.msra.mxu0 %v26994_v0  ;;  %23403 = vmatpush3.bf16.msra.mxu1 %v26859_v44 }
 0x82a   :  { %23386 = vmatprep.subr.bf16.mxu0 %v26802_v43  ;;  %23404 = vmatprep.subr.bf16.mxu1 %v26802_v43 }
 0x82b   :  { %21099 = vmatprep.mubr.msk.f32.mxu0 %vm23798_vm0, %v26805_v12 }
 0x82d   :  { %23388 = vmatpush3.bf16.msra.mxu0 %v26995_v37  ;;  %23406 = vmatpush3.bf16.msra.mxu1 %v26905_v5 }
 0x82e   :  { %23389 = vmatprep.subr.bf16.mxu0 %v26802_v43  ;;  %23419 = vmatprep.subr.bf16.mxu1 %v26802_v43 }
 0x830   :  { %21119 = vmatmul.mubr.f32.vlgmr.msra.gmra.mrb[160].mxu1 %v26233_v7 }
 0x831   :  { %23391 = vmatpush3.bf16.msra.mxu0 %v26996_v17  ;;  %23421 = vmatpush3.bf16.msra.mxu1 %v26997_v23 }
 0x832   :  { %23392 = vmatprep.subr.bf16.mxu0 %v26802_v43  ;;  %23422 = vmatprep.subr.bf16.mxu1 %v26802_v43 }
 0x833   :  { %21156 = vmatprep.mubr.msk.f32.mxu1 %vm23798_vm0, %v26805_v12 }
 0x835   :  { %23394 = vmatpush3.bf16.msra.mxu0 %v26998_v1  ;;  %23424 = vmatpush3.bf16.msra.mxu1 %v26999_v33 }
 0x836   :  { %23407 = vmatprep.subr.bf16.mxu0 %v26802_v43  ;;  %23425 = vmatprep.subr.bf16.mxu1 %v26802_v43 }
 0x838   :  { %21100 = vmatmul.mubr.f32.vlgmr.msra.gmra.mrb[160].mxu0 %v26233_v7  ;;  %v27004_v7 = vld [vmem:[#allocation41_spill] sm:$0xff] }
 0x839   :  { %23409 = vmatpush3.bf16.msra.mxu0 %v27000_v2  ;;  %23427 = vmatpush3.bf16.msra.mxu1 %v27001_v41 }
 0x83a   :  { %23410 = vmatprep.subr.bf16.mxu0 %v26802_v43  ;;  %23428 = vmatprep.subr.bf16.mxu1 %v26802_v43 }
 0x83b   :  { %21137 = vmatprep.mubr.msk.f32.mxu0 %vm23798_vm0, %v26805_v12 }
 0x83d   :  { %23412 = vmatpush3.bf16.msra.mxu0 %v27002_v40  ;;  %23430 = vmatpush3.bf16.msra.mxu1 %v27003_v42 }
 0x83e   :  { %23413 = vmatprep.subr.bf16.mxu0 %v26802_v43  ;;  %23443 = vmatprep.subr.bf16.mxu1 %v26802_v43 }
 0x840   :  { %21157 = vmatmul.mubr.f32.vlgmr.msra.gmra.mrb[162].mxu1 %v26293_v48 }
 0x841   :  { %23415 = vmatpush3.bf16.msra.mxu0 %v27004_v7  ;;  %23445 = vmatpush3.bf16.msra.mxu1 %v27000_v2 }
 0x842   :  { %23416 = vmatprep.subr.bf16.mxu0 %v26802_v43  ;;  %23446 = vmatprep.subr.bf16.mxu1 %v26802_v43 }
 0x843   :  { %21194 = vmatprep.mubr.msk.f32.mxu1 %vm23798_vm0, %v26805_v12 }
 0x845   :  { %23418 = vmatpush3.bf16.msra.mxu0 %v27005_v55  ;;  %23448 = vmatpush3.bf16.msra.mxu1 %v27002_v40 }
 0x846   :  { %23431 = vmatprep.subr.bf16.mxu0 %v26802_v43  ;;  %23449 = vmatprep.subr.bf16.mxu1 %v26802_v43 }
 0x848   :  { %21138 = vmatmul.mubr.f32.vlgmr.msra.gmra.mrb[162].mxu0 %v26325_v53 }
 0x849   :  { %23433 = vmatpush3.bf16.msra.mxu0 %v27006_v59  ;;  %23451 = vmatpush3.bf16.msra.mxu1 %v27004_v7 }
 0x84a   :  { %23434 = vmatprep.subr.bf16.mxu0 %v26802_v43  ;;  %23452 = vmatprep.subr.bf16.mxu1 %v26802_v43 }
 0x84b   :  { %21175 = vmatprep.mubr.msk.f32.mxu0 %vm23798_vm0, %v26805_v12 }
 0x84d   :  { %23436 = vmatpush3.bf16.msra.mxu0 %v27007_v26  ;;  %23454 = vmatpush3.bf16.msra.mxu1 %v27005_v55 }
 0x84e   :  { %23437 = vmatprep.subr.bf16.mxu0 %v26802_v43  ;;  %23467 = vmatprep.subr.bf16.mxu1 %v26802_v43 }
 0x850   :  { %21195 = vmatmul.mubr.f32.vlgmr.msra.gmra.mrb[164].mxu1 %v26310_v24 }
 0x851   :  { %23439 = vmatpush3.bf16.msra.mxu0 %v27008_v16  ;;  %23469 = vmatpush3.bf16.msra.mxu1 %v27000_v2 }
 0x852   :  { %23440 = vmatprep.subr.bf16.mxu0 %v26802_v43  ;;  %23470 = vmatprep.subr.bf16.mxu1 %v26802_v43 }
 0x853   :  { %21232 = vmatprep.mubr.msk.f32.mxu1 %vm23798_vm0, %v26805_v12 }
 0x855   :  { %23442 = vmatpush3.bf16.msra.mxu0 %v27009_v19  ;;  %23472 = vmatpush3.bf16.msra.mxu1 %v27002_v40 }
 0x856   :  { %23455 = vmatprep.subr.bf16.mxu0 %v26802_v43  ;;  %23473 = vmatprep.subr.bf16.mxu1 %v26802_v43 }
 0x858   :  { %21176 = vmatmul.mubr.f32.vlgmr.msra.gmra.mrb[164].mxu0 %v26300_v13 }
 0x859   :  { %23457 = vmatpush3.bf16.msra.mxu0 %v27010_v60  ;;  %23475 = vmatpush3.bf16.msra.mxu1 %v27004_v7 }
 0x85a   :  { %23458 = vmatprep.subr.bf16.mxu0 %v26802_v43  ;;  %23476 = vmatprep.subr.bf16.mxu1 %v26802_v43 }
 0x85b   :  { %21213 = vmatprep.mubr.msk.f32.mxu0 %vm23798_vm0, %v26805_v12 }
 0x85d   :  { %23460 = vmatpush3.bf16.msra.mxu0 %v27011_v27  ;;  %23478 = vmatpush3.bf16.msra.mxu1 %v27005_v55 }
 0x85e   :  { %23461 = vmatprep.subr.bf16.mxu0 %v26802_v43  ;;  %23491 = vmatprep.subr.bf16.mxu1 %v26802_v43 }
 0x860   :  { %21233 = vmatmul.mubr.f32.vlgmr.msra.gmra.mrb[166].mxu1 %v26293_v48 }
 0x861   :  { %23463 = vmatpush3.bf16.msra.mxu0 %v27012_v61  ;;  %23493 = vmatpush3.bf16.msra.mxu1 %v26852_v38 }
 0x862   :  { %23464 = vmatprep.subr.bf16.mxu0 %v26802_v43  ;;  %23494 = vmatprep.subr.bf16.mxu1 %v26802_v43 }
 0x863   :  { %21270 = vmatprep.mubr.msk.f32.mxu1 %vm23798_vm0, %v26805_v12 }
 0x865   :  { %23466 = vmatpush3.bf16.msra.mxu0 %v27013_v62  ;;  %23496 = vmatpush3.bf16.msra.mxu1 %v26854_v34 }
 0x866   :  { %23479 = vmatprep.subr.bf16.mxu0 %v26802_v43  ;;  %23497 = vmatprep.subr.bf16.mxu1 %v26802_v43 }
 0x868   :  { %21214 = vmatmul.mubr.f32.vlgmr.msra.gmra.mrb[166].mxu0 %v26293_v48 }
 0x869   :  { %23481 = vmatpush3.bf16.msra.mxu0 %v26855_v20  ;;  %23499 = vmatpush3.bf16.msra.mxu1 %v26856_v49 }
 0x86a   :  { %23482 = vmatprep.subr.bf16.mxu0 %v26802_v43  ;;  %23500 = vmatprep.subr.bf16.mxu1 %v26802_v43 }
 0x86b   :  { %21251 = vmatprep.mubr.msk.f32.mxu0 %vm23798_vm0, %v26805_v12 }
 0x86d   :  { %23484 = vmatpush3.bf16.msra.mxu0 %v26857_v46  ;;  %23502 = vmatpush3.bf16.msra.mxu1 %v26858_v54 }
 0x86e   :  { %23485 = vmatprep.subr.bf16.mxu0 %v26802_v43  ;;  %23515 = vmatprep.subr.bf16.mxu1 %v26802_v43 }
 0x871   :  { %23487 = vmatpush3.bf16.msra.mxu0 %v26859_v44 }
 0x872   :  { %23488 = vmatprep.subr.bf16.mxu0 %v26802_v43 }
 0x875   :  { %23490 = vmatpush3.bf16.msra.mxu0 %v26905_v5 }
 0x876   :  { %23503 = vmatprep.subr.bf16.mxu0 %v26802_v43 }
 0x883   :  { %v13333_v38 = vpop.f32.mrb[144].mxu1 }
 0x884   :  { %v20816_v34 = vpop.f32.mrb[145].mxu1 }
 0x88b   :  { %v13222_v49 = vpop.f32.mrb[144].mxu0 }
 0x88c   :  { %v13334_v48 = vadd.f32 %v13333_v38, %v13222_v49  ;;  %v20797_v6 = vpop.f32.mrb[145].mxu0 }
 0x893   :  { %v13502_v25 = vpop.f32.mrb[146].mxu1 }
 0x894   :  { %v20854_v13 = vpop.f32.mrb[147].mxu1 }
 0x89b   :  { %v13421_v54 = vpop.f32.mrb[146].mxu0 }
 0x89c   :  { %v13422_v63 = vadd.f32 %v13421_v54, %v13334_v48  ;;  %v20835_v24 = vpop.f32.mrb[147].mxu0  ;;  %v26533_v48 = vpop.permute.xlu0 %15298 }
 0x89d   :  { %vm15300_vm2 = vcmp.eq.s32.totalorder %v26533_v48, 1 }
 0x89e   :  { %v13503_v14 = vadd.f32 %v13502_v25, %v13422_v63  ;;  %v23648_v25 = vld [vmem:[%s26674_s3] ss:$0 sm:$0xff]  ;;  %s23801_s3 = smov [#allocation11]  }
 0x89f   :  { %s16410_s1 = sshll.u32 %s23801_s3, 4  ;;  %s16411_s1 = int_to_ptr.vmem [resolvable:$true] %s16410_s1 }
 0x8a0   :  { %s23760_s0 = scalar_lea.vmem %s16411_s1, 128  ;;  %p23765_p13 = scmp.lt.s32.totalorder %s16411_s1, %s16411_s1 }
 0x8a1   :  { %p23761_p12 = scmp.ne.s32.totalorder %s16411_s1, %s23760_s0  ;;  %p23766_p0 = scmp.lt.s32.totalorder %s23760_s0, %s23760_s0 }
 0x8a3   :  { %v13676_v39 = vpop.f32.mrb[148].mxu1  ;;  %p23767_p1 = por %p23766_p0, %p23765_p13 }
 0x8a4   :  { %v20892_v8 = vpop.f32.mrb[149].mxu1 }
 0x8a5   :  { %p23768_p2 = pnand %p23767_p1, %p23761_p12 }
 0x8ab   :  { %v13597_v53 = vpop.f32.mrb[148].mxu0 }
 0x8ac   :  { %v13598_v28 = vadd.f32 %v13597_v53, %v13503_v14  ;;  %v20873_v30 = vpop.f32.mrb[149].mxu0 }
 0x8ae   :  { %v13677_v3 = vadd.f32 %v13676_v39, %v13598_v28 }
 0x8b3   :  { %v13873_v18 = vpop.f32.mrb[150].mxu1 }
 0x8b4   :  { %v20930_v47 = vpop.f32.mrb[151].mxu1 }
 0x8bb   :  { %v13762_v51 = vpop.f32.mrb[150].mxu0 }
 0x8bc   :  { %v13763_v36 = vadd.f32 %v13762_v51, %v13677_v3  ;;  %v20911_v57 = vpop.f32.mrb[151].mxu0 }
 0x8be   :  { %v13874_v4 = vadd.f32 %v13873_v18, %v13763_v36 }
 0x8c3   :  { %v14042_v56 = vpop.f32.mrb[152].mxu1 }
 0x8c4   :  { %v20968_v35 = vpop.f32.mrb[153].mxu1 }
 0x8cb   :  { %v13961_v45 = vpop.f32.mrb[152].mxu0 }
 0x8cc   :  { %v13962_v52 = vadd.f32 %v13961_v45, %v13874_v4  ;;  %v20949_v10 = vpop.f32.mrb[153].mxu0 }
 0x8ce   :  { %v14043_v9 = vadd.f32 %v14042_v56, %v13962_v52 }
 0x8d3   :  { %v14216_v15 = vpop.f32.mrb[154].mxu1 }
 0x8d4   :  { %v21006_v58 = vpop.f32.mrb[155].mxu1 }
 0x8db   :  { %v14137_v38 = vpop.f32.mrb[154].mxu0 }
 0x8dc   :  { %v14138_v34 = vadd.f32 %v14137_v38, %v14043_v9  ;;  %v20987_v49 = vpop.f32.mrb[155].mxu0 }
 0x8de   :  { %v14217_v6 = vadd.f32 %v14216_v15, %v14138_v34 }
 0x8e0   :  { %v14220_v13 = vadd.f32 %v23648_v25, %v14217_v6 }
 0x8e2   :  { %v15301_v54 = vsel %vm15300_vm2, %v14220_v13, %v26229_v11 }
 0x8e3   :  { %v15307_v63 = vsel %vm137_vm1, %v15301_v54, 0  ;;  %v14411_v24 = vpop.f32.mrb[156].mxu1 }
 0x8e4   :  { %v21044_v14 = vpop.f32.mrb[157].mxu1  ;;  %v26543_v39 = vand.u32 4294901760, %v15307_v63 }
 0x8e6   :  { %21271 = vmatmul.mubr.f32.vlgmr.msra.gmra.mrb[168].mxu1 %v26543_v39  ;;  %v15383_v8 = vsub.f32 %v15307_v63, %v26543_v39 }
 0x8e7   :  { %23517 = vmatpush3.bf16.msra.mxu1 %v26855_v20  ;;  %21308 = vmatprep.mubr.msk.f32.mxu1 %vm23798_vm0, %v26805_v12 }
 0x8e8   :  { %23518 = vmatprep.subr.bf16.mxu1 %v26802_v43  ;;  %v15384_v53 = vand.u32 4294901760, %v15383_v8 }
 0x8ea   :  { %v15385_v28 = vsub.f32 %v15383_v8, %v15384_v53 }
 0x8eb   :  { %23520 = vmatpush3.bf16.msra.mxu1 %v26857_v46  ;;  %v14300_v11 = vpop.f32.mrb[156].mxu0 }
 0x8ec   :  { %v14412_v30 = vadd.f32 %v14411_v24, %v14300_v11  ;;  %v21025_v3 = vpop.f32.mrb[157].mxu0  ;;  %23521 = vmatprep.subr.bf16.mxu1 %v26802_v43  ;;  %v15386_v18 = vand.u32 4294901760, %v15385_v28 }
 0x8ee   :  { %21252 = vmatmul.mubr.f32.vlgmr.msra.gmra.mrb[168].mxu0 %v15386_v18 }
 0x8ef   :  { %23505 = vmatpush3.bf16.msra.mxu0 %v26990_v31  ;;  %23523 = vmatpush3.bf16.msra.mxu1 %v26859_v44 }
 0x8f0   :  { %23506 = vmatprep.subr.bf16.mxu0 %v26802_v43  ;;  %23524 = vmatprep.subr.bf16.mxu1 %v26802_v43 }
 0x8f1   :  { %21289 = vmatprep.mubr.msk.f32.mxu0 %vm23798_vm0, %v26805_v12 }
 0x8f3   :  { %23508 = vmatpush3.bf16.msra.mxu0 %v26991_v21  ;;  %23526 = vmatpush3.bf16.msra.mxu1 %v26905_v5  ;;  %v14580_v47 = vpop.f32.mrb[158].mxu1 }
 0x8f4   :  { %v21082_v51 = vpop.f32.mrb[159].mxu1  ;;  %23509 = vmatprep.subr.bf16.mxu0 %v26802_v43  ;;  %23539 = vmatprep.subr.bf16.mxu1 %v26802_v43 }
 0x8f6   :  { %21309 = vmatmul.mubr.f32.vlgmr.msra.gmra.mrb[170].mxu1 %v15384_v53 }
 0x8f7   :  { %23511 = vmatpush3.bf16.msra.mxu0 %v26992_v29  ;;  %23541 = vmatpush3.bf16.msra.mxu1 %v26855_v20 }
 0x8f8   :  { %23512 = vmatprep.subr.bf16.mxu0 %v26802_v43  ;;  %23542 = vmatprep.subr.bf16.mxu1 %v26802_v43 }
 0x8f9   :  { %21346 = vmatprep.mubr.msk.f32.mxu1 %vm23798_vm0, %v26805_v12 }
 0x8fb   :  { %23514 = vmatpush3.bf16.msra.mxu0 %v26993_v50  ;;  %23544 = vmatpush3.bf16.msra.mxu1 %v26857_v46  ;;  %v14499_v31 = vpop.f32.mrb[158].mxu0 }
 0x8fc   :  { %v14500_v21 = vadd.f32 %v14499_v31, %v14412_v30  ;;  %v21063_v36 = vpop.f32.mrb[159].mxu0  ;;  %23527 = vmatprep.subr.bf16.mxu0 %v26802_v43  ;;  %23545 = vmatprep.subr.bf16.mxu1 %v26802_v43 }
 0x8fe   :  { %21290 = vmatmul.mubr.f32.vlgmr.msra.gmra.mrb[170].mxu0 %v15383_v8  ;;  %v14581_v20 = vadd.f32 %v14580_v47, %v14500_v21 }
 0x8ff   :  { %23529 = vmatpush3.bf16.msra.mxu0 %v26994_v0  ;;  %23547 = vmatpush3.bf16.msra.mxu1 %v26859_v44  ;;  %v23649_v44 = vld [vmem:[#allocation2 + $0x38] sm:$0xff] }
 0x900   :  { %23530 = vmatprep.subr.bf16.mxu0 %v26802_v43  ;;  %23548 = vmatprep.subr.bf16.mxu1 %v26802_v43  ;;  %v15847_v50 = vsel %vm137_vm1, %v23649_v44, 0 }
 0x901   :  { %21327 = vmatprep.mubr.msk.f32.mxu0 %vm23798_vm0, %v26805_v12 }
 0x903   :  { %23532 = vmatpush3.bf16.msra.mxu0 %v26995_v37  ;;  %23550 = vmatpush3.bf16.msra.mxu1 %v26905_v5  ;;  %v14754_v46 = vpop.f32.mrb[160].mxu1  ;;  %v26591_v5 = vand.u32 4294901760, %v15847_v50 }
 0x904   :  { %v21120_v29 = vpop.f32.mrb[161].mxu1  ;;  %23533 = vmatprep.subr.bf16.mxu0 %v26802_v43  ;;  %23563 = vmatprep.subr.bf16.mxu1 %v26802_v43 }
 0x906   :  { %21347 = vmatmul.mubr.f32.vlgmr.msra.gmra.mrb[172].mxu1 %v26543_v39 }
 0x907   :  { %23535 = vmatpush3.bf16.msra.mxu0 %v26996_v17  ;;  %23565 = vmatpush3.bf16.msra.mxu1 %v26997_v23  ;;  %v15923_v17 = vsub.f32 %v15847_v50, %v26591_v5 }
 0x908   :  { %23536 = vmatprep.subr.bf16.mxu0 %v26802_v43  ;;  %23566 = vmatprep.subr.bf16.mxu1 %v26802_v43 }
 0x909   :  { %21384 = vmatprep.mubr.msk.f32.mxu1 %vm23798_vm0, %v26805_v12 }
 0x90b   :  { %23538 = vmatpush3.bf16.msra.mxu0 %v26998_v1  ;;  %v14675_v0 = vpop.f32.mrb[160].mxu0  ;;  %23568 = vmatpush3.bf16.msra.mxu1 %v26999_v33  ;;  %v15924_v1 = vand.u32 4294901760, %v15923_v17 }
 0x90c   :  { %v14676_v37 = vadd.f32 %v14675_v0, %v14581_v20  ;;  %v21101_v57 = vpop.f32.mrb[161].mxu0  ;;  %23551 = vmatprep.subr.bf16.mxu0 %v26802_v43  ;;  %23569 = vmatprep.subr.bf16.mxu1 %v26802_v43 }
 0x90d   :  { %v15925_v56 = vsub.f32 %v15923_v17, %v15924_v1 }
 0x90e   :  { %21328 = vmatmul.mubr.f32.vlgmr.msra.gmra.mrb[172].mxu0 %v26543_v39  ;;  %v14755_v23 = vadd.f32 %v14754_v46, %v14676_v37 }
 0x90f   :  { %23553 = vmatpush3.bf16.msra.mxu0 %v27000_v2  ;;  %23571 = vmatpush3.bf16.msra.mxu1 %v27001_v41  ;;  %v15926_v41 = vand.u32 4294901760, %v15925_v56 }
 0x910   :  { %23554 = vmatprep.subr.bf16.mxu0 %v26802_v43  ;;  %23572 = vmatprep.subr.bf16.mxu1 %v26802_v43 }
 0x911   :  { %21365 = vmatprep.mubr.msk.f32.mxu0 %vm23798_vm0, %v26805_v12 }
 0x913   :  { %23556 = vmatpush3.bf16.msra.mxu0 %v27002_v40  ;;  %23574 = vmatpush3.bf16.msra.mxu1 %v27003_v42  ;;  %v14948_v33 = vpop.f32.mrb[162].mxu1 }
 0x914   :  { %23557 = vmatprep.subr.bf16.mxu0 %v26802_v43  ;;  %23587 = vmatprep.subr.bf16.mxu1 %v26802_v43  ;;  %v21158_v4 = vpop.f32.mrb[163].mxu1 }
 0x916   :  { %21385 = vmatmul.mubr.f32.vlgmr.msra.gmra.mrb[174].mxu1 %v26591_v5 }
 0x917   :  { %23559 = vmatpush3.bf16.msra.mxu0 %v27004_v7  ;;  %23589 = vmatpush3.bf16.msra.mxu1 %v27000_v2 }
 0x918   :  { %23560 = vmatprep.subr.bf16.mxu0 %v26802_v43  ;;  %23590 = vmatprep.subr.bf16.mxu1 %v26802_v43 }
 0x919   :  { %21422 = vmatprep.mubr.msk.f32.mxu1 %vm23798_vm0, %v26805_v12 }
 0x91b   :  { %23562 = vmatpush3.bf16.msra.mxu0 %v27005_v55  ;;  %v14837_v42 = vpop.f32.mrb[162].mxu0  ;;  %23592 = vmatpush3.bf16.msra.mxu1 %v27002_v40 }
 0x91c   :  { %v14838_v35 = vadd.f32 %v14837_v42, %v14755_v23  ;;  %23575 = vmatprep.subr.bf16.mxu0 %v26802_v43  ;;  %23593 = vmatprep.subr.bf16.mxu1 %v26802_v43  ;;  %v21139_v45 = vpop.f32.mrb[163].mxu0 }
 0x91e   :  { %v14949_v52 = vadd.f32 %v14948_v33, %v14838_v35  ;;  %21366 = vmatmul.mubr.f32.vlgmr.msra.gmra.mrb[174].mxu0 %v15926_v41 }
 0x91f   :  { %23577 = vmatpush3.bf16.msra.mxu0 %v27006_v59  ;;  %23595 = vmatpush3.bf16.msra.mxu1 %v27004_v7 }
 0x920   :  { %23578 = vmatprep.subr.bf16.mxu0 %v26802_v43  ;;  %23596 = vmatprep.subr.bf16.mxu1 %v26802_v43 }
 0x921   :  { %21403 = vmatprep.mubr.msk.f32.mxu0 %vm23798_vm0, %v26805_v12 }
 0x923   :  { %23580 = vmatpush3.bf16.msra.mxu0 %v27007_v26  ;;  %23598 = vmatpush3.bf16.msra.mxu1 %v27005_v55  ;;  %v15117_v10 = vpop.f32.mrb[164].mxu1 }
 0x924   :  { %23581 = vmatprep.subr.bf16.mxu0 %v26802_v43  ;;  %23611 = vmatprep.subr.bf16.mxu1 %v26802_v43  ;;  %v21196_v9 = vpop.f32.mrb[165].mxu1 }
 0x926   :  { %21423 = vmatmul.mubr.f32.vlgmr.msra.gmra.mrb[176].mxu1 %v15924_v1 }
 0x927   :  { %23583 = vmatpush3.bf16.msra.mxu0 %v27008_v16  ;;  %23613 = vmatpush3.bf16.msra.mxu1 %v27000_v2 }
 0x928   :  { %23584 = vmatprep.subr.bf16.mxu0 %v26802_v43  ;;  %23614 = vmatprep.subr.bf16.mxu1 %v26802_v43 }
 0x929   :  { %21460 = vmatprep.mubr.msk.f32.mxu1 %vm23798_vm0, %v26805_v12 }
 0x92b   :  { %23586 = vmatpush3.bf16.msra.mxu0 %v27009_v19  ;;  %v15036_v59 = vpop.f32.mrb[164].mxu0  ;;  %23616 = vmatpush3.bf16.msra.mxu1 %v27002_v40 }
 0x92c   :  { %v15037_v26 = vadd.f32 %v15036_v59, %v14949_v52  ;;  %23599 = vmatprep.subr.bf16.mxu0 %v26802_v43  ;;  %23617 = vmatprep.subr.bf16.mxu1 %v26802_v43  ;;  %v21177_v16 = vpop.f32.mrb[165].mxu0 }
 0x92e   :  { %v15118_v15 = vadd.f32 %v15117_v10, %v15037_v26  ;;  %21404 = vmatmul.mubr.f32.vlgmr.msra.gmra.mrb[176].mxu0 %v15923_v17 }
 0x92f   :  { %23601 = vmatpush3.bf16.msra.mxu0 %v27010_v60  ;;  %23619 = vmatpush3.bf16.msra.mxu1 %v27004_v7 }
 0x930   :  { %23602 = vmatprep.subr.bf16.mxu0 %v26802_v43  ;;  %23620 = vmatprep.subr.bf16.mxu1 %v26802_v43 }
 0x931   :  { %21441 = vmatprep.mubr.msk.f32.mxu0 %vm23798_vm0, %v26805_v12 }
 0x933   :  { %23604 = vmatpush3.bf16.msra.mxu0 %v27011_v27  ;;  %23622 = vmatpush3.bf16.msra.mxu1 %v27005_v55  ;;  %v15291_v2 = vpop.f32.mrb[166].mxu1 }
 0x934   :  { %23605 = vmatprep.subr.bf16.mxu0 %v26802_v43  ;;  %v21234_v40 = vpop.f32.mrb[167].mxu1 }
 0x936   :  { %21461 = vmatmul.mubr.f32.vlgmr.msra.gmra.mrb[178].mxu1 %v26591_v5 }
 0x937   :  { %23607 = vmatpush3.bf16.msra.mxu0 %v27012_v61 }
 0x938   :  { %23608 = vmatprep.subr.bf16.mxu0 %v26802_v43 }
 0x93b   :  { %23610 = vmatpush3.bf16.msra.mxu0 %v27013_v62  ;;  %v15212_v7 = vpop.f32.mrb[166].mxu0 }
 0x93c   :  { %v15213_v19 = vadd.f32 %v15212_v7, %v15118_v15  ;;  %v21215_v60 = vpop.f32.mrb[167].mxu0 }
 0x93e   :  { %v15292_v12 = vadd.f32 %v15291_v2, %v15213_v19  ;;  %21442 = vmatmul.mubr.f32.vlgmr.msra.gmra.mrb[178].mxu0 %v26591_v5  ;;  %v16390_v5 = vpop.permute.xlu1 %16389 }
 0x93f   :  { %vm16391_vm0 = vcmp.eq.s32.totalorder %v16390_v5, 1 }
 0x940   :  { %v15295_v55 = vadd.f32 %v26381_v32, %v15292_v12 }
 0x942   :  { %v15302_v27 = vsel %vm15300_vm2, %v15295_v55, %v26391_v22 }
 0x9b9   :  { %v15499_v58 = vpop.f32.mrb[168].mxu1 }
 0x9ba   :  { %v21272_v38 = vpop.f32.mrb[169].mxu1 }
 0x9c1   :  { %v15388_v34 = vpop.f32.mrb[168].mxu0 }
 0x9c2   :  { %v15500_v61 = vadd.f32 %v15499_v58, %v15388_v34  ;;  %v21253_v49 = vpop.f32.mrb[169].mxu0 }
 0x9c9   :  { %v15668_v43 = vpop.f32.mrb[170].mxu1 }
 0x9ca   :  { %v21310_v6 = vpop.f32.mrb[171].mxu1 }
 0x9d1   :  { %v15587_v62 = vpop.f32.mrb[170].mxu0 }
 0x9d2   :  { %v15588_v25 = vadd.f32 %v15587_v62, %v15500_v61  ;;  %v21291_v13 = vpop.f32.mrb[171].mxu0 }
 0x9d4   :  { %v15669_v54 = vadd.f32 %v15668_v43, %v15588_v25 }
 0x9d9   :  { %v15842_v63 = vpop.f32.mrb[172].mxu1 }
 0x9da   :  { %v21348_v24 = vpop.f32.mrb[173].mxu1 }
 0x9e1   :  { %v15763_v14 = vpop.f32.mrb[172].mxu0 }
 0x9e2   :  { %v15764_v39 = vadd.f32 %v15763_v14, %v15669_v54  ;;  %v21329_v8 = vpop.f32.mrb[173].mxu0 }
 0x9e4   :  { %v15843_v53 = vadd.f32 %v15842_v63, %v15764_v39 }
 0x9e9   :  { %v16039_v28 = vpop.f32.mrb[174].mxu1 }
 0x9ea   :  { %v21386_v48 = vpop.f32.mrb[175].mxu1 }
 0x9f1   :  { %v15928_v22 = vpop.f32.mrb[174].mxu0 }
 0x9f2   :  { %v15929_v11 = vadd.f32 %v15928_v22, %v15843_v53  ;;  %v21367_v30 = vpop.f32.mrb[175].mxu0 }
 0x9f4   :  { %v16040_v3 = vadd.f32 %v16039_v28, %v15929_v11 }
 0x9f9   :  { %v16208_v18 = vpop.f32.mrb[176].mxu1 }
 0x9fa   :  { %v21424_v47 = vpop.f32.mrb[177].mxu1 }
 0xa01   :  { %v16127_v51 = vpop.f32.mrb[176].mxu0 }
 0xa02   :  { %v16128_v31 = vadd.f32 %v16127_v51, %v16040_v3  ;;  %v21405_v21 = vpop.f32.mrb[177].mxu0 }
 0xa04   :  { %v16209_v36 = vadd.f32 %v16208_v18, %v16128_v31 }
 0xa09   :  { %v16382_v20 = vpop.f32.mrb[178].mxu1 }
 0xa0a   :  { %v21462_v46 = vpop.f32.mrb[179].mxu1 }
 0xa11   :  { %v16303_v29 = vpop.f32.mrb[178].mxu0 }
 0xa12   :  { %v16304_v44 = vadd.f32 %v16303_v29, %v16209_v36  ;;  %v21443_v50 = vpop.f32.mrb[179].mxu0 }
 0xa14   :  { %v16383_v0 = vadd.f32 %v16382_v20, %v16304_v44 }
 0xa16   :  { %v16386_v37 = vadd.f32 %v26381_v32, %v16383_v0 }
 0xa18   :  { %v16392_v57 = vsel %vm16391_vm0, %v16386_v37, %v15302_v27 }
 0xa19   :  { %16393 = vmax.xlane.f32.xlu0 %v16392_v57 }
 0xaa6   :  { %v16394_v17 = vpop.xlane.xlu0 %16393 }
 0xaa7   :  { %v16395_v23 = vsub.f32 %v16392_v57, %v16394_v17 }
 0xaa9   :  { %v16396_v1 = vmul.f32 1.442695, %v16395_v23 }
 0xaab   :  { %23637 = vpow2.f32 %v16396_v1 }
 0xab5   :  { %v23638_v33 = vpop.eup %23637 }
 0xab6   :  { %16398 = vadd.xlane.f32.xlu1 %v23638_v33 }
 0xb43   :  { %v16399_v4 = vpop.xlane.xlu1 %16398 }
 0xb44   :  { %23639 = vlog2.f32 %v16399_v4 }
 0xb4e   :  { %v23640_v56 = vpop.eup %23639 }
 0xb4f   :  { %v16401_v41 = vmul.f32 0.6931472, %v23640_v56 }
 0xb51   :  { %v16402_v42 = vsub.f32 %v16395_v23, %v16401_v41 }
 0xb53   :  { %16403 = vst [vmem:[#allocation11] sm:$0xff] %v16402_v42 }
 0xb54   :  { %23771 = shalt.err (!%p23768_p2)
}
 0xb55   :  { %s23772_s28 = scalar_lea.hbm %s26678_s7, 128 }
 0xb56   :  { %p23773_p3 = scmp.ne.s32.totalorder %s26678_s7, %s23772_s28  ;;  %p23776_p4 = scmp.lt.u32.totalorder %s23772_s28, %s26678_s7 }
 0xb58   :  { %p23778_p5 = pnand %p23776_p4, %p23773_p3 }
 0xb5a   :  { %23781 = shalt.err (!%p23778_p5)
}
 0xb5b   :  { %16413 = dma.vmem_to_hbm [thread:$0]  %s16411_s1, 128, %s26678_s7, [#allocation4]  }
 0xb5c   :  { %23788 = dma.done.wait [#allocation4], 128  }
 0xb5d   :  { %23789 = vsyncadd [#allocation4], 4294967168 }
 0xb5e   :  { %16417 = vsyncpa [#allocation3], 1 }
 0xb5f   :  { %16418 = vsyncpa [#allocation6], 1 }
 0xb60   :  { %16419 = vsyncpa [#allocation9], 1 }
 0xb61   :  { %16420 = vsyncpa [#allocation4], 1 }

</bundles_post_ra>
